<compile_context>
chip_gen: v6e
topology: v6e:2x2x1
jax: 0.10.0
libtpu: 0.0.40
codegen_flags: <defaults>
</compile_context>

<pallas_src>
import functools

import jax
import jax.numpy as jnp
from jax.experimental import pallas as pl
from jax.experimental.pallas import tpu as pltpu


# ----------------------------- in-kernel helpers -----------------------------

def _erf(x):
    # Abramowitz & Stegun 7.1.26 rational approximation, |error| < 1.5e-7.
    a1, a2, a3, a4, a5 = (0.254829592, -0.284496736, 1.421413741,
                          -1.453152027, 1.061405429)
    p = 0.3275911
    sgn = jnp.where(x >= 0.0, 1.0, -1.0)
    ax = jnp.abs(x)
    t = 1.0 / (1.0 + p * ax)
    poly = ((((a5 * t + a4) * t + a3) * t + a2) * t + a1) * t
    return sgn * (1.0 - poly * jnp.exp(-ax * ax))


def _gelu_exact(x):
    return 0.5 * x * (1.0 + _erf(x * 0.7071067811865476))


def _layer_norm_mm(x, gamma, beta, eps):
    # mean/var via an all-(1/H) matmul: the H-wide reduction *and* the
    # broadcast back over H happen in a single MXU op instead of XLU+VPU.
    H = x.shape[-1]
    avg = jnp.full((H, H), 1.0 / H, dtype=jnp.float32)
    mu = jnp.dot(x, avg, preferred_element_type=jnp.float32)
    xc = x - mu
    var = jnp.dot(xc * xc, avg, preferred_element_type=jnp.float32)
    return xc * jax.lax.rsqrt(var + eps) * gamma + beta


def _head_selector(H, G, head_dim, shape_hg):
    # selector[j, h] = 1.0 iff feature j belongs to head h (iota + compares
    # only; no integer division, no lane slicing).
    if shape_hg:
        fi = jax.lax.broadcasted_iota(jnp.int32, (H, G), 0)   # feature index
        hi = jax.lax.broadcasted_iota(jnp.int32, (H, G), 1)   # head index
    else:
        fi = jax.lax.broadcasted_iota(jnp.int32, (G, H), 1)
        hi = jax.lax.broadcasted_iota(jnp.int32, (G, H), 0)
    inside = (fi >= hi * head_dim) & (fi < (hi + 1) * head_dim)
    return jnp.where(inside, 1.0, 0.0).astype(jnp.float32)


# --------------------------------- kernel ------------------------------------

def gnn_layer_kernel(q_ref, nb_ref,
                     wq_ref, bq_ref, wk_ref, bk_ref, wv_ref, bv_ref,
                     wo_ref, bo_ref, g1_ref, be1_ref, w1_ref, b1_ref,
                     w2_ref, b2_ref, g2_ref, be2_ref,
                     out_ref, *, num_heads, head_dim, eps):
    Bblk, H = q_ref.shape               # (node-block, hidden)
    N = nb_ref.shape[0] // Bblk         # neighbors per node (pre-flattened)
    G = num_heads

    q_in = q_ref[...]                   # (Bblk, H) f32, kept exact for residual
    nb2 = nb_ref[...]                   # (Bblk*N, H) bf16

    # In-projections: bf16 MXU inputs, f32 accumulation.  The 1/sqrt(head_dim)
    # attention scale is folded into wq/bq at prepare_params() time.
    q = jnp.dot(q_in.astype(jnp.bfloat16), wq_ref[...],
                preferred_element_type=jnp.float32) + bq_ref[...]
    k = jnp.dot(nb2, wk_ref[...],
                preferred_element_type=jnp.float32) + bk_ref[...]
    v = jnp.dot(nb2, wv_ref[...],
                preferred_element_type=jnp.float32) + bv_ref[...]
    k3 = k.reshape(Bblk, N, H)          # leading-dim split: layout-free
    v3 = v.reshape(Bblk, N, H)

    # Per-head scores without head_dim lane slices: elementwise q*k, then one
    # (H, num_heads) block-selector matmul reduces each head's features.
    sel = _head_selector(H, G, head_dim, shape_hg=True)     # (H, G)
    selT = _head_selector(H, G, head_dim, shape_hg=False)   # (G, H)

    qk = q[:, None, :] * k3                                  # (Bblk, N, H) f32
    s = jnp.dot(qk.reshape(Bblk * N, H), sel,
                preferred_element_type=jnp.float32).reshape(Bblk, N, G)

    # softmax over the neighbor axis (f32 throughout)
    m = jnp.max(s, axis=1, keepdims=True)
    e = jnp.exp(s - m)
    denom = jnp.sum(e, axis=1, keepdims=True)
    r = pl.reciprocal(denom, approx=True)
    r = r * (2.0 - denom * r)            # one Newton step -> ~f32-exact 1/denom
    p = e * r

    # Expand head probabilities back over the feature axis, aggregate values.
    p_exp = jnp.dot(p.reshape(Bblk * N, G), selT,
                    preferred_element_type=jnp.float32).reshape(Bblk, N, H)
    attn = jnp.sum(p_exp * v3, axis=1)                       # (Bblk, H)
    attn = jnp.dot(attn.astype(jnp.bfloat16), wo_ref[...],
                   preferred_element_type=jnp.float32) + bo_ref[...]

    # residual + norm1 (dropout == identity at inference)
    x = _layer_norm_mm(q_in + attn, g1_ref[...], be1_ref[...], eps)

    # FFN: Linear(H, 4H) -> GELU(exact) -> Linear(4H, H)
    h1 = jnp.dot(x.astype(jnp.bfloat16), w1_ref[...],
                 preferred_element_type=jnp.float32) + b1_ref[...]
    h1 = _gelu_exact(h1)                 # (Bblk, 4H) == 128-lane dense at H=32
    ffn = jnp.dot(h1.astype(jnp.bfloat16), w2_ref[...],
                  preferred_element_type=jnp.float32) + b2_ref[...]

    # residual + norm2
    out_ref[...] = _layer_norm_mm(x + ffn, g2_ref[...], be2_ref[...], eps)


# ------------------------------ params & wrapper ------------------------------

_PARAM_ORDER = ("wq", "bq", "wk", "bk", "wv", "bv", "wo", "bo",
                "g1", "be1", "w1", "b1", "w2", "b2", "g2", "be2")


def init_params(key, hidden_size, num_heads=4):
    """Logical (f32, unscaled) parameters mirroring the PyTorch module."""
    H = hidden_size
    ks = jax.random.split(key, 8)

    def xavier(k, shape):
        fan_in, fan_out = shape
        lim = (6.0 / (fan_in + fan_out)) ** 0.5
        return jax.random.uniform(k, shape, jnp.float32, -lim, lim)

    w_in = xavier(ks[0], (H, 3 * H))   # mirrors PyTorch in_proj_weight (transposed)
    return {
        "wq": w_in[:, :H], "bq": jnp.zeros((1, H), jnp.float32),
        "wk": w_in[:, H:2 * H], "bk": jnp.zeros((1, H), jnp.float32),
        "wv": w_in[:, 2 * H:], "bv": jnp.zeros((1, H), jnp.float32),
        "wo": xavier(ks[1], (H, H)),
        "bo": 0.02 * jax.random.normal(ks[2], (1, H), jnp.float32),
        "g1": jnp.ones((1, H), jnp.float32),
        "be1": 0.02 * jax.random.normal(ks[3], (1, H), jnp.float32),
        "w1": xavier(ks[4], (H, 4 * H)),
        "b1": 0.02 * jax.random.normal(ks[5], (1, 4 * H), jnp.float32),
        "w2": xavier(ks[6], (4 * H, H)),
        "b2": 0.02 * jax.random.normal(ks[7], (1, H), jnp.float32),
        "g2": jnp.ones((1, H), jnp.float32),
        "be2": jnp.zeros((1, H), jnp.float32),
    }


def prepare_params(params, num_heads=4):
    """One-time (outside the per-call path): fold the 1/sqrt(head_dim)
    attention scale into wq/bq and cast matmul weights to bf16 (MXU inputs).
    Biases and LayerNorm affine params stay f32 (elementwise math stays f32)."""
    H = params["wq"].shape[0]
    scale = 1.0 / float(H // num_heads) ** 0.5
    out = dict(params)
    out["wq"] = params["wq"] * scale
    out["bq"] = params["bq"] * scale
    for name in ("wq", "wk", "wv", "wo", "w1", "w2"):
        out[name] = out[name].astype(jnp.bfloat16)
    for name in ("bq", "bk", "bv", "bo", "g1", "be1", "b1", "b2", "g2", "be2"):
        out[name] = out[name].astype(jnp.float32)
    return {name: out[name] for name in _PARAM_ORDER}


def _round_up(x, m):
    return ((x + m - 1) // m) * m


def gnn_layer_forward_batched(prepared, queries, neighbors, num_heads=4,
                              block_b=512):
    """queries: (B, H), neighbors: (B, N, H) -> (B, H) f32."""
    B, H = queries.shape
    N = neighbors.shape[1]
    head_dim = H // num_heads

    # Big blocks amortize per-grid-step overhead; cap at ceil(B/2) so the
    # "parallel" axis keeps a >=2-step grid (both TensorCores busy on v7x).
    blk = _round_up(max(8, min(block_b, B)), 8)
    if B > 8:
        blk = min(blk, _round_up(-(-B // 2), 8))
    Bp = _round_up(B, blk)

    queries = queries.astype(jnp.float32)
    neighbors = neighbors.astype(jnp.bfloat16)      # halves neighbor HBM bytes
    if Bp != B:                                     # padded rows sliced off below
        queries = jnp.pad(queries, ((0, Bp - B), (0, 0)))
        neighbors = jnp.pad(neighbors, ((0, Bp - B), (0, 0), (0, 0)))
    nb_flat = neighbors.reshape(Bp * N, H)          # 2-D so the kernel never
                                                    # reshapes bf16 minor dims

    kernel = functools.partial(gnn_layer_kernel, num_heads=num_heads,
                               head_dim=head_dim, eps=1e-5)

    # Weights: constant block index -> DMA'd once, VMEM-resident across grid.
    weight_specs = [pl.BlockSpec(prepared[name].shape, lambda i: (0, 0))
                    for name in _PARAM_ORDER]

    out = pl.pallas_call(
        kernel,
        out_shape=jax.ShapeDtypeStruct((Bp, H), jnp.float32),
        grid=(Bp // blk,),
        in_specs=[pl.BlockSpec((blk, H), lambda i: (i, 0)),
                  pl.BlockSpec((blk * N, H), lambda i: (i, 0))]
                 + weight_specs,
        out_specs=pl.BlockSpec((blk, H), lambda i: (i, 0)),
        compiler_params=pltpu.CompilerParams(
            dimension_semantics=("parallel",),
            # Above the 16 MiB v5e scoped default; within the 32 MiB scoped
            # default on v6e/v7x (v7x physical VMEM is 64 MiB per TC).
            vmem_limit_bytes=32 * 1024 * 1024),
    )(queries, nb_flat, *[prepared[name] for name in _PARAM_ORDER])
    return out[:B]


def gnn_layer_forward(prepared, query, neighbors, num_heads=4):
    """Module-equivalent call. query: (H,), neighbors: (N, H) -> (H,)."""
    if neighbors.shape[0] == 0:        # mirrors `if neighbors.size(0) == 0`
        return query
    out = gnn_layer_forward_batched(prepared, query[None, :],
                                    neighbors[None, :, :], num_heads)
    return out[0]


# ------------------------------ pure-JAX reference ----------------------------

def gnn_layer_reference(params, query, neighbors, num_heads=4):
    H = query.shape[-1]
    d = H // num_heads
    N = neighbors.shape[0]
    q_in = query[None, :]
    q = q_in @ params["wq"] + params["bq"]
    k = neighbors @ params["wk"] + params["bk"]
    v = neighbors @ params["wv"] + params["bv"]
    qh = q.reshape(1, num_heads, d).transpose(1, 0, 2)
    kh = k.reshape(N, num_heads, d).transpose(1, 0, 2)
    vh = v.reshape(N, num_heads, d).transpose(1, 0, 2)
    s = jnp.einsum("hqd,hkd->hqk", qh, kh) / jnp.sqrt(jnp.float32(d))
    p = jax.nn.softmax(s, axis=-1)
    o = jnp.einsum("hqk,hkd->hqd", p, vh).transpose(1, 0, 2).reshape(1, H)
    attn = o @ params["wo"] + params["bo"]

    def ln(x, g, b):
        mu = x.mean(-1, keepdims=True)
        var = ((x - mu) ** 2).mean(-1, keepdims=True)
        return (x - mu) / jnp.sqrt(var + 1e-5) * g + b

    x = ln(q_in + attn, params["g1"], params["be1"])
    ffn = jax.nn.gelu(x @ params["w1"] + params["b1"],
                      approximate=False) @ params["w2"] + params["b2"]
    return ln(x + ffn, params["g2"], params["be2"])[0]


# ----------------------------------- main -------------------------------------

if __name__ == "__main__":
    HIDDEN = 32
    NUM_HEADS = 4
    N_NEIGHBORS = 8
    N_NODES = 64          # many graph nodes per pallas_call (-> 2-step grid)

    key = jax.random.PRNGKey(0)
    k_params, k_q, k_nb = jax.random.split(key, 3)
    params = init_params(k_params, HIDDEN, NUM_HEADS)
    prepared = prepare_params(params, NUM_HEADS)   # one-time scale-fold + bf16
    queries = jax.random.normal(k_q, (N_NODES, HIDDEN), jnp.float32)
    neighbors = jax.random.normal(k_nb, (N_NODES, N_NEIGHBORS, HIDDEN),
                                  jnp.float32)

    # Batched path (default block_b; wrapper picks a 2-step "parallel" grid).
    out_b = gnn_layer_forward_batched(prepared, queries, neighbors, NUM_HEADS)
    out_b = jax.block_until_ready(out_b)
    ref_b = jax.vmap(lambda q, nb: gnn_layer_reference(params, q, nb,
                                                       NUM_HEADS))(queries,
                                                                   neighbors)
    assert out_b.shape == (N_NODES, HIDDEN)
    err_b = float(jnp.max(jnp.abs(out_b - ref_b)))
    # Tolerance sized for bf16 MXU inputs (f32 accumulation, f32 elementwise).
    assert jnp.allclose(out_b, ref_b, rtol=3e-2, atol=3e-2), err_b

    # Module-equivalent single-node call (query (H,), neighbors (N, H)).
    out_1 = gnn_layer_forward(prepared, queries[0], neighbors[0], NUM_HEADS)
    out_1 = jax.block_until_ready(out_1)
    assert out_1.shape == (HIDDEN,)
    err_1 = float(jnp.max(jnp.abs(out_1 - ref_b[0])))
    assert jnp.allclose(out_1, ref_b[0], rtol=3e-2, atol=3e-2), err_1

    print("KERNEL_OK")
</pallas_src>

<mosaic_0001>
module attributes {stable_mosaic.version = 11 : i64} {
  func.func @gnn_layer_kernel(%arg0: i32, %arg1: memref<32x32xf32, #tpu.memory_space<vmem>>, %arg2: memref<256x32xbf16, #tpu.memory_space<vmem>>, %arg3: memref<32x32xbf16, #tpu.memory_space<vmem>>, %arg4: memref<1x32xf32, #tpu.memory_space<vmem>>, %arg5: memref<32x32xbf16, #tpu.memory_space<vmem>>, %arg6: memref<1x32xf32, #tpu.memory_space<vmem>>, %arg7: memref<32x32xbf16, #tpu.memory_space<vmem>>, %arg8: memref<1x32xf32, #tpu.memory_space<vmem>>, %arg9: memref<32x32xbf16, #tpu.memory_space<vmem>>, %arg10: memref<1x32xf32, #tpu.memory_space<vmem>>, %arg11: memref<1x32xf32, #tpu.memory_space<vmem>>, %arg12: memref<1x32xf32, #tpu.memory_space<vmem>>, %arg13: memref<32x128xbf16, #tpu.memory_space<vmem>>, %arg14: memref<1x128xf32, #tpu.memory_space<vmem>>, %arg15: memref<128x32xbf16, #tpu.memory_space<vmem>>, %arg16: memref<1x32xf32, #tpu.memory_space<vmem>>, %arg17: memref<1x32xf32, #tpu.memory_space<vmem>>, %arg18: memref<1x32xf32, #tpu.memory_space<vmem>>, %arg19: memref<32x32xf32, #tpu.memory_space<vmem>>) attributes {dimension_semantics = [#tpu.dimension_semantics<parallel>], iteration_bounds = array<i64: 2>, scalar_prefetch = 0 : i64, scratch_operands = 0 : i64, tpu.core_type = #tpu.core_type<tc>, window_params = [{transform_indices = @transform_0, window_bounds = array<i64: 32, 32>}, {transform_indices = @transform_1, window_bounds = array<i64: 256, 32>}, {pipeline_mode = #tpu.pipeline_mode<synchronous>, transform_indices = @transform_2, window_bounds = array<i64: 32, 32>}, {pipeline_mode = #tpu.pipeline_mode<synchronous>, transform_indices = @transform_3, window_bounds = array<i64: 1, 32>}, {pipeline_mode = #tpu.pipeline_mode<synchronous>, transform_indices = @transform_4, window_bounds = array<i64: 32, 32>}, {pipeline_mode = #tpu.pipeline_mode<synchronous>, transform_indices = @transform_5, window_bounds = array<i64: 1, 32>}, {pipeline_mode = #tpu.pipeline_mode<synchronous>, transform_indices = @transform_6, window_bounds = array<i64: 32, 32>}, {pipeline_mode = #tpu.pipeline_mode<synchronous>, transform_indices = @transform_7, window_bounds = array<i64: 1, 32>}, {pipeline_mode = #tpu.pipeline_mode<synchronous>, transform_indices = @transform_8, window_bounds = array<i64: 32, 32>}, {pipeline_mode = #tpu.pipeline_mode<synchronous>, transform_indices = @transform_9, window_bounds = array<i64: 1, 32>}, {pipeline_mode = #tpu.pipeline_mode<synchronous>, transform_indices = @transform_10, window_bounds = array<i64: 1, 32>}, {pipeline_mode = #tpu.pipeline_mode<synchronous>, transform_indices = @transform_11, window_bounds = array<i64: 1, 32>}, {pipeline_mode = #tpu.pipeline_mode<synchronous>, transform_indices = @transform_12, window_bounds = array<i64: 32, 128>}, {pipeline_mode = #tpu.pipeline_mode<synchronous>, transform_indices = @transform_13, window_bounds = array<i64: 1, 128>}, {pipeline_mode = #tpu.pipeline_mode<synchronous>, transform_indices = @transform_14, window_bounds = array<i64: 128, 32>}, {pipeline_mode = #tpu.pipeline_mode<synchronous>, transform_indices = @transform_15, window_bounds = array<i64: 1, 32>}, {pipeline_mode = #tpu.pipeline_mode<synchronous>, transform_indices = @transform_16, window_bounds = array<i64: 1, 32>}, {pipeline_mode = #tpu.pipeline_mode<synchronous>, transform_indices = @transform_17, window_bounds = array<i64: 1, 32>}, {transform_indices = @transform_18, window_bounds = array<i64: 32, 32>}]} {
    %c0 = arith.constant 0 : index
    %c0_0 = arith.constant 0 : index
    %0 = vector.load %arg1[%c0, %c0_0] : memref<32x32xf32, #tpu.memory_space<vmem>>, vector<32x32xf32>
    %c0_1 = arith.constant 0 : index
    %c0_2 = arith.constant 0 : index
    %1 = vector.load %arg2[%c0_1, %c0_2] : memref<256x32xbf16, #tpu.memory_space<vmem>>, vector<256x32xbf16>
    %2 = arith.truncf %0 : vector<32x32xf32> to vector<32x32xbf16>
    %c0_3 = arith.constant 0 : index
    %c0_4 = arith.constant 0 : index
    %3 = vector.load %arg3[%c0_3, %c0_4] : memref<32x32xbf16, #tpu.memory_space<vmem>>, vector<32x32xbf16>
    %cst = arith.constant dense<0.000000e+00> : vector<32x32xf32>
    %4 = tpu.matmul %2, %3, %cst {dimension_numbers = #tpu.dot_dimension_numbers<[1], [0], [0], [1], [0, 0, 1, 1], [], []>} : vector<32x32xbf16>, vector<32x32xbf16>, vector<32x32xf32> -> vector<32x32xf32>
    %c0_5 = arith.constant 0 : index
    %c0_6 = arith.constant 0 : index
    %5 = vector.load %arg4[%c0_5, %c0_6] : memref<1x32xf32, #tpu.memory_space<vmem>>, vector<1x32xf32>
    %6 = vector.broadcast %5 : vector<1x32xf32> to vector<32x32xf32>
    %7 = arith.addf %4, %6 : vector<32x32xf32>
    %c0_7 = arith.constant 0 : index
    %c0_8 = arith.constant 0 : index
    %8 = vector.load %arg5[%c0_7, %c0_8] : memref<32x32xbf16, #tpu.memory_space<vmem>>, vector<32x32xbf16>
    %cst_9 = arith.constant dense<0.000000e+00> : vector<256x32xf32>
    %9 = tpu.matmul %1, %8, %cst_9 {dimension_numbers = #tpu.dot_dimension_numbers<[1], [0], [0], [1], [0, 0, 1, 1], [], []>} : vector<256x32xbf16>, vector<32x32xbf16>, vector<256x32xf32> -> vector<256x32xf32>
    %c0_10 = arith.constant 0 : index
    %c0_11 = arith.constant 0 : index
    %10 = vector.load %arg6[%c0_10, %c0_11] : memref<1x32xf32, #tpu.memory_space<vmem>>, vector<1x32xf32>
    %11 = vector.broadcast %10 : vector<1x32xf32> to vector<256x32xf32>
    %12 = arith.addf %9, %11 : vector<256x32xf32>
    %c0_12 = arith.constant 0 : index
    %c0_13 = arith.constant 0 : index
    %13 = vector.load %arg7[%c0_12, %c0_13] : memref<32x32xbf16, #tpu.memory_space<vmem>>, vector<32x32xbf16>
    %cst_14 = arith.constant dense<0.000000e+00> : vector<256x32xf32>
    %14 = tpu.matmul %1, %13, %cst_14 {dimension_numbers = #tpu.dot_dimension_numbers<[1], [0], [0], [1], [0, 0, 1, 1], [], []>} : vector<256x32xbf16>, vector<32x32xbf16>, vector<256x32xf32> -> vector<256x32xf32>
    %c0_15 = arith.constant 0 : index
    %c0_16 = arith.constant 0 : index
    %15 = vector.load %arg8[%c0_15, %c0_16] : memref<1x32xf32, #tpu.memory_space<vmem>>, vector<1x32xf32>
    %16 = vector.broadcast %15 : vector<1x32xf32> to vector<256x32xf32>
    %17 = arith.addf %14, %16 : vector<256x32xf32>
    %18 = vector.shape_cast %12 : vector<256x32xf32> to vector<32x8x32xf32>
    %19 = vector.shape_cast %17 : vector<256x32xf32> to vector<32x8x32xf32>
    %20 = tpu.iota {dimensions = array<i32: 0>} : vector<32x4xi32>
    %21 = tpu.iota {dimensions = array<i32: 1>} : vector<32x4xi32>
    %c8_i32 = arith.constant 8 : i32
    %22 = vector.broadcast %c8_i32 : i32 to vector<32x4xi32>
    %23 = arith.muli %21, %22 : vector<32x4xi32>
    %24 = arith.cmpi sge, %20, %23 : vector<32x4xi32>
    %c1_i32 = arith.constant 1 : i32
    %25 = vector.broadcast %c1_i32 : i32 to vector<32x4xi32>
    %26 = arith.addi %21, %25 : vector<32x4xi32>
    %c8_i32_17 = arith.constant 8 : i32
    %27 = vector.broadcast %c8_i32_17 : i32 to vector<32x4xi32>
    %28 = arith.muli %26, %27 : vector<32x4xi32>
    %29 = arith.cmpi slt, %20, %28 : vector<32x4xi32>
    %30 = arith.andi %24, %29 : vector<32x4xi1>
    %cst_18 = arith.constant 1.000000e+00 : f32
    %cst_19 = arith.constant 0.000000e+00 : f32
    %31 = vector.broadcast %cst_18 : f32 to vector<32x4xf32>
    %32 = vector.broadcast %cst_19 : f32 to vector<32x4xf32>
    %33 = arith.select %30, %31, %32 : vector<32x4xi1>, vector<32x4xf32>
    %34 = tpu.iota {dimensions = array<i32: 1>} : vector<4x32xi32>
    %35 = tpu.iota {dimensions = array<i32: 0>} : vector<4x32xi32>
    %c8_i32_20 = arith.constant 8 : i32
    %36 = vector.broadcast %c8_i32_20 : i32 to vector<4x32xi32>
    %37 = arith.muli %35, %36 : vector<4x32xi32>
    %38 = arith.cmpi sge, %34, %37 : vector<4x32xi32>
    %c1_i32_21 = arith.constant 1 : i32
    %39 = vector.broadcast %c1_i32_21 : i32 to vector<4x32xi32>
    %40 = arith.addi %35, %39 : vector<4x32xi32>
    %c8_i32_22 = arith.constant 8 : i32
    %41 = vector.broadcast %c8_i32_22 : i32 to vector<4x32xi32>
    %42 = arith.muli %40, %41 : vector<4x32xi32>
    %43 = arith.cmpi slt, %34, %42 : vector<4x32xi32>
    %44 = arith.andi %38, %43 : vector<4x32xi1>
    %cst_23 = arith.constant 1.000000e+00 : f32
    %cst_24 = arith.constant 0.000000e+00 : f32
    %45 = vector.broadcast %cst_23 : f32 to vector<4x32xf32>
    %46 = vector.broadcast %cst_24 : f32 to vector<4x32xf32>
    %47 = arith.select %44, %45, %46 : vector<4x32xi1>, vector<4x32xf32>
    %48 = vector.shape_cast %7 : vector<32x32xf32> to vector<32x1x32xf32>
    %49 = vector.broadcast %48 : vector<32x1x32xf32> to vector<32x8x32xf32>
    %50 = arith.mulf %49, %18 : vector<32x8x32xf32>
    %51 = vector.shape_cast %50 : vector<32x8x32xf32> to vector<256x32xf32>
    %cst_25 = arith.constant dense<0.000000e+00> : vector<256x4xf32>
    %52 = tpu.matmul %51, %33, %cst_25 {dimension_numbers = #tpu.dot_dimension_numbers<[1], [0], [0], [1], [0, 0, 1, 1], [], []>} : vector<256x32xf32>, vector<32x4xf32>, vector<256x4xf32> -> vector<256x4xf32>
    %53 = vector.shape_cast %52 : vector<256x4xf32> to vector<32x8x4xf32>
    %cst_26 = arith.constant dense<0xFF800000> : vector<32x4xf32>
    %54 = vector.multi_reduction <maximumf>, %53, %cst_26 [1] : vector<32x8x4xf32> to vector<32x4xf32>
    %55 = vector.shape_cast %54 : vector<32x4xf32> to vector<32x1x4xf32>
    %56 = vector.broadcast %55 : vector<32x1x4xf32> to vector<32x8x4xf32>
    %57 = arith.subf %53, %56 : vector<32x8x4xf32>
    %58 = math.exp %57 : vector<32x8x4xf32>
    %cst_27 = arith.constant dense<0.000000e+00> : vector<32x4xf32>
    %59 = vector.multi_reduction <add>, %58, %cst_27 [1] : vector<32x8x4xf32> to vector<32x4xf32>
    %60 = vector.shape_cast %59 : vector<32x4xf32> to vector<32x1x4xf32>
    %61 = tpu.reciprocal %60 {approx = true} : vector<32x1x4xf32> -> vector<32x1x4xf32>
    %62 = arith.mulf %60, %61 : vector<32x1x4xf32>
    %cst_28 = arith.constant 2.000000e+00 : f32
    %63 = vector.broadcast %cst_28 : f32 to vector<32x1x4xf32>
    %64 = arith.subf %63, %62 : vector<32x1x4xf32>
    %65 = arith.mulf %61, %64 : vector<32x1x4xf32>
    %66 = vector.broadcast %65 : vector<32x1x4xf32> to vector<32x8x4xf32>
    %67 = arith.mulf %58, %66 : vector<32x8x4xf32>
    %68 = vector.shape_cast %67 : vector<32x8x4xf32> to vector<256x4xf32>
    %cst_29 = arith.constant dense<0.000000e+00> : vector<256x32xf32>
    %69 = tpu.matmul %68, %47, %cst_29 {dimension_numbers = #tpu.dot_dimension_numbers<[1], [0], [0], [1], [0, 0, 1, 1], [], []>} : vector<256x4xf32>, vector<4x32xf32>, vector<256x32xf32> -> vector<256x32xf32>
    %70 = vector.shape_cast %69 : vector<256x32xf32> to vector<32x8x32xf32>
    %71 = arith.mulf %70, %19 : vector<32x8x32xf32>
    %cst_30 = arith.constant dense<0.000000e+00> : vector<32x32xf32>
    %72 = vector.multi_reduction <add>, %71, %cst_30 [1] : vector<32x8x32xf32> to vector<32x32xf32>
    %73 = arith.truncf %72 : vector<32x32xf32> to vector<32x32xbf16>
    %c0_31 = arith.constant 0 : index
    %c0_32 = arith.constant 0 : index
    %74 = vector.load %arg9[%c0_31, %c0_32] : memref<32x32xbf16, #tpu.memory_space<vmem>>, vector<32x32xbf16>
    %cst_33 = arith.constant dense<0.000000e+00> : vector<32x32xf32>
    %75 = tpu.matmul %73, %74, %cst_33 {dimension_numbers = #tpu.dot_dimension_numbers<[1], [0], [0], [1], [0, 0, 1, 1], [], []>} : vector<32x32xbf16>, vector<32x32xbf16>, vector<32x32xf32> -> vector<32x32xf32>
    %c0_34 = arith.constant 0 : index
    %c0_35 = arith.constant 0 : index
    %76 = vector.load %arg10[%c0_34, %c0_35] : memref<1x32xf32, #tpu.memory_space<vmem>>, vector<1x32xf32>
    %77 = vector.broadcast %76 : vector<1x32xf32> to vector<32x32xf32>
    %78 = arith.addf %75, %77 : vector<32x32xf32>
    %79 = arith.addf %0, %78 : vector<32x32xf32>
    %c0_36 = arith.constant 0 : index
    %c0_37 = arith.constant 0 : index
    %80 = vector.load %arg11[%c0_36, %c0_37] : memref<1x32xf32, #tpu.memory_space<vmem>>, vector<1x32xf32>
    %c0_38 = arith.constant 0 : index
    %c0_39 = arith.constant 0 : index
    %81 = vector.load %arg12[%c0_38, %c0_39] : memref<1x32xf32, #tpu.memory_space<vmem>>, vector<1x32xf32>
    %cst_40 = arith.constant 3.125000e-02 : f32
    %82 = vector.broadcast %cst_40 : f32 to vector<32x32xf32>
    %cst_41 = arith.constant dense<0.000000e+00> : vector<32x32xf32>
    %83 = tpu.matmul %79, %82, %cst_41 {dimension_numbers = #tpu.dot_dimension_numbers<[1], [0], [0], [1], [0, 0, 1, 1], [], []>} : vector<32x32xf32>, vector<32x32xf32>, vector<32x32xf32> -> vector<32x32xf32>
    %84 = arith.subf %79, %83 : vector<32x32xf32>
    %85 = arith.mulf %84, %84 : vector<32x32xf32>
    %cst_42 = arith.constant dense<0.000000e+00> : vector<32x32xf32>
    %86 = tpu.matmul %85, %82, %cst_42 {dimension_numbers = #tpu.dot_dimension_numbers<[1], [0], [0], [1], [0, 0, 1, 1], [], []>} : vector<32x32xf32>, vector<32x32xf32>, vector<32x32xf32> -> vector<32x32xf32>
    %cst_43 = arith.constant 9.99999974E-6 : f32
    %87 = vector.broadcast %cst_43 : f32 to vector<32x32xf32>
    %88 = arith.addf %86, %87 : vector<32x32xf32>
    %89 = math.rsqrt %88 : vector<32x32xf32>
    %90 = arith.mulf %84, %89 : vector<32x32xf32>
    %91 = vector.broadcast %80 : vector<1x32xf32> to vector<32x32xf32>
    %92 = arith.mulf %90, %91 : vector<32x32xf32>
    %93 = vector.broadcast %81 : vector<1x32xf32> to vector<32x32xf32>
    %94 = arith.addf %92, %93 : vector<32x32xf32>
    %95 = arith.truncf %94 : vector<32x32xf32> to vector<32x32xbf16>
    %c0_44 = arith.constant 0 : index
    %c0_45 = arith.constant 0 : index
    %96 = vector.load %arg13[%c0_44, %c0_45] : memref<32x128xbf16, #tpu.memory_space<vmem>>, vector<32x128xbf16>
    %cst_46 = arith.constant dense<0.000000e+00> : vector<32x128xf32>
    %97 = tpu.matmul %95, %96, %cst_46 {dimension_numbers = #tpu.dot_dimension_numbers<[1], [0], [0], [1], [0, 0, 1, 1], [], []>} : vector<32x32xbf16>, vector<32x128xbf16>, vector<32x128xf32> -> vector<32x128xf32>
    %c0_47 = arith.constant 0 : index
    %c0_48 = arith.constant 0 : index
    %98 = vector.load %arg14[%c0_47, %c0_48] : memref<1x128xf32, #tpu.memory_space<vmem>>, vector<1x128xf32>
    %99 = vector.broadcast %98 : vector<1x128xf32> to vector<32x128xf32>
    %100 = arith.addf %97, %99 : vector<32x128xf32>
    %cst_49 = arith.constant 5.000000e-01 : f32
    %101 = vector.broadcast %cst_49 : f32 to vector<32x128xf32>
    %102 = arith.mulf %101, %100 : vector<32x128xf32>
    %cst_50 = arith.constant 0.707106769 : f32
    %103 = vector.broadcast %cst_50 : f32 to vector<32x128xf32>
    %104 = arith.mulf %100, %103 : vector<32x128xf32>
    %cst_51 = arith.constant 0.000000e+00 : f32
    %105 = vector.broadcast %cst_51 : f32 to vector<32x128xf32>
    %106 = arith.cmpf oge, %104, %105 : vector<32x128xf32>
    %cst_52 = arith.constant 1.000000e+00 : f32
    %cst_53 = arith.constant -1.000000e+00 : f32
    %107 = vector.broadcast %cst_52 : f32 to vector<32x128xf32>
    %108 = vector.broadcast %cst_53 : f32 to vector<32x128xf32>
    %109 = arith.select %106, %107, %108 : vector<32x128xi1>, vector<32x128xf32>
    %110 = math.absf %104 : vector<32x128xf32>
    %cst_54 = arith.constant 0.327591091 : f32
    %111 = vector.broadcast %cst_54 : f32 to vector<32x128xf32>
    %112 = arith.mulf %111, %110 : vector<32x128xf32>
    %cst_55 = arith.constant 1.000000e+00 : f32
    %113 = vector.broadcast %cst_55 : f32 to vector<32x128xf32>
    %114 = arith.addf %113, %112 : vector<32x128xf32>
    %cst_56 = arith.constant 1.000000e+00 : f32
    %115 = vector.broadcast %cst_56 : f32 to vector<32x128xf32>
    %116 = arith.divf %115, %114 : vector<32x128xf32>
    %cst_57 = arith.constant 1.06140542 : f32
    %117 = vector.broadcast %cst_57 : f32 to vector<32x128xf32>
    %118 = arith.mulf %117, %116 : vector<32x128xf32>
    %cst_58 = arith.constant -1.45315206 : f32
    %119 = vector.broadcast %cst_58 : f32 to vector<32x128xf32>
    %120 = arith.addf %118, %119 : vector<32x128xf32>
    %121 = arith.mulf %120, %116 : vector<32x128xf32>
    %cst_59 = arith.constant 1.42141378 : f32
    %122 = vector.broadcast %cst_59 : f32 to vector<32x128xf32>
    %123 = arith.addf %121, %122 : vector<32x128xf32>
    %124 = arith.mulf %123, %116 : vector<32x128xf32>
    %cst_60 = arith.constant -0.284496725 : f32
    %125 = vector.broadcast %cst_60 : f32 to vector<32x128xf32>
    %126 = arith.addf %124, %125 : vector<32x128xf32>
    %127 = arith.mulf %126, %116 : vector<32x128xf32>
    %cst_61 = arith.constant 0.254829586 : f32
    %128 = vector.broadcast %cst_61 : f32 to vector<32x128xf32>
    %129 = arith.addf %127, %128 : vector<32x128xf32>
    %130 = arith.mulf %129, %116 : vector<32x128xf32>
    %cst_62 = arith.constant 0.000000e+00 : f32
    %131 = vector.broadcast %cst_62 : f32 to vector<32x128xf32>
    %132 = arith.subf %131, %110 : vector<32x128xf32>
    %133 = arith.mulf %132, %110 : vector<32x128xf32>
    %134 = math.exp %133 : vector<32x128xf32>
    %135 = arith.mulf %130, %134 : vector<32x128xf32>
    %cst_63 = arith.constant 1.000000e+00 : f32
    %136 = vector.broadcast %cst_63 : f32 to vector<32x128xf32>
    %137 = arith.subf %136, %135 : vector<32x128xf32>
    %138 = arith.mulf %109, %137 : vector<32x128xf32>
    %cst_64 = arith.constant 1.000000e+00 : f32
    %139 = vector.broadcast %cst_64 : f32 to vector<32x128xf32>
    %140 = arith.addf %139, %138 : vector<32x128xf32>
    %141 = arith.mulf %102, %140 : vector<32x128xf32>
    %142 = arith.truncf %141 : vector<32x128xf32> to vector<32x128xbf16>
    %c0_65 = arith.constant 0 : index
    %c0_66 = arith.constant 0 : index
    %143 = vector.load %arg15[%c0_65, %c0_66] : memref<128x32xbf16, #tpu.memory_space<vmem>>, vector<128x32xbf16>
    %cst_67 = arith.constant dense<0.000000e+00> : vector<32x32xf32>
    %144 = tpu.matmul %142, %143, %cst_67 {dimension_numbers = #tpu.dot_dimension_numbers<[1], [0], [0], [1], [0, 0, 1, 1], [], []>} : vector<32x128xbf16>, vector<128x32xbf16>, vector<32x32xf32> -> vector<32x32xf32>
    %c0_68 = arith.constant 0 : index
    %c0_69 = arith.constant 0 : index
    %145 = vector.load %arg16[%c0_68, %c0_69] : memref<1x32xf32, #tpu.memory_space<vmem>>, vector<1x32xf32>
    %146 = vector.broadcast %145 : vector<1x32xf32> to vector<32x32xf32>
    %147 = arith.addf %144, %146 : vector<32x32xf32>
    %148 = arith.addf %94, %147 : vector<32x32xf32>
    %c0_70 = arith.constant 0 : index
    %c0_71 = arith.constant 0 : index
    %149 = vector.load %arg17[%c0_70, %c0_71] : memref<1x32xf32, #tpu.memory_space<vmem>>, vector<1x32xf32>
    %c0_72 = arith.constant 0 : index
    %c0_73 = arith.constant 0 : index
    %150 = vector.load %arg18[%c0_72, %c0_73] : memref<1x32xf32, #tpu.memory_space<vmem>>, vector<1x32xf32>
    %cst_74 = arith.constant 3.125000e-02 : f32
    %151 = vector.broadcast %cst_74 : f32 to vector<32x32xf32>
    %cst_75 = arith.constant dense<0.000000e+00> : vector<32x32xf32>
    %152 = tpu.matmul %148, %151, %cst_75 {dimension_numbers = #tpu.dot_dimension_numbers<[1], [0], [0], [1], [0, 0, 1, 1], [], []>} : vector<32x32xf32>, vector<32x32xf32>, vector<32x32xf32> -> vector<32x32xf32>
    %153 = arith.subf %148, %152 : vector<32x32xf32>
    %154 = arith.mulf %153, %153 : vector<32x32xf32>
    %cst_76 = arith.constant dense<0.000000e+00> : vector<32x32xf32>
    %155 = tpu.matmul %154, %151, %cst_76 {dimension_numbers = #tpu.dot_dimension_numbers<[1], [0], [0], [1], [0, 0, 1, 1], [], []>} : vector<32x32xf32>, vector<32x32xf32>, vector<32x32xf32> -> vector<32x32xf32>
    %cst_77 = arith.constant 9.99999974E-6 : f32
    %156 = vector.broadcast %cst_77 : f32 to vector<32x32xf32>
    %157 = arith.addf %155, %156 : vector<32x32xf32>
    %158 = math.rsqrt %157 : vector<32x32xf32>
    %159 = arith.mulf %153, %158 : vector<32x32xf32>
    %160 = vector.broadcast %149 : vector<1x32xf32> to vector<32x32xf32>
    %161 = arith.mulf %159, %160 : vector<32x32xf32>
    %162 = vector.broadcast %150 : vector<1x32xf32> to vector<32x32xf32>
    %163 = arith.addf %161, %162 : vector<32x32xf32>
    %c0_78 = arith.constant 0 : index
    %c0_79 = arith.constant 0 : index
    %164 = vector.load %arg19[%c0_78, %c0_79] : memref<32x32xf32, #tpu.memory_space<vmem>>, vector<32x32xf32>
    tpu.vector_store %arg19[%c0_78, %c0_79], %163 {strides = array<i32>} : memref<32x32xf32, #tpu.memory_space<vmem>>, vector<32x32xf32>,
    return
  }
  func.func @transform_0(%arg0: i32) -> (i32, i32) {
    %c0_i32 = arith.constant 0 : i32
    %c0_i32_0 = arith.constant 0 : i32
    return %arg0, %c0_i32 : i32, i32
  }
  func.func @transform_1(%arg0: i32) -> (i32, i32) {
    %c0_i32 = arith.constant 0 : i32
    %c0_i32_0 = arith.constant 0 : i32
    return %arg0, %c0_i32 : i32, i32
  }
  func.func @transform_2(%arg0: i32) -> (i32, i32) {
    %c0_i32 = arith.constant 0 : i32
    %c0_i32_0 = arith.constant 0 : i32
    %c0_i32_1 = arith.constant 0 : i32
    return %c0_i32, %c0_i32_0 : i32, i32
  }
  func.func @transform_3(%arg0: i32) -> (i32, i32) {
    %c0_i32 = arith.constant 0 : i32
    %c0_i32_0 = arith.constant 0 : i32
    %c0_i32_1 = arith.constant 0 : i32
    return %c0_i32, %c0_i32_0 : i32, i32
  }
  func.func @transform_4(%arg0: i32) -> (i32, i32) {
    %c0_i32 = arith.constant 0 : i32
    %c0_i32_0 = arith.constant 0 : i32
    %c0_i32_1 = arith.constant 0 : i32
    return %c0_i32, %c0_i32_0 : i32, i32
  }
  func.func @transform_5(%arg0: i32) -> (i32, i32) {
    %c0_i32 = arith.constant 0 : i32
    %c0_i32_0 = arith.constant 0 : i32
    %c0_i32_1 = arith.constant 0 : i32
    return %c0_i32, %c0_i32_0 : i32, i32
  }
  func.func @transform_6(%arg0: i32) -> (i32, i32) {
    %c0_i32 = arith.constant 0 : i32
    %c0_i32_0 = arith.constant 0 : i32
    %c0_i32_1 = arith.constant 0 : i32
    return %c0_i32, %c0_i32_0 : i32, i32
  }
  func.func @transform_7(%arg0: i32) -> (i32, i32) {
    %c0_i32 = arith.constant 0 : i32
    %c0_i32_0 = arith.constant 0 : i32
    %c0_i32_1 = arith.constant 0 : i32
    return %c0_i32, %c0_i32_0 : i32, i32
  }
  func.func @transform_8(%arg0: i32) -> (i32, i32) {
    %c0_i32 = arith.constant 0 : i32
    %c0_i32_0 = arith.constant 0 : i32
    %c0_i32_1 = arith.constant 0 : i32
    return %c0_i32, %c0_i32_0 : i32, i32
  }
  func.func @transform_9(%arg0: i32) -> (i32, i32) {
    %c0_i32 = arith.constant 0 : i32
    %c0_i32_0 = arith.constant 0 : i32
    %c0_i32_1 = arith.constant 0 : i32
    return %c0_i32, %c0_i32_0 : i32, i32
  }
  func.func @transform_10(%arg0: i32) -> (i32, i32) {
    %c0_i32 = arith.constant 0 : i32
    %c0_i32_0 = arith.constant 0 : i32
    %c0_i32_1 = arith.constant 0 : i32
    return %c0_i32, %c0_i32_0 : i32, i32
  }
  func.func @transform_11(%arg0: i32) -> (i32, i32) {
    %c0_i32 = arith.constant 0 : i32
    %c0_i32_0 = arith.constant 0 : i32
    %c0_i32_1 = arith.constant 0 : i32
    return %c0_i32, %c0_i32_0 : i32, i32
  }
  func.func @transform_12(%arg0: i32) -> (i32, i32) {
    %c0_i32 = arith.constant 0 : i32
    %c0_i32_0 = arith.constant 0 : i32
    %c0_i32_1 = arith.constant 0 : i32
    return %c0_i32, %c0_i32_0 : i32, i32
  }
  func.func @transform_13(%arg0: i32) -> (i32, i32) {
    %c0_i32 = arith.constant 0 : i32
    %c0_i32_0 = arith.constant 0 : i32
    %c0_i32_1 = arith.constant 0 : i32
    return %c0_i32, %c0_i32_0 : i32, i32
  }
  func.func @transform_14(%arg0: i32) -> (i32, i32) {
    %c0_i32 = arith.constant 0 : i32
    %c0_i32_0 = arith.constant 0 : i32
    %c0_i32_1 = arith.constant 0 : i32
    return %c0_i32, %c0_i32_0 : i32, i32
  }
  func.func @transform_15(%arg0: i32) -> (i32, i32) {
    %c0_i32 = arith.constant 0 : i32
    %c0_i32_0 = arith.constant 0 : i32
    %c0_i32_1 = arith.constant 0 : i32
    return %c0_i32, %c0_i32_0 : i32, i32
  }
  func.func @transform_16(%arg0: i32) -> (i32, i32) {
    %c0_i32 = arith.constant 0 : i32
    %c0_i32_0 = arith.constant 0 : i32
    %c0_i32_1 = arith.constant 0 : i32
    return %c0_i32, %c0_i32_0 : i32, i32
  }
  func.func @transform_17(%arg0: i32) -> (i32, i32) {
    %c0_i32 = arith.constant 0 : i32
    %c0_i32_0 = arith.constant 0 : i32
    %c0_i32_1 = arith.constant 0 : i32
    return %c0_i32, %c0_i32_0 : i32, i32
  }
  func.func @transform_18(%arg0: i32) -> (i32, i32) {
    %c0_i32 = arith.constant 0 : i32
    %c0_i32_0 = arith.constant 0 : i32
    return %arg0, %c0_i32 : i32, i32
  }
}

</mosaic_0001>

<bundles_post_ra>
// kernel: tpu_custom_call.1
= control target key start
LH: loop header
LB: loop body
LE: loop exit
PB: predicated region body
PF: predicated region fallthrough
CT: control target
= control target key end

     0   :  { %s5256_s27 = smov 0   ;;  %s6584_s0 = inlined_call_operand.vmem [shape: f32[64,32], index: 0, kind: input, shape index: {}]   ;;  %s6585_s1 = inlined_call_operand.vmem [shape: bf16[512,32], index: 1, kind: input, shape index: {}]   ;;  %s6586_s2 = inlined_call_operand.vmem [shape: bf16[32,32], index: 2, kind: input, shape index: {}]   ;;  %s6587_s3 = inlined_call_operand.vmem [shape: f32[1,32], index: 3, kind: input, shape index: {}]   ;;  %s6588_s4 = inlined_call_operand.vmem [shape: bf16[32,32], index: 4, kind: input, shape index: {}]   ;;  %s6589_s5 = inlined_call_operand.vmem [shape: f32[1,32], index: 5, kind: input, shape index: {}]   ;;  %s6590_s6 = inlined_call_operand.vmem [shape: bf16[32,32], index: 6, kind: input, shape index: {}]   ;;  %s6591_s7 = inlined_call_operand.vmem [shape: f32[1,32], index: 7, kind: input, shape index: {}]   ;;  %s6592_s8 = inlined_call_operand.vmem [shape: bf16[32,32], index: 8, kind: input, shape index: {}]   ;;  %s6593_s9 = inlined_call_operand.vmem [shape: f32[1,32], index: 9, kind: input, shape index: {}]   ;;  %s6594_s10 = inlined_call_operand.vmem [shape: f32[1,32], index: 10, kind: input, shape index: {}]   ;;  %s6595_s11 = inlined_call_operand.vmem [shape: f32[1,32], index: 11, kind: input, shape index: {}]   ;;  %s6596_s12 = inlined_call_operand.vmem [shape: bf16[32,128], index: 12, kind: input, shape index: {}]   ;;  %s6597_s13 = inlined_call_operand.vmem [shape: f32[1,128], index: 13, kind: input, shape index: {}]   ;;  %s6598_s14 = inlined_call_operand.vmem [shape: bf16[128,32], index: 14, kind: input, shape index: {}]   ;;  %s6599_s15 = inlined_call_operand.vmem [shape: f32[1,32], index: 15, kind: input, shape index: {}]   ;;  %s6600_s16 = inlined_call_operand.vmem [shape: f32[1,32], index: 16, kind: input, shape index: {}]   ;;  %s6601_s17 = inlined_call_operand.vmem [shape: f32[1,32], index: 17, kind: input, shape index: {}]   ;;  %s6602_s18 = inlined_call_operand.vmem [shape: f32[64,32], index: 18, kind: output, shape index: {}]  }
   0x1   :  { %6623 = sst [smem:[#allocation53_spill]] %s6584_s0 }
   0x2   :  { %6624 = sst [smem:[#allocation54_spill]] %s6585_s1 }
   0x3   :  { %6625 = sst [smem:[#allocation55_spill]] %s6586_s2 }
   0x4 LB: > { %s4312_s28 = sadd.s32 4294967295, %s5154_s27   ;;  %p4316_p0 = scmp.ge.s32.totalorder %s5154_s27, 1  ;;  %s5154_s27 = sphi %s5256_s27, %s28_s27  }
   0x5   : > { %p524_p1 = scmp.lt.s32.totalorder %s5154_s27, 3 }
   0x7   : > { %p525_p2 = pnand %p4316_p0, %p524_p1 }
   0x9   : > { %528 = sbr.rel (%p525_p2) target bundleno = 2361 (0x939), region = 92 }
   0xe   : > { %s6626_s0 = sld [smem:[#allocation55_spill]]  ;;  %s4317_s19 = sshll.u32 %s4312_s28, 2  ;;  %v4951_v1 = vld [vmem:[%s6588_s4 + $0x8] sm:$0xff]   ;;  %v4953_v3 = vld [vmem:[%s6588_s4] sm:$0xff]   ;;  %vm663_vm0 = vcmask 261120   ;;  %v1215_v10 = vlaneseq  ;;  %v5156_v28 = vmov 1.0  }
   0xf   : > { %p584_p3 = scmp.lt.s32.totalorder %s4317_s19, 7  ;;  %4659 = vmatprep.subr.bf16.mxu1 %v4951_v1  ;;  %s4319_s24 = sshll.u32 %s4312_s28, 5  ;;  %v4970_v4 = vld [vmem:[%s6590_s6 + $0x8] sm:$0xff]   ;;  %v4971_v12 = vld [vmem:[%s6590_s6] sm:$0xff]   ;;  %v5157_v39 = vmov 1966171168  }
  0x10   : > { %4660 = vmatpush3.bf16.msra.mxu1 %v4951_v1  ;;  %p590_p4 = scmp.lt.s32.totalorder %s4319_s24, 63  ;;  %s6627_s20 = sld [smem:[#allocation53_spill]]  ;;  %v5305_v15 = vand.u32 127, %v1215_v10  ;;  %v5313_v18 = vshrl.u32 %v1215_v10, 7  ;;  %v1254_v40 = vunpack.c.l.s4 %v5157_v39  ;;  %v5379_v43 = vld [vmem:[%s6587_s3] ss:$0 sm:$0xff] }
  0x11   : > { %s6734_s19 = smov (!%p584_p3, %s4317_s19), 7  ;;  %4661 = vmatprep.subr.bf16.mxu1 %v4953_v3  ;;  %s6628_s26 = sld [smem:[#allocation54_spill]]  ;;  %v5390_v51 = vld [vmem:[%s6589_s5] ss:$0 sm:$0xff] }
  0x12   : > { %s4318_s29 = sshll.u32 %s6734_s19, 3  ;;  %s6736_s24 = smov (!%p590_p4, %s4319_s24), 63  ;;  %v1227_v17 = vadd.s32 1, %v5305_v15  ;;  %v1219_v21 = vadd.s32 24, %v5313_v18  ;;  %v1222_v22 = vmul.u32 8, %v5305_v15  ;;  %v1218_v24 = vadd.s32 16, %v5313_v18 }
  0x13   : > { %s4320_s28 = sshll.u32 %s6736_s24, 2  ;;  %v1217_v25 = vadd.s32 8, %v5313_v18  ;;  %v1255_v41 = vunpack.c.0.s8 %v1254_v40  ;;  %v5394_v55 = vsub.s32 0, %v5313_v18 }
  0x14   : > { %v4950_v0 = vld [vmem:[%s6626_s0 + $0x8] sm:$0xff]   ;;  %v4952_v2 = vld [vmem:[%s6626_s0] sm:$0xff]   ;;  %4662 = vmatpush3.bf16.msra.mxu1 %v4953_v3  ;;  %v1228_v23 = vmul.u32 8, %v1227_v17  ;;  %vm1226_vm1 = vcmp.ge.s32.totalorder %v1219_v21, %v1222_v22  ;;  %vm1225_vm3 = vcmp.ge.s32.totalorder %v1218_v24, %v1222_v22  ;;  %vm1223_vm8 = vcmp.ge.s32.totalorder %v5313_v18, %v1222_v22 }
  0x15   : > { %4651 = vmatprep.subr.bf16.mxu0 %v4950_v0  ;;  %vm1224_vm5 = vcmp.ge.s32.totalorder %v1217_v25, %v1222_v22  ;;  %v5383_v47 = vsub.s32 %v1255_v41, %v5313_v18 }
  0x16   : > { %4652 = vmatpush3.bf16.msra.mxu0 %v4950_v0  ;;  %s5287_s21 = scalar_lea.vmem %s6627_s20, %s4318_s29  ;;  %vm1232_vm2 = vcmp.lt.s32.totalorder %v1219_v21, %v1228_v23  ;;  %vm1231_vm4 = vcmp.lt.s32.totalorder %v1218_v24, %v1228_v23  ;;  %vm1230_vm6 = vcmp.lt.s32.totalorder %v1217_v25, %v1228_v23  ;;  %vm1229_vm9 = vcmp.lt.s32.totalorder %v5313_v18, %v1228_v23  ;;  %s599_s20 = scalar_lea.vmem %s6602_s18, %s4318_s29 }
  0x17   : > { %4653 = vmatprep.subr.bf16.mxu0 %v4952_v2  ;;  %v602_v5 = vld [vmem:[%s5287_s21] sm:$0xff]  ;;  %v603_v6 = vld [vmem:[%s5287_s21 + $0x8] sm:$0xff]  ;;  %v604_v7 = vld [vmem:[%s5287_s21 + $0x10] sm:$0xff]  ;;  %s5300_s30 = scalar_lea.vmem %s6628_s26, %s4320_s28 }
  0x18   : > { %v638_v8 = vpack.c.bf16 %v603_v6, %v602_v5  ;;  %v605_v9 = vld [vmem:[%s5287_s21 + $0x18] sm:$0xff]  ;;  %v4954_v13 = vld [vmem:[%s5300_s30] sm:$0xff]   ;;  %v4955_v14 = vld [vmem:[%s5300_s30 + $0x8] sm:$0xff]  }
  0x19   : > { %v639_v11 = vpack.c.bf16 %v605_v9, %v604_v7  ;;  %4663 = vmatprep.mubr.msk.bf16.mxu1 %vm663_vm0, %v4954_v13  ;;  %v4956_v16 = vld [vmem:[%s5300_s30 + $0x10] sm:$0xff]   ;;  %v4957_v19 = vld [vmem:[%s5300_s30 + $0x18] sm:$0xff]   ;;  %v4958_v20 = vld [vmem:[%s5300_s30 + $0x20] sm:$0xff]  }
  0x1a   : > { %4654 = vmatpush3.bf16.msra.mxu0 %v4952_v2  ;;  %4655 = vmatprep.mubr.msk.bf16.mxu0 %vm663_vm0, %v638_v8  ;;  %v4959_v26 = vld [vmem:[%s5300_s30 + $0x28] sm:$0xff]   ;;  %v4960_v27 = vld [vmem:[%s5300_s30 + $0x30] sm:$0xff]   ;;  %vm1236_vm7 = vmand %vm1226_vm1, %vm1232_vm2  ;;  %vm2762_vm1 = vcmask 1043456   ;;  %vm1961_vm2 = vcmask 31744  }
  0x1b   : > { %4695 = vmatprep.subr.bf16.mxu0 %v4970_v4  ;;  %4664 = vmatmul.mubr.msk.bf16.vlgmr.msra.gmra.mxu1 %vm663_vm0, %v4955_v14  ;;  %vm1235_vm10 = vmand %vm1225_vm3, %vm1231_vm4  ;;  %v4961_v30 = vld [vmem:[%s5300_s30 + $0x38] sm:$0xff]   ;;  %v4962_v31 = vld [vmem:[%s5300_s30 + $0x40] sm:$0xff]   ;;  %vm3354_vm3 = vcmask 1041409   ;;  %vm3356_vm4 = vcmask 1042434  }
  0x1c   : > { %4667 = vmatprep.mubr.msk.bf16.mxu1 %vm663_vm0, %v4956_v16  ;;  %4929 = vmatprep.subr.msk.mxu1 %vm1236_vm7, %v5156_v28  ;;  %vm1234_vm11 = vmand %vm1224_vm5, %vm1230_vm6  ;;  %v4963_v32 = vld [vmem:[%s5300_s30 + $0x48] sm:$0xff]   ;;  %v4964_v33 = vld [vmem:[%s5300_s30 + $0x50] sm:$0xff]   ;;  %vm3358_vm5 = vcmask 1043459   ;;  %vm3360_vm6 = vcmask 1044484  }
  0x1d   : > { %4656 = vmatmul.mubr.msk.bf16.vlgmr.msra.gmra.mxu0 %vm663_vm0, %v639_v11  ;;  %4933 = vmatpush3.msk.msra.mxu1 %vm1236_vm7, %v5156_v28  ;;  %vm5332_vm12 = vmand %vm1223_vm8, %vm1229_vm9  ;;  %v4965_v34 = vld [vmem:[%s5300_s30 + $0x58] sm:$0xff]   ;;  %v4966_v35 = vld [vmem:[%s5300_s30 + $0x60] sm:$0xff]   ;;  %vm3364_vm8 = vcmask 1046534   ;;  %vm3366_vm9 = vcmask 1047559  }
  0x1e   : > { %4696 = vmatpush3.bf16.msra.mxu0 %v4970_v4  ;;  %4699 = vmatprep.mubr.msk.bf16.mxu0 %vm663_vm0, %v4954_v13  ;;  %v4967_v36 = vld [vmem:[%s5300_s30 + $0x68] sm:$0xff]   ;;  %v4968_v37 = vld [vmem:[%s5300_s30 + $0x70] sm:$0xff]   ;;  %v4969_v38 = vld [vmem:[%s5300_s30 + $0x78] sm:$0xff]  }
  0x1f   : > { %4697 = vmatprep.subr.bf16.mxu0 %v4971_v12  ;;  %4930 = vmatprep.subr.msk.mxu1 %vm1235_vm10, %v5156_v28 }
  0x20   : > { %4934 = vmatpush3.msk.msra.mxu1 %vm1235_vm10, %v5156_v28 }
  0x21   : > { %4931 = vmatprep.subr.msk.mxu1 %vm1234_vm11, %v5156_v28 }
  0x22   : > { %4698 = vmatpush3.bf16.msra.mxu0 %v4971_v12  ;;  %4935 = vmatpush3.msk.msra.mxu1 %vm1234_vm11, %v5156_v28 }
  0x23   : > { %4668 = vmatmul.mubr.msk.bf16.gmra.mxu1 %vm663_vm0, %v4957_v19  ;;  %4731 = vmatprep.subr.msk.mxu0 %vm1236_vm7, %v5156_v28 }
  0x24   : > { %4671 = vmatprep.mubr.msk.bf16.mxu1 %vm663_vm0, %v4958_v20  ;;  %4932 = vmatprep.subr.msk.mxu1 %vm5332_vm12, %v5156_v28 }
  0x25   : > { %4700 = vmatmul.mubr.msk.bf16.vlgmr.msra.gmra.mxu0 %vm663_vm0, %v4955_v14  ;;  %4936 = vmatpush3.msk.msra.mxu1 %vm5332_vm12, %v5156_v28 }
  0x26   : > { %4703 = vmatprep.mubr.msk.bf16.mxu0 %vm663_vm0, %v4956_v16  ;;  %4732 = vmatpush3.msk.msra.mxu0 %vm1236_vm7, %v5156_v28  ;;  %vm3362_vm7 = vcmask 1045509  }
  0x27   : > { %4733 = vmatprep.subr.msk.mxu0 %vm1235_vm10, %v5156_v28 }
  0x28   : > { %4734 = vmatpush3.msk.msra.mxu0 %vm1235_vm10, %v5156_v28 }
  0x29   : > { %4735 = vmatprep.subr.msk.mxu0 %vm1234_vm11, %v5156_v28 }
  0x2a   : > { %4736 = vmatpush3.msk.msra.mxu0 %vm1234_vm11, %v5156_v28 }
  0x2b   : > { %4672 = vmatmul.mubr.msk.bf16.gmra.mxu1 %vm663_vm0, %v4959_v26  ;;  %4737 = vmatprep.subr.msk.mxu0 %vm5332_vm12, %v5156_v28 }
  0x2c   : > { %4675 = vmatprep.mubr.msk.bf16.mxu1 %vm663_vm0, %v4960_v27  ;;  %4738 = vmatpush3.msk.msra.mxu0 %vm5332_vm12, %v5156_v28 }
  0x2d   : > { %4704 = vmatmul.mubr.msk.bf16.gmra.mxu0 %vm663_vm0, %v4957_v19 }
  0x2e   : > { %4707 = vmatprep.mubr.msk.bf16.mxu0 %vm663_vm0, %v4958_v20 }
  0x33   : > { %4676 = vmatmul.mubr.msk.bf16.gmra.mxu1 %vm663_vm0, %v4961_v30 }
  0x34   : > { %4679 = vmatprep.mubr.msk.bf16.mxu1 %vm663_vm0, %v4962_v31 }
  0x35   : > { %4708 = vmatmul.mubr.msk.bf16.gmra.mxu0 %vm663_vm0, %v4959_v26 }
  0x36   : > { %4711 = vmatprep.mubr.msk.bf16.mxu0 %vm663_vm0, %v4960_v27 }
  0x3b   : > { %4680 = vmatmul.mubr.msk.bf16.gmra.mxu1 %vm663_vm0, %v4963_v32 }
  0x3c   : > { %4683 = vmatprep.mubr.msk.bf16.mxu1 %vm663_vm0, %v4964_v33 }
  0x3d   : > { %4712 = vmatmul.mubr.msk.bf16.gmra.mxu0 %vm663_vm0, %v4961_v30 }
  0x3e   : > { %4715 = vmatprep.mubr.msk.bf16.mxu0 %vm663_vm0, %v4962_v31 }
  0x43   : > { %4684 = vmatmul.mubr.msk.bf16.gmra.mxu1 %vm663_vm0, %v4965_v34 }
  0x44   : > { %4687 = vmatprep.mubr.msk.bf16.mxu1 %vm663_vm0, %v4966_v35 }
  0x45   : > { %4716 = vmatmul.mubr.msk.bf16.gmra.mxu0 %vm663_vm0, %v4963_v32 }
  0x46   : > { %4719 = vmatprep.mubr.msk.bf16.mxu0 %vm663_vm0, %v4964_v33 }
  0x4b   : > { %4688 = vmatmul.mubr.msk.bf16.gmra.mxu1 %vm663_vm0, %v4967_v36 }
  0x4c   : > { %4691 = vmatprep.mubr.msk.bf16.mxu1 %vm663_vm0, %v4968_v37 }
  0x4d   : > { %4720 = vmatmul.mubr.msk.bf16.gmra.mxu0 %vm663_vm0, %v4965_v34 }
  0x4e   : > { %4723 = vmatprep.mubr.msk.bf16.mxu0 %vm663_vm0, %v4966_v35 }
  0x53   : > { %4692 = vmatmul.mubr.msk.bf16.gmra.mxu1 %vm663_vm0, %v4969_v38 }
  0x55   : > { %4724 = vmatmul.mubr.msk.bf16.gmra.mxu0 %vm663_vm0, %v4967_v36 }
  0x56   : > { %4727 = vmatprep.mubr.msk.bf16.mxu0 %vm663_vm0, %v4968_v37 }
  0x5d   : > { %4728 = vmatmul.mubr.msk.bf16.gmra.mxu0 %vm663_vm0, %v4969_v38 }
  0xdb   : > { %v4665_v45 = vpop.f32.mrf.mxu1 }
  0xdc   : > { %v913_v11 = vadd.f32 %v4665_v45, %v5390_v51 }
  0xdd   : > { %v5374_v42 = vpop.f32.mrf.mxu0  ;;  %v904_v50 = vpop.f32.mrf.mxu1 }
  0xde   : > { %v905_v59 = vadd.f32 %v5390_v51, %v904_v50 }
  0xdf   : > { %v704_v44 = vpop.f32.mrf.mxu0  ;;  %v4666_v53 = vpop.f32.mrf.mxu1 }
  0xe0   : > { %v705_v46 = vadd.f32 %v5379_v43, %v704_v44  ;;  %v916_v12 = vadd.f32 %v4666_v53, %v5390_v51 }
  0xe1   : > { %v5385_v48 = vpop.f32.mrf.mxu0  ;;  %v907_v60 = vpop.f32.mrf.mxu1 }
  0xe2   : > { %v1252_v49 = vcombine.high %v705_v46, %v705_v46  ;;  %v1259_v52 = vrot.slane %v705_v46, %v5383_v47  ;;  %v908_v9 = vadd.f32 %v5390_v51, %v907_v60 }
  0xe3   : > { %v707_v54 = vpop.f32.mrf.mxu0  ;;  %v4669_v1 = vpop.f32.mrf.mxu1 }
  0xe4   : > { %v1266_v56 = vrot.slane %v1252_v49, %v5383_v47  ;;  %v1267_v57 = vcombine.high %v1259_v52, %v1259_v52  ;;  %v1275_v58 = vrot.slane %v1259_v52, %v5383_v47  ;;  %v708_v0 = vadd.f32 %v5379_v43, %v707_v54 }
  0xe5   : > { %v920_v7 = vpop.f32.mrf.mxu1  ;;  %v929_v26 = vadd.f32 %v4669_v1, %v5390_v51 }
  0xe6   : > { %v1289_v61 = vrot.slane %v1267_v57, %v5383_v47  ;;  %v1297_v62 = vcombine.high %v1275_v58, %v1275_v58  ;;  %v1451_v63 = vrot.slane %v1275_v58, %v5394_v55  ;;  %v1282_v2 = vrot.slane %v1266_v56, %v5383_v47 }
  0xe7   : > { %v1268_v4 = vcombine.high %v1266_v56, %v1266_v56  ;;  %v1308_v8 = vrot.slane %v708_v0, %v5383_v47  ;;  %v4670_v14 = vpop.f32.mrf.mxu1  ;;  %v921_v19 = vadd.f32 %v5390_v51, %v920_v7  ;;  %v1301_v33 = vcombine.high %v708_v0, %v708_v0 }
  0xe8   : > { %v1608_v3 = vmul.f32 %v1451_v63, %v905_v59  ;;  %v1459_v5 = vrot.slane %v1297_v62, %v5394_v55  ;;  %v1299_v6 = vcombine.high %v1289_v61, %v1289_v61  ;;  %v1455_v10 = vrot.slane %v1289_v61, %v5394_v55 }
  0xe9   : > { %v1298_v17 = vcombine.high %v1282_v2, %v1282_v2  ;;  %v1467_v20 = vrot.slane %v1282_v2, %v5394_v55  ;;  %v1296_v22 = vrot.slane %v1268_v4, %v5383_v47  ;;  %v923_v23 = vpop.f32.mrf.mxu1  ;;  %v1324_v25 = vrot.slane %v1308_v8, %v5383_v47 }
  0xea   : > { %4739 = vmatprep.mubr.msk.f32.mxu0 %vm663_vm0, %v1608_v3  ;;  %v1463_v13 = vrot.slane %v1299_v6, %v5394_v55  ;;  %v1609_v16 = vmul.f32 %v1455_v10, %v908_v9  ;;  %v1610_v24 = vmul.f32 %v1459_v5, %v913_v11  ;;  %v924_v27 = vadd.f32 %v5390_v51, %v923_v23 }
  0xeb   : > { %v1475_v28 = vrot.slane %v1298_v17, %v5394_v55  ;;  %v1612_v29 = vmul.f32 %v1467_v20, %v921_v19  ;;  %v1300_v30 = vcombine.high %v1296_v22, %v1296_v22  ;;  %v1471_v31 = vrot.slane %v1296_v22, %v5394_v55  ;;  %v4673_v32 = vpop.f32.mrf.mxu1 }
  0xec   : > { %v1611_v21 = vmul.f32 %v1463_v13, %v916_v12  ;;  %4740 = vmatmul.mubr.msk.f32.vlgmr.msra.gmra.mxu0 %vm663_vm0, %v1609_v16  ;;  %4742 = vmatprep.mubr.msk.f32.mxu1 %vm663_vm0, %v1610_v24  ;;  %v1316_v34 = vcombine.high %v1308_v8, %v1308_v8  ;;  %v1346_v39 = vcombine.high %v1324_v25, %v1324_v25 }
  0xed   : > { %v936_v35 = vpop.f32.mrf.mxu1  ;;  %v1479_v36 = vrot.slane %v1300_v30, %v5394_v55  ;;  %v1613_v37 = vmul.f32 %v1471_v31, %v924_v27  ;;  %v1614_v38 = vmul.f32 %v1475_v28, %v929_v26  ;;  %v1315_v44 = vrot.slane %v1301_v33, %v5383_v47 }
  0xee   : > { %4743 = vmatmul.mubr.msk.f32.vlgmr.msra.gmra.mxu1 %vm663_vm0, %v1611_v21  ;;  %v937_v40 = vadd.f32 %v5390_v51, %v936_v35  ;;  %v1338_v45 = vrot.slane %v1316_v34, %v5383_v47  ;;  %v932_v46 = vadd.f32 %v4670_v14, %v5390_v51  ;;  %v1483_v49 = vrot.slane %v1324_v25, %v5394_v55 }
  0xef   : > { %4745 = vmatprep.mubr.msk.f32.mxu1 %vm663_vm0, %v1612_v29  ;;  %v4674_v41 = vpop.f32.mrf.mxu1  ;;  %v945_v54 = vadd.f32 %v4673_v32, %v5390_v51  ;;  %v1491_v56 = vrot.slane %v1346_v39, %v5394_v55  ;;  %v713_v59 = vadd.f32 %v5374_v42, %v5379_v43  ;;  %v1317_v60 = vcombine.high %v1315_v44, %v1315_v44 }
  0xf0   : > { %v1615_v52 = vmul.f32 %v1479_v36, %v932_v46  ;;  %v1616_v57 = vmul.f32 %v1483_v49, %v937_v40  ;;  %v1348_v61 = vcombine.high %v1338_v45, %v1338_v45  ;;  %v1487_v62 = vrot.slane %v1338_v45, %v5394_v55 }
  0xf1   : > { %v939_v50 = vpop.f32.mrf.mxu1  ;;  %v1331_v63 = vrot.slane %v1315_v44, %v5383_v47  ;;  %v948_v1 = vadd.f32 %v4674_v41, %v5390_v51  ;;  %v1618_v3 = vmul.f32 %v1491_v56, %v945_v54  ;;  %v1357_v42 = vrot.slane %v713_v59, %v5383_v47 }
  0xf2   : > { %4746 = vmatmul.mubr.msk.f32.gmra.mxu1 %vm663_vm0, %v1613_v37  ;;  %v940_v53 = vadd.f32 %v5390_v51, %v939_v50  ;;  %v1495_v6 = vrot.slane %v1348_v61, %v5394_v55  ;;  %v1345_v7 = vrot.slane %v1317_v60, %v5383_v47  ;;  %v1350_v17 = vcombine.high %v713_v59, %v713_v59 }
  0xf3   : > { %4748 = vmatprep.mubr.msk.f32.mxu1 %vm663_vm0, %v1614_v38  ;;  %v4677_v58 = vpop.f32.mrf.mxu1  ;;  %v1347_v8 = vcombine.high %v1331_v63, %v1331_v63  ;;  %v1499_v9 = vrot.slane %v1331_v63, %v5394_v55  ;;  %v1365_v19 = vcombine.high %v1357_v42, %v1357_v42  ;;  %v1373_v22 = vrot.slane %v1357_v42, %v5383_v47 }
  0xf4   : > { %v1617_v2 = vmul.f32 %v1487_v62, %v940_v53  ;;  %v1619_v11 = vmul.f32 %v1495_v6, %v948_v1  ;;  %v961_v13 = vadd.f32 %v4677_v58, %v5390_v51  ;;  %v1349_v20 = vcombine.high %v1345_v7, %v1345_v7 }
  0xf5   : > { %v952_v0 = vpop.f32.mrf.mxu1  ;;  %v1503_v21 = vrot.slane %v1345_v7, %v5394_v55  ;;  %v1507_v23 = vrot.slane %v1347_v8, %v5394_v55  ;;  %v1364_v30 = vrot.slane %v1350_v17, %v5383_v47  ;;  %v1387_v31 = vrot.slane %v1365_v19, %v5383_v47 }
  0xf6   : > { %4749 = vmatmul.mubr.msk.f32.gmra.mxu1 %vm663_vm0, %v1615_v52  ;;  %v953_v4 = vadd.f32 %v5390_v51, %v952_v0  ;;  %v1511_v32 = vrot.slane %v1349_v20, %v5394_v55  ;;  %v1395_v33 = vcombine.high %v1373_v22, %v1373_v22  ;;  %v1515_v34 = vrot.slane %v1373_v22, %v5394_v55 }
  0xf7   : > { %4751 = vmatprep.mubr.msk.f32.mxu1 %vm663_vm0, %v1616_v57  ;;  %v4678_v5 = vpop.f32.mrf.mxu1  ;;  %v1622_v27 = vmul.f32 %v1507_v23, %v961_v13  ;;  %v1366_v41 = vcombine.high %v1364_v30, %v1364_v30  ;;  %v716_v44 = vadd.f32 %v5385_v48, %v5379_v43  ;;  %v1397_v45 = vcombine.high %v1387_v31, %v1387_v31 }
  0xf8   : > { %v1620_v14 = vmul.f32 %v1499_v9, %v953_v4  ;;  %v964_v25 = vadd.f32 %v4678_v5, %v5390_v51  ;;  %v1519_v46 = vrot.slane %v1387_v31, %v5394_v55  ;;  %v1380_v49 = vrot.slane %v1364_v30, %v5383_v47 }
  0xf9   : > { %v955_v10 = vpop.f32.mrf.mxu1  ;;  %v1523_v50 = vrot.slane %v1395_v33, %v5394_v55  ;;  %v1406_v43 = vrot.slane %v716_v44, %v5383_v47  ;;  %v1527_v48 = vrot.slane %v1397_v45, %v5394_v55  ;;  %v1394_v59 = vrot.slane %v1366_v41, %v5383_v47 }
  0xfa   : > { %4752 = vmatmul.mubr.msk.f32.gmra.mxu1 %vm663_vm0, %v1617_v2  ;;  %v956_v12 = vadd.f32 %v5390_v51, %v955_v10  ;;  %v1623_v36 = vmul.f32 %v1511_v32, %v964_v25  ;;  %v1396_v60 = vcombine.high %v1380_v49, %v1380_v49  ;;  %v1531_v61 = vrot.slane %v1380_v49, %v5394_v55 }
  0xfb   : > { %4754 = vmatprep.mubr.msk.f32.mxu1 %vm663_vm0, %v1618_v3  ;;  %v4681_v16 = vpop.f32.mrf.mxu1  ;;  %v1399_v4 = vcombine.high %v716_v44, %v716_v44  ;;  %v1414_v5 = vcombine.high %v1406_v43, %v1406_v43  ;;  %v1398_v42 = vcombine.high %v1394_v59, %v1394_v59  ;;  %v1535_v6 = vrot.slane %v1394_v59, %v5394_v55  ;;  %v5520_v59 = vpop.f32.mrf.mxu0 }
  0xfc   : > { %v1621_v26 = vmul.f32 %v1503_v21, %v956_v12  ;;  %v977_v38 = vadd.f32 %v4681_v16, %v5390_v51  ;;  %v1422_v7 = vrot.slane %v1406_v43, %v5383_v47  ;;  %v1539_v8 = vrot.slane %v1396_v60, %v5394_v55  ;;  %6631 = vst [vmem:[#allocation2_spill] sm:$0xff] %v5520_v59 }
  0xfd   : > { %v968_v24 = vpop.f32.mrf.mxu1  ;;  %v1413_v16 = vrot.slane %v1399_v4, %v5383_v47  ;;  %v1436_v17 = vrot.slane %v1414_v5, %v5383_v47  ;;  %v1543_v19 = vrot.slane %v1398_v42, %v5394_v55  ;;  %v5522_v60 = vpop.f32.mrf.mxu0 }
  0xfe   : > { %4755 = vmatmul.mubr.msk.f32.gmra.mxu1 %vm663_vm0, %v1619_v11  ;;  %v969_v28 = vadd.f32 %v5390_v51, %v968_v24  ;;  %v1626_v56 = vmul.f32 %v1523_v50, %v977_v38  ;;  %v1444_v20 = vcombine.high %v1422_v7, %v1422_v7  ;;  %v1547_v21 = vrot.slane %v1422_v7, %v5394_v55 }
  0xff   : > { %4757 = vmatprep.mubr.msk.f32.mxu1 %vm663_vm0, %v1620_v14  ;;  %v4682_v29 = vpop.f32.mrf.mxu1  ;;  %v1551_v30 = vrot.slane %v1436_v17, %v5394_v55  ;;  %v1429_v31 = vrot.slane %v1413_v16, %v5383_v47  ;;  %6632 = vst [vmem:[#allocation3_spill] sm:$0xff] %v5522_v60 }
 0x100   : > { %v1624_v39 = vmul.f32 %v1515_v34, %v969_v28  ;;  %v980_v53 = vadd.f32 %v4682_v29, %v5390_v51  ;;  %v1415_v28 = vcombine.high %v1413_v16, %v1413_v16  ;;  %v1446_v29 = vcombine.high %v1436_v17, %v1436_v17 }
 0x101   : > { %v971_v35 = vpop.f32.mrf.mxu1  ;;  %v1555_v32 = vrot.slane %v1444_v20, %v5394_v55  ;;  %v1445_v41 = vcombine.high %v1429_v31, %v1429_v31  ;;  %v1563_v44 = vrot.slane %v1429_v31, %v5394_v55  ;;  %v1243_v17 = vadd.s32 1, %v5313_v18 }
 0x102   : > { %4758 = vmatmul.mubr.msk.f32.gmra.mxu1 %vm663_vm0, %v1621_v26  ;;  %v972_v37 = vadd.f32 %v5390_v51, %v971_v35  ;;  %v1627_v63 = vmul.f32 %v1527_v48, %v980_v53  ;;  %v1241_v20 = vmul.u32 8, %v5313_v18 }
 0x103   : > { %4760 = vmatprep.mubr.msk.f32.mxu1 %vm663_vm0, %v1622_v27  ;;  %v4685_v40 = vpop.f32.mrf.mxu1 }
 0x104   : > { %v1625_v54 = vmul.f32 %v1519_v46, %v972_v37  ;;  %v993_v1 = vadd.f32 %v4685_v40, %v5390_v51  ;;  %v1443_v40 = vrot.slane %v1415_v28, %v5383_v47  ;;  %v1571_v47 = vrot.slane %v1445_v41, %v5394_v55 }
 0x105   : > { %v984_v52 = vpop.f32.mrf.mxu1  ;;  %vm1242_vm13 = vcmp.ge.s32.totalorder %v5305_v15, %v1241_v20 }
 0x106   : > { %4761 = vmatmul.mubr.msk.f32.gmra.mxu1 %vm663_vm0, %v1623_v36  ;;  %v985_v57 = vadd.f32 %v5390_v51, %v984_v52  ;;  %v1630_v12 = vmul.f32 %v1539_v8, %v993_v1  ;;  %v1447_v53 = vcombine.high %v1443_v40, %v1443_v40 }
 0x107   : > { %4763 = vmatprep.mubr.msk.f32.mxu1 %vm663_vm0, %v1624_v39  ;;  %v4686_v58 = vpop.f32.mrf.mxu1  ;;  %v1559_v39 = vrot.slane %v1446_v29, %v5394_v55 }
 0x108   : > { %v1628_v2 = vmul.f32 %v1531_v61, %v985_v57  ;;  %v996_v10 = vadd.f32 %v4686_v58, %v5390_v51  ;;  %v1575_v43 = vrot.slane %v1447_v53, %v5394_v55  ;;  %v5524_v61 = vpop.f32.mrf.mxu0 }
 0x109   : > { %v987_v62 = vpop.f32.mrf.mxu1  ;;  %6633 = vst [vmem:[#allocation4_spill] sm:$0xff] %v5524_v61 }
 0x10a   : > { %4764 = vmatmul.mubr.msk.f32.gmra.mxu1 %vm663_vm0, %v1625_v54  ;;  %v988_v0 = vadd.f32 %v5390_v51, %v987_v62  ;;  %v1631_v23 = vmul.f32 %v1543_v19, %v996_v10  ;;  %v1567_v54 = vrot.slane %v1443_v40, %v5394_v55  ;;  %v5526_v62 = vpop.f32.mrf.mxu0 }
 0x10b   : > { %4766 = vmatprep.mubr.msk.f32.mxu1 %vm663_vm0, %v1626_v56  ;;  %v4689_v3 = vpop.f32.mrf.mxu1  ;;  %6634 = vst [vmem:[#allocation5_spill] sm:$0xff] %v5526_v62 }
 0x10c   : > { %v1629_v11 = vmul.f32 %v1535_v6, %v988_v0  ;;  %v1009_v25 = vadd.f32 %v4689_v3, %v5390_v51 }
 0x10d   : > { %v1000_v9 = vpop.f32.mrf.mxu1 }
 0x10e   : > { %4767 = vmatmul.mubr.msk.f32.gmra.mxu1 %vm663_vm0, %v1627_v63  ;;  %v1001_v13 = vadd.f32 %v5390_v51, %v1000_v9  ;;  %v1634_v36 = vmul.f32 %v1555_v32, %v1009_v25 }
 0x10f   : > { %4769 = vmatprep.mubr.msk.f32.mxu1 %vm663_vm0, %v1628_v2  ;;  %v4690_v14 = vpop.f32.mrf.mxu1 }
 0x110   : > { %v1632_v26 = vmul.f32 %v1547_v21, %v1001_v13  ;;  %v1012_v34 = vadd.f32 %v4690_v14, %v5390_v51  ;;  %v1244_v21 = vmul.u32 8, %v1243_v17 }
 0x111   : > { %v1003_v22 = vpop.f32.mrf.mxu1 }
 0x112   : > { %4770 = vmatmul.mubr.msk.f32.gmra.mxu1 %vm663_vm0, %v1629_v11  ;;  %v1004_v24 = vadd.f32 %v5390_v51, %v1003_v22  ;;  %v1635_v46 = vmul.f32 %v1559_v39, %v1012_v34  ;;  %vm1245_vm14 = vcmp.lt.s32.totalorder %v5305_v15, %v1244_v21 }
 0x113   : > { %4772 = vmatprep.mubr.msk.f32.mxu1 %vm663_vm0, %v1630_v12  ;;  %v4693_v27 = vpop.f32.mrf.mxu1  ;;  %vm1246_vm15 = vmand %vm1242_vm13, %vm1245_vm14 }
 0x114   : > { %v1633_v35 = vmul.f32 %v1551_v30, %v1004_v24  ;;  %v1025_v50 = vadd.f32 %v4693_v27, %v5390_v51 }
 0x115   : > { %v1016_v33 = vpop.f32.mrf.mxu1 }
 0x116   : > { %4773 = vmatmul.mubr.msk.f32.gmra.mxu1 %vm663_vm0, %v1631_v23  ;;  %v1017_v37 = vadd.f32 %v5390_v51, %v1016_v33  ;;  %v1638_v58 = vmul.f32 %v1571_v47, %v1025_v50  ;;  %v5158_v23 = vmov 0.0  }
 0x117   : > { %4775 = vmatprep.mubr.msk.f32.mxu1 %vm663_vm0, %v1632_v26  ;;  %v4694_v38 = vpop.f32.mrf.mxu1  ;;  %v1247_v24 = vsel %vm1246_vm15, 1.0, %v5158_v23 }
 0x118   : > { %v1636_v52 = vmul.f32 %v1563_v44, %v1017_v37  ;;  %v1028_v56 = vadd.f32 %v4694_v38, %v5390_v51  ;;  %4787 = vmatprep.subr.msk.mxu0 %vm2762_vm1, %v1247_v24 }
 0x119   : > { %v1019_v45 = vpop.f32.mrf.mxu1  ;;  %4788 = vmatpush3.msk.msra.mxu0 %vm2762_vm1, %v1247_v24 }
 0x11a   : > { %4776 = vmatmul.mubr.msk.f32.gmra.mxu1 %vm663_vm0, %v1633_v35  ;;  %v1020_v49 = vadd.f32 %v5390_v51, %v1019_v45  ;;  %v1639_v48 = vmul.f32 %v1575_v43, %v1028_v56  ;;  %v5528_v51 = vpop.f32.mrf.mxu0 }
 0x11b   : > { %4778 = vmatprep.mubr.msk.f32.mxu1 %vm663_vm0, %v1634_v36  ;;  %6635 = vst [vmem:[#allocation6_spill] sm:$0xff] %v5528_v51 }
 0x11c   : > { %v1637_v57 = vmul.f32 %v1567_v54, %v1020_v49  ;;  %v5530_v63 = vpop.f32.mrf.mxu0 }
 0x11d   : > { %6636 = vst [vmem:[#allocation7_spill] sm:$0xff] %v5530_v63 }
 0x11e   : > { %4779 = vmatmul.mubr.msk.f32.gmra.mxu1 %vm663_vm0, %v1635_v46  ;;  %v5532_v55 = vpop.f32.mrf.mxu0 }
 0x11f   : > { %4781 = vmatprep.mubr.msk.f32.mxu1 %vm663_vm0, %v1636_v52  ;;  %6637 = vst [vmem:[#allocation8_spill] sm:$0xff] %v5532_v55 }
 0x120   : > { %v5534_v0 = vpop.f32.mrf.mxu0 }
 0x121   : > { %6638 = vst [vmem:[#allocation9_spill] sm:$0xff] %v5534_v0 }
 0x122   : > { %4782 = vmatmul.mubr.msk.f32.gmra.mxu1 %vm663_vm0, %v1637_v57  ;;  %v5536_v1 = vpop.f32.mrf.mxu0 }
 0x123   : > { %4784 = vmatprep.mubr.msk.f32.mxu1 %vm663_vm0, %v1638_v58  ;;  %6639 = vst [vmem:[#allocation10_spill] sm:$0xff] %v5536_v1 }
 0x124   : > { %v5538_v2 = vpop.f32.mrf.mxu0 }
 0x125   : > { %6640 = vst [vmem:[#allocation11_spill] sm:$0xff] %v5538_v2 }
 0x126   : > { %4785 = vmatmul.mubr.msk.f32.gmra.mxu1 %vm663_vm0, %v1639_v48  ;;  %v5540_v3 = vpop.f32.mrf.mxu0 }
 0x127   : > { %6641 = vst [vmem:[#allocation12_spill] sm:$0xff] %v5540_v3 }
 0x128   : > { %v5542_v4 = vpop.f32.mrf.mxu0 }
 0x129   : > { %6642 = vst [vmem:[#allocation13_spill] sm:$0xff] %v5542_v4 }
 0x12a   : > { %v5544_v5 = vpop.f32.mrf.mxu0 }
 0x12b   : > { %6643 = vst [vmem:[#allocation14_spill] sm:$0xff] %v5544_v5 }
 0x12c   : > { %v5546_v42 = vpop.f32.mrf.mxu0 }
 0x12d   : > { %6644 = vst [vmem:[#allocation15_spill] sm:$0xff] %v5546_v42 }
 0x12e   : > { %v5548_v6 = vpop.f32.mrf.mxu0 }
 0x12f   : > { %6645 = vst [vmem:[#allocation16_spill] sm:$0xff] %v5548_v6 }
 0x130   : > { %v5550_v7 = vpop.f32.mrf.mxu0 }
 0x131   : > { %6646 = vst [vmem:[#allocation17_spill] sm:$0xff] %v5550_v7 }
 0x132   : > { %v5552_v8 = vpop.f32.mrf.mxu0 }
 0x133   : > { %6647 = vst [vmem:[#allocation18_spill] sm:$0xff] %v5552_v8 }
 0x134   : > { %v5554_v9 = vpop.f32.mrf.mxu0 }
 0x135   : > { %6648 = vst [vmem:[#allocation19_spill] sm:$0xff] %v5554_v9 }
 0x136   : > { %v5556_v10 = vpop.f32.mrf.mxu0 }
 0x137   : > { %6649 = vst [vmem:[#allocation20_spill] sm:$0xff] %v5556_v10 }
 0x138   : > { %v5558_v11 = vpop.f32.mrf.mxu0 }
 0x139   : > { %6650 = vst [vmem:[#allocation21_spill] sm:$0xff] %v5558_v11 }
 0x13a   : > { %v5560_v12 = vpop.f32.mrf.mxu0 }
 0x13b   : > { %6651 = vst [vmem:[#allocation22_spill] sm:$0xff] %v5560_v12 }
 0x13c   : > { %v5562_v13 = vpop.f32.mrf.mxu0 }
 0x13d   : > { %6652 = vst [vmem:[#allocation23_spill] sm:$0xff] %v5562_v13 }
 0x13e   : > { %v5564_v14 = vpop.f32.mrf.mxu0 }
 0x13f   : > { %6653 = vst [vmem:[#allocation24_spill] sm:$0xff] %v5564_v14 }
 0x140   : > { %v5566_v16 = vpop.f32.mrf.mxu0 }
 0x141   : > { %6654 = vst [vmem:[#allocation25_spill] sm:$0xff] %v5566_v16 }
 0x142   : > { %v5569_v19 = vpop.f32.mrf.mxu0 }
 0x143   : > { %6655 = vst [vmem:[#allocation26_spill] sm:$0xff] %v5569_v19 }
 0x144   : > { %v5574_v22 = vpop.f32.mrf.mxu0 }
 0x145   : > { %6656 = vst [vmem:[#allocation27_spill] sm:$0xff] %v5574_v22 }
 0x146   : > { %v5576_v25 = vpop.f32.mrf.mxu0 }
 0x147   : > { %6657 = vst [vmem:[#allocation28_spill] sm:$0xff] %v5576_v25 }
 0x148   : > { %v5578_v26 = vpop.f32.mrf.mxu0 }
 0x149   : > { %6658 = vst [vmem:[#allocation29_spill] sm:$0xff] %v5578_v26 }
 0x14a   : > { %v5580_v27 = vpop.f32.mrf.mxu0 }
 0x14b   : > { %6659 = vst [vmem:[#allocation30_spill] sm:$0xff] %v5580_v27 }
 0x14c   : > { %v5582_v18 = vpop.f32.mrf.mxu0 }
 0x14d   : > { %6660 = vst [vmem:[#allocation31_spill] sm:$0xff] %v5582_v18 }
 0x14e   : > { %v5584_v28 = vpop.f32.mrf.mxu0 }
 0x14f   : > { %6661 = vst [vmem:[#allocation32_spill] sm:$0xff] %v5584_v28 }
 0x150   : > { %v5586_v29 = vpop.f32.mrf.mxu0 }
 0x151   : > { %6662 = vst [vmem:[#allocation33_spill] sm:$0xff] %v5586_v29 }
 0x1ac   : > { %v4741_v15 = vpop.f32.mrf.mxu0 }
 0x1ad   : > { %v1969_v30 = vsel %vm1961_vm2, %v4741_v15, -inf }
 0x1ae   : > { %v1970_v31 = vrot.slane %v1969_v30, 4  ;;  %v1802_v32 = vpop.f32.mrf.mxu0  ;;  %v4744_v33 = vpop.f32.mrf.mxu1 }
 0x1af   : > { %v1962_v34 = vsel %vm1961_vm2, %v1802_v32, -inf  ;;  %v1983_v35 = vsel %vm1961_vm2, %v4744_v33, -inf }
 0x1b0   : > { %v1971_v36 = vmax.f32 %v1969_v30, %v1970_v31  ;;  %v1963_v37 = vrot.slane %v1962_v34, 4  ;;  %v1984_v38 = vrot.slane %v1983_v35, 4  ;;  %v1812_v39 = vpop.f32.mrf.mxu1 }
 0x1b1   : > { %v1976_v40 = vsel %vm1961_vm2, %v1812_v39, -inf }
 0x1b2   : > { %v1972_v41 = vrot.slane %v1971_v36, 2  ;;  %v1964_v44 = vmax.f32 %v1962_v34, %v1963_v37  ;;  %v1985_v45 = vmax.f32 %v1983_v35, %v1984_v38  ;;  %v1977_v46 = vrot.slane %v1976_v40, 4  ;;  %v5592_v49 = vpop.f32.mrf.mxu1 }
 0x1b3   : > { %v1997_v50 = vsel %vm1961_vm2, %v5592_v49, -inf }
 0x1b4   : > { %v1973_v52 = vmax.f32 %v1971_v36, %v1972_v41  ;;  %v1965_v53 = vrot.slane %v1964_v44, 2  ;;  %v1986_v54 = vrot.slane %v1985_v45, 2  ;;  %v1978_v47 = vmax.f32 %v1976_v40, %v1977_v46  ;;  %v5596_v56 = vpop.f32.mrf.mxu1 }
 0x1b5   : > { %v1998_v57 = vrot.slane %v1997_v50, 4  ;;  %v1990_v58 = vsel %vm1961_vm2, %v5596_v56, -inf }
 0x1b6   : > { %v1974_v43 = vrot.slane %v1973_v52, 1  ;;  %v1966_v48 = vmax.f32 %v1964_v44, %v1965_v53  ;;  %v1987_v17 = vmax.f32 %v1985_v45, %v1986_v54  ;;  %v1979_v20 = vrot.slane %v1978_v47, 2  ;;  %v5600_v21 = vpop.f32.mrf.mxu1 }
 0x1b7   : > { %v1999_v23 = vmax.f32 %v1997_v50, %v1998_v57  ;;  %v1991_v24 = vrot.slane %v1990_v58, 4  ;;  %v2011_v30 = vsel %vm1961_vm2, %v5600_v21, -inf }
 0x1b8   : > { %v1975_v31 = vmax.f32 %v1973_v52, %v1974_v43  ;;  %v1967_v34 = vrot.slane %v1966_v48, 1  ;;  %v1988_v35 = vrot.slane %v1987_v17, 1  ;;  %v1980_v36 = vmax.f32 %v1978_v47, %v1979_v20  ;;  %v5604_v37 = vpop.f32.mrf.mxu1 }
 0x1b9   : > { %v2000_v38 = vrot.slane %v1999_v23, 2  ;;  %v1992_v40 = vmax.f32 %v1990_v58, %v1991_v24  ;;  %v2012_v41 = vrot.slane %v2011_v30, 4  ;;  %v2004_v44 = vsel %vm1961_vm2, %v5604_v37, -inf }
 0x1ba   : > { %v2187_v45 = vsub.f32 %v4741_v15, %v1975_v31  ;;  %v1968_v46 = vmax.f32 %v1966_v48, %v1967_v34  ;;  %v1989_v53 = vmax.f32 %v1987_v17, %v1988_v35  ;;  %v1981_v50 = vrot.slane %v1980_v36, 1  ;;  %v5608_v54 = vpop.f32.mrf.mxu1 }
 0x1bb   : > { %v2001_v57 = vmax.f32 %v1999_v23, %v2000_v38  ;;  %v1993_v29 = vrot.slane %v1992_v40, 2  ;;  %v2013_v52 = vmax.f32 %v2011_v30, %v2012_v41  ;;  %v2005_v43 = vrot.slane %v2004_v44, 4 }
 0x1bc   : > { %v2220_v28 = vmul.f32 1.442695, %v2187_v45  ;;  %v2186_v47 = vsub.f32 %v1802_v32, %v1968_v46  ;;  %v2189_v20 = vsub.f32 %v4744_v33, %v1989_v53  ;;  %v1982_v18 = vmax.f32 %v1980_v36, %v1981_v50  ;;  %v5610_v27 = vpop.f32.mrf.mxu1 }
 0x1bd   : > { %v2002_v58 = vrot.slane %v2001_v57, 1  ;;  %v1994_v24 = vmax.f32 %v1992_v40, %v1993_v29  ;;  %v2014_v26 = vrot.slane %v2013_v52, 2  ;;  %v2006_v25 = vmax.f32 %v2004_v44, %v2005_v43 }
 0x1be   : > { %4984 = vpow2.f32 %v2220_v28  ;;  %v2218_v15 = vmul.f32 1.442695, %v2186_v47  ;;  %v2224_v48 = vmul.f32 1.442695, %v2189_v20  ;;  %v2188_v17 = vsub.f32 %v1812_v39, %v1982_v18  ;;  %v5612_v31 = vpop.f32.mrf.mxu1 }
 0x1bf   : > { %v2003_v23 = vmax.f32 %v2001_v57, %v2002_v58  ;;  %v1995_v34 = vrot.slane %v1994_v24, 1  ;;  %v2015_v30 = vmax.f32 %v2013_v52, %v2014_v26  ;;  %v2007_v35 = vrot.slane %v2006_v25, 2 }
 0x1c0   : > { %4986 = vpow2.f32 %v2218_v15  ;;  %v2222_v32 = vmul.f32 1.442695, %v2188_v17  ;;  %v2025_v33 = vsel %vm1961_vm2, %v5608_v54, -inf  ;;  %v2018_v29 = vsel %vm1961_vm2, %v5610_v27, -inf  ;;  %v5618_v36 = vpop.f32.mrf.mxu1 }
 0x1c1   : > { %4988 = vpow2.f32 %v2224_v48  ;;  %v2191_v28 = vsub.f32 %v5592_v49, %v2003_v23  ;;  %v1996_v18 = vmax.f32 %v1994_v24, %v1995_v34  ;;  %v2016_v39 = vrot.slane %v2015_v30, 1 }
 0x1c2   : > { %4990 = vpow2.f32 %v2222_v32  ;;  %v2008_v38 = vmax.f32 %v2006_v25, %v2007_v35  ;;  %v2026_v40 = vrot.slane %v2025_v33, 4  ;;  %v2019_v26 = vrot.slane %v2018_v29, 4  ;;  %v5621_v41 = vpop.f32.mrf.mxu1 }
 0x1c3   : > { %v2228_v44 = vmul.f32 1.442695, %v2191_v28  ;;  %v2190_v45 = vsub.f32 %v5596_v56, %v1996_v18  ;;  %v2017_v46 = vmax.f32 %v2015_v30, %v2016_v39  ;;  %v2039_v53 = vsel %vm1961_vm2, %v5612_v31, -inf }
 0x1c4   : > { %v2009_v50 = vrot.slane %v2008_v38, 1  ;;  %v2027_v57 = vmax.f32 %v2025_v33, %v2026_v40  ;;  %v2020_v52 = vmax.f32 %v2018_v29, %v2019_v26  ;;  %v2040_v43 = vrot.slane %v2039_v53, 4  ;;  %v5626_v49 = vpop.f32.mrf.mxu1 }
 0x1c5   : > { %4992 = vpow2.f32 %v2228_v44  ;;  %v2226_v47 = vmul.f32 1.442695, %v2190_v45  ;;  %v2193_v25 = vsub.f32 %v5600_v21, %v2017_v46  ;;  %v2032_v20 = vsel %vm1961_vm2, %v5618_v36, -inf }
 0x1c6   : > { %v2010_v58 = vmax.f32 %v2008_v38, %v2009_v50  ;;  %v2028_v24 = vrot.slane %v2027_v57, 2  ;;  %v2021_v56 = vrot.slane %v2020_v52, 2  ;;  %v2041_v15 = vmax.f32 %v2039_v53, %v2040_v43  ;;  %v5631_v48 = vpop.f32.mrf.mxu1 }
 0x1c7   : > { %4994 = vpow2.f32 %v2226_v47  ;;  %v2232_v17 = vmul.f32 1.442695, %v2193_v25  ;;  %v2033_v23 = vrot.slane %v2032_v20, 4  ;;  %v2053_v34 = vsel %vm1961_vm2, %v5621_v41, -inf }
 0x1c8   : > { %v2192_v30 = vsub.f32 %v5604_v37, %v2010_v58  ;;  %v2029_v35 = vmax.f32 %v2027_v57, %v2028_v24  ;;  %v2022_v32 = vmax.f32 %v2020_v52, %v2021_v56  ;;  %v2042_v21 = vrot.slane %v2041_v15, 2  ;;  %v5636_v33 = vpop.f32.mrf.mxu1 }
 0x1c9   : > { %4996 = vpow2.f32 %v2232_v17  ;;  %v2034_v29 = vmax.f32 %v2032_v20, %v2033_v23  ;;  %v2054_v28 = vrot.slane %v2053_v34, 4  ;;  %v2046_v18 = vsel %vm1961_vm2, %v5626_v49, -inf }
 0x1ca   : > { %v2230_v39 = vmul.f32 1.442695, %v2192_v30  ;;  %v2030_v38 = vrot.slane %v2029_v35, 1  ;;  %v2023_v40 = vrot.slane %v2022_v32, 1  ;;  %v2043_v26 = vmax.f32 %v2041_v15, %v2042_v21  ;;  %v5640_v44 = vpop.f32.mrf.mxu1 }
 0x1cb   : > { %v5642_v45 = vpop.eup %4984  ;;  %v2035_v37 = vrot.slane %v2034_v29, 2  ;;  %v2055_v46 = vmax.f32 %v2053_v34, %v2054_v28  ;;  %v2047_v53 = vrot.slane %v2046_v18, 4  ;;  %v2067_v50 = vsel %vm1961_vm2, %v5631_v48, -inf }
 0x1cc   : > { %v2289_v57 = vsel %vm1961_vm2, %v5642_v45, 0.0  ;;  %4998 = vpow2.f32 %v2230_v39  ;;  %v2031_v52 = vmax.f32 %v2029_v35, %v2030_v38  ;;  %v2024_v43 = vmax.f32 %v2022_v32, %v2023_v40  ;;  %v5650_v56 = vpop.f32.mrf.mxu1 }
 0x1cd   : > { %v5648_v47 = vpop.eup %4986  ;;  %v2290_v25 = vrot.slane %v2289_v57, 4  ;;  %v2044_v20 = vrot.slane %v2043_v26, 1  ;;  %v2036_v58 = vmax.f32 %v2034_v29, %v2035_v37  ;;  %v2056_v24 = vrot.slane %v2055_v46, 2 }
 0x1ce   : > { %v5652_v15 = vpop.eup %4988  ;;  %v2282_v17 = vsel %vm1961_vm2, %v5648_v47, 0.0  ;;  %v2195_v23 = vsub.f32 %v5608_v54, %v2031_v52  ;;  %v2194_v34 = vsub.f32 %v5610_v27, %v2024_v43  ;;  %v2048_v30 = vmax.f32 %v2046_v18, %v2047_v53  ;;  %v5667_v18 = vpop.f32.mrf.mxu1 }
 0x1cf   : > { %v5658_v35 = vpop.eup %4990  ;;  %v2291_v32 = vadd.f32 %v2290_v25, %v2289_v57  ;;  %v2283_v21 = vrot.slane %v2282_v17, 4  ;;  %v2303_v29 = vsel %vm1961_vm2, %v5652_v15, 0.0  ;;  %v2045_v28 = vmax.f32 %v2043_v26, %v2044_v20 }
 0x1d0   : > { %v2304_v39 = vrot.slane %v2303_v29, 4  ;;  %v2296_v38 = vsel %vm1961_vm2, %v5658_v35, 0.0  ;;  %v2236_v40 = vmul.f32 1.442695, %v2195_v23  ;;  %v2234_v37 = vmul.f32 1.442695, %v2194_v34 }
 0x1d1   : > { %v2292_v22 = vrot.slane %v2291_v32, 2  ;;  %v5664_v19 = vadd.f32 %v2283_v21, %v2282_v17  ;;  %v2297_v54 = vrot.slane %v2296_v38, 4  ;;  %v2197_v27 = vsub.f32 %v5612_v31, %v2045_v28 }
 0x1d2   : > { %v5669_v53 = vpop.eup %4992  ;;  %v5671_v57 = vadd.f32 %v2304_v39, %v2303_v29  ;;  %5000 = vpow2.f32 %v2236_v40  ;;  %v2037_v26 = vrot.slane %v2036_v58, 1  ;;  %v2057_v52 = vmax.f32 %v2055_v46, %v2056_v24  ;;  %v5685_v46 = vpop.f32.mrf.mxu1 }
 0x1d3   : > { %v5673_v43 = vadd.f32 %v2292_v22, %v2291_v32  ;;  %v5675_v25 = vadd.f32 %v2297_v54, %v2296_v38  ;;  %v2317_v20 = vsel %vm1961_vm2, %v5669_v53, 0.0  ;;  %5002 = vpow2.f32 %v2234_v37 }
 0x1d4   : > { %v5679_v17 = vpop.eup %4994  ;;  %v2318_v31 = vrot.slane %v2317_v20, 4  ;;  %v2240_v23 = vmul.f32 1.442695, %v2197_v27  ;;  %v2038_v34 = vmax.f32 %v2036_v58, %v2037_v26  ;;  %v2058_v21 = vrot.slane %v2057_v52, 1 }
 0x1d5   : > { %v2310_v29 = vsel %vm1961_vm2, %v5679_v17, 0.0  ;;  %v2049_v28 = vrot.slane %v2048_v30, 2  ;;  %v2068_v39 = vrot.slane %v2067_v50, 4  ;;  %v2060_v22 = vsel %vm1961_vm2, %v5636_v33, -inf }
 0x1d6   : > { %v5687_v24 = vpop.eup %4996  ;;  %v5689_v32 = vadd.f32 %v2318_v31, %v2317_v20  ;;  %v2311_v38 = vrot.slane %v2310_v29, 4  ;;  %5004 = vpow2.f32 %v2240_v23  ;;  %v2196_v40 = vsub.f32 %v5618_v36, %v2038_v34  ;;  %v5701_v23 = vpop.f32.mrf.mxu1 }
 0x1d7   : > { %v2331_v58 = vsel %vm1961_vm2, %v5687_v24, 0.0  ;;  %v2059_v37 = vmax.f32 %v2057_v52, %v2058_v21  ;;  %v2050_v54 = vmax.f32 %v2048_v30, %v2049_v28  ;;  %v2069_v27 = vmax.f32 %v2067_v50, %v2068_v39 }
 0x1d8   : > { %v5694_v26 = vadd.f32 %v2311_v38, %v2310_v29  ;;  %v2332_v16 = vrot.slane %v2331_v58, 4  ;;  %v2238_v14 = vmul.f32 1.442695, %v2196_v40  ;;  %v2061_v13 = vrot.slane %v2060_v22, 4 }
 0x1d9   : > { %v5696_v12 = vpop.eup %4998  ;;  %v2199_v20 = vsub.f32 %v5621_v41, %v2059_v37  ;;  %v2051_v31 = vrot.slane %v2050_v54, 1  ;;  %v2070_v11 = vrot.slane %v2069_v27, 2  ;;  %v2081_v36 = vsel %vm1961_vm2, %v5640_v44, -inf }
 0x1da   : > { %v5703_v34 = vadd.f32 %v2332_v16, %v2331_v58  ;;  %v2324_v50 = vsel %vm1961_vm2, %v5696_v12, 0.0  ;;  %5006 = vpow2.f32 %v2238_v14  ;;  %v2062_v30 = vmax.f32 %v2060_v22, %v2061_v13  ;;  %v5714_v14 = vpop.f32.mrf.mxu1 }
 0x1db   : > { %v2325_v52 = vrot.slane %v2324_v50, 4  ;;  %v2244_v21 = vmul.f32 1.442695, %v2199_v20  ;;  %v2052_v29 = vmax.f32 %v2050_v54, %v2051_v31  ;;  %v2071_v28 = vmax.f32 %v2069_v27, %v2070_v11 }
 0x1dc   : > { %v2063_v39 = vrot.slane %v2062_v30, 2  ;;  %v2082_v41 = vrot.slane %v2081_v36, 4  ;;  %v2074_v38 = vsel %vm1961_vm2, %v5650_v56, -inf  ;;  %v2095_v40 = vsel %vm1961_vm2, %v5667_v18, -inf }
 0x1dd   : > { %v5711_v37 = vadd.f32 %v2325_v52, %v2324_v50  ;;  %5008 = vpow2.f32 %v2244_v21  ;;  %v2198_v16 = vsub.f32 %v5626_v49, %v2052_v29  ;;  %v2072_v58 = vrot.slane %v2071_v28, 1 }
 0x1de   : > { %v2064_v13 = vmax.f32 %v2062_v30, %v2063_v39  ;;  %v2083_v22 = vmax.f32 %v2081_v36, %v2082_v41  ;;  %v2075_v54 = vrot.slane %v2074_v38, 4  ;;  %v2096_v11 = vrot.slane %v2095_v40, 4  ;;  %v5729_v41 = vpop.f32.mrf.mxu1 }
 0x1df   : > { %v5716_v27 = vpop.eup %5000  ;;  %v2242_v20 = vmul.f32 1.442695, %v2198_v16  ;;  %v2073_v31 = vmax.f32 %v2071_v28, %v2072_v58  ;;  %v2088_v10 = vsel %vm1961_vm2, %v5685_v46, -inf  ;;  %v2109_v50 = vsel %vm1961_vm2, %v5701_v23, -inf }
 0x1e0   : > { %v5722_v52 = vpop.eup %5002  ;;  %v2345_v49 = vsel %vm1961_vm2, %v5716_v27, 0.0  ;;  %v2065_v21 = vrot.slane %v2064_v13, 1  ;;  %v2084_v30 = vrot.slane %v2083_v22, 2  ;;  %v2076_v36 = vmax.f32 %v2074_v38, %v2075_v54 }
 0x1e1   : > { %v2346_v29 = vrot.slane %v2345_v49, 4  ;;  %v2338_v39 = vsel %vm1961_vm2, %v5722_v52, 0.0  ;;  %5010 = vpow2.f32 %v2242_v20  ;;  %v2201_v28 = vsub.f32 %v5631_v48, %v2073_v31 }
 0x1e2   : > { %v2339_v16 = vrot.slane %v2338_v39, 4  ;;  %v2066_v58 = vmax.f32 %v2064_v13, %v2065_v21  ;;  %v2085_v9 = vmax.f32 %v2083_v22, %v2084_v30  ;;  %v2077_v8 = vrot.slane %v2076_v36, 2  ;;  %v5740_v21 = vpop.f32.mrf.mxu1 }
 0x1e3   : > { %v5731_v7 = vpop.eup %5004  ;;  %v5733_v6 = vadd.f32 %v2346_v29, %v2345_v49  ;;  %v2248_v42 = vmul.f32 1.442695, %v2201_v28  ;;  %v2097_v5 = vmax.f32 %v2095_v40, %v2096_v11  ;;  %v2089_v38 = vrot.slane %v2088_v10, 4 }
 0x1e4   : > { %v5735_v54 = vadd.f32 %v2339_v16, %v2338_v39  ;;  %v2359_v20 = vsel %vm1961_vm2, %v5731_v7, 0.0  ;;  %v2200_v48 = vsub.f32 %v5636_v33, %v2066_v58  ;;  %v2086_v31 = vrot.slane %v2085_v9, 1 }
 0x1e5   : > { %v2360_v4 = vrot.slane %v2359_v20, 4  ;;  %5012 = vpow2.f32 %v2248_v42  ;;  %v2078_v13 = vmax.f32 %v2076_v36, %v2077_v8  ;;  %v2098_v22 = vrot.slane %v2097_v5, 2 }
 0x1e6   : > { %v2246_v30 = vmul.f32 1.442695, %v2200_v48  ;;  %v2087_v49 = vmax.f32 %v2085_v9, %v2086_v31  ;;  %v2090_v29 = vmax.f32 %v2088_v10, %v2089_v38  ;;  %v2110_v28 = vrot.slane %v2109_v50, 4  ;;  %v5751_v48 = vpop.f32.mrf.mxu1 }
 0x1e7   : > { %v5742_v40 = vpop.eup %5006  ;;  %v5744_v11 = vadd.f32 %v2360_v4, %v2359_v20  ;;  %v2079_v39 = vrot.slane %v2078_v13, 1  ;;  %v2099_v16 = vmax.f32 %v2097_v5, %v2098_v22  ;;  %v2102_v33 = vsel %vm1961_vm2, %v5714_v14, -inf }
 0x1e8   : > { %v2352_v42 = vsel %vm1961_vm2, %v5742_v40, 0.0  ;;  %5014 = vpow2.f32 %v2246_v30  ;;  %v2203_v8 = vsub.f32 %v5640_v44, %v2087_v49  ;;  %v2091_v36 = vrot.slane %v2090_v29, 2  ;;  %v5763_v2 = vpop.f32.mrf.mxu1 }
 0x1e9   : > { %v2353_v58 = vrot.slane %v2352_v42, 4  ;;  %v2080_v9 = vmax.f32 %v2078_v13, %v2079_v39  ;;  %v2100_v10 = vrot.slane %v2099_v16, 1  ;;  %v2111_v38 = vmax.f32 %v2109_v50, %v2110_v28 }
 0x1ea   : > { %v5753_v4 = vpop.eup %5008  ;;  %v2252_v20 = vmul.f32 1.442695, %v2203_v8  ;;  %v2092_v5 = vmax.f32 %v2090_v29, %v2091_v36  ;;  %v2103_v31 = vrot.slane %v2102_v33, 4  ;;  %v2123_v22 = vsel %vm1961_vm2, %v5729_v41, -inf }
 0x1eb   : > { %6663 = vst [vmem:[#allocation34_spill] sm:$0xff] %v5753_v4  ;;  %v5757_v3 = vadd.f32 %v2353_v58, %v2352_v42  ;;  %v2373_v44 = vsel %vm1961_vm2, %v5753_v4, 0.0  ;;  %v2202_v30 = vsub.f32 %v5650_v56, %v2080_v9  ;;  %v2101_v13 = vmax.f32 %v2099_v16, %v2100_v10 }
 0x1ec   : > { %v2374_v49 = vrot.slane %v2373_v44, 4  ;;  %5016 = vpow2.f32 %v2252_v20  ;;  %v2093_v50 = vrot.slane %v2092_v5, 1  ;;  %v2112_v28 = vrot.slane %v2111_v38, 2 }
 0x1ed   : > { %v2250_v39 = vmul.f32 1.442695, %v2202_v30  ;;  %v2205_v8 = vsub.f32 %v5667_v18, %v2101_v13  ;;  %v2104_v29 = vmax.f32 %v2102_v33, %v2103_v31  ;;  %v2124_v36 = vrot.slane %v2123_v22, 4 }
 0x1ee   : > { %v5765_v1 = vpop.eup %5010  ;;  %v5767_v42 = vadd.f32 %v2374_v49, %v2373_v44  ;;  %v2094_v58 = vmax.f32 %v2092_v5, %v2093_v50  ;;  %v2113_v0 = vmax.f32 %v2111_v38, %v2112_v28  ;;  %v2116_v56 = vsel %vm1961_vm2, %v5740_v21, -inf  ;;  %v5776_v5 = vpop.f32.mrf.mxu1 }
 0x1ef   : > { %6664 = vst [vmem:[#allocation35_spill] sm:$0xff] %v5765_v1  ;;  %v2366_v16 = vsel %vm1961_vm2, %v5765_v1, 0.0  ;;  %5018 = vpow2.f32 %v2250_v39  ;;  %v2256_v9 = vmul.f32 1.442695, %v2205_v8  ;;  %v2105_v10 = vrot.slane %v2104_v29, 2 }
 0x1f0   : > { %v2367_v18 = vrot.slane %v2366_v16, 4  ;;  %v2204_v33 = vsub.f32 %v5685_v46, %v2094_v58  ;;  %v2114_v20 = vrot.slane %v2113_v0, 1  ;;  %v2125_v31 = vmax.f32 %v2123_v22, %v2124_v36 }
 0x1f1   : > { %5020 = vpow2.f32 %v2256_v9  ;;  %v2106_v30 = vmax.f32 %v2104_v29, %v2105_v10  ;;  %v2117_v44 = vrot.slane %v2116_v56, 4  ;;  %v2137_v38 = vsel %vm1961_vm2, %v5751_v48, -inf }
 0x1f2   : > { %v5778_v13 = vpop.eup %5012  ;;  %v5780_v49 = vadd.f32 %v2367_v18, %v2366_v16  ;;  %v2254_v50 = vmul.f32 1.442695, %v2204_v33  ;;  %v2115_v28 = vmax.f32 %v2113_v0, %v2114_v20  ;;  %v2126_v39 = vrot.slane %v2125_v31, 2  ;;  %v5789_v18 = vpop.f32.mrf.mxu1 }
 0x1f3   : > { %6665 = vst [vmem:[#allocation36_spill] sm:$0xff] %v5778_v13  ;;  %v2387_v46 = vsel %vm1961_vm2, %v5778_v13, 0.0  ;;  %v2107_v8 = vrot.slane %v2106_v30, 1  ;;  %v2118_v22 = vmax.f32 %v2116_v56, %v2117_v44  ;;  %v2138_v36 = vrot.slane %v2137_v38, 4 }
 0x1f4   : > { %v2388_v29 = vrot.slane %v2387_v46, 4  ;;  %5022 = vpow2.f32 %v2254_v50  ;;  %v2207_v58 = vsub.f32 %v5701_v23, %v2115_v28  ;;  %v2127_v9 = vmax.f32 %v2125_v31, %v2126_v39 }
 0x1f5   : > { %v5785_v10 = vpop.eup %5014  ;;  %v2108_v55 = vmax.f32 %v2106_v30, %v2107_v8  ;;  %v2119_v63 = vrot.slane %v2118_v22, 2  ;;  %v2139_v16 = vmax.f32 %v2137_v38, %v2138_v36  ;;  %v2130_v0 = vsel %vm1961_vm2, %v5763_v2, -inf }
 0x1f6   : > { %6666 = vst [vmem:[#allocation37_spill] sm:$0xff] %v5785_v10  ;;  %v5791_v33 = vadd.f32 %v2388_v29, %v2387_v46  ;;  %v2380_v56 = vsel %vm1961_vm2, %v5785_v10, 0.0  ;;  %v2260_v20 = vmul.f32 1.442695, %v2207_v58  ;;  %v2128_v44 = vrot.slane %v2127_v9, 1  ;;  %v5802_v58 = vpop.f32.mrf.mxu1 }
 0x1f7   : > { %v2381_v50 = vrot.slane %v2380_v56, 4  ;;  %v2206_v23 = vsub.f32 %v5714_v14, %v2108_v55  ;;  %v2120_v31 = vmax.f32 %v2118_v22, %v2119_v63  ;;  %v2140_v28 = vrot.slane %v2139_v16, 2 }
 0x1f8   : > { %5024 = vpow2.f32 %v2260_v20  ;;  %v2129_v30 = vmax.f32 %v2127_v9, %v2128_v44  ;;  %v2131_v38 = vrot.slane %v2130_v0, 4  ;;  %v2151_v39 = vsel %vm1961_vm2, %v5776_v5, -inf }
 0x1f9   : > { %v5798_v8 = vpop.eup %5016  ;;  %v5800_v46 = vadd.f32 %v2381_v50, %v2380_v56  ;;  %v2258_v36 = vmul.f32 1.442695, %v2206_v23  ;;  %v2121_v29 = vrot.slane %v2120_v31, 1  ;;  %v2141_v51 = vmax.f32 %v2139_v16, %v2140_v28 }
 0x1fa   : > { %6667 = vst [vmem:[#allocation38_spill] sm:$0xff] %v5798_v8  ;;  %v2401_v55 = vsel %vm1961_vm2, %v5798_v8, 0.0  ;;  %v2209_v63 = vsub.f32 %v5729_v41, %v2129_v30  ;;  %v2132_v14 = vmax.f32 %v2130_v0, %v2131_v38  ;;  %v2152_v22 = vrot.slane %v2151_v39, 4  ;;  %v5816_v30 = vpop.f32.mrf.mxu1 }
 0x1fb   : > { %v2402_v9 = vrot.slane %v2401_v55, 4  ;;  %5026 = vpow2.f32 %v2258_v36  ;;  %v2122_v20 = vmax.f32 %v2120_v31, %v2121_v29  ;;  %v2142_v44 = vrot.slane %v2141_v51, 1 }
 0x1fc   : > { %v5807_v61 = vpop.eup %5018  ;;  %v2264_v56 = vmul.f32 1.442695, %v2209_v63  ;;  %v2133_v50 = vrot.slane %v2132_v14, 2  ;;  %v2153_v23 = vmax.f32 %v2151_v39, %v2152_v22  ;;  %v2144_v16 = vsel %vm1961_vm2, %v5789_v18, -inf }
 0x1fd   : > { %6668 = vst [vmem:[#allocation39_spill] sm:$0xff] %v5807_v61  ;;  %v5811_v28 = vadd.f32 %v2402_v9, %v2401_v55  ;;  %v2394_v59 = vsel %vm1961_vm2, %v5807_v61, 0.0  ;;  %v2208_v41 = vsub.f32 %v5740_v21, %v2122_v20  ;;  %v2143_v0 = vmax.f32 %v2141_v51, %v2142_v44 }
 0x1fe   : > { %v5818_v31 = vpop.eup %5020  ;;  %v2395_v38 = vrot.slane %v2394_v59, 4  ;;  %5028 = vpow2.f32 %v2264_v56  ;;  %v2134_v36 = vmax.f32 %v2132_v14, %v2133_v50  ;;  %v2154_v29 = vrot.slane %v2153_v23, 2  ;;  %v5829_v56 = vpop.f32.mrf.mxu1 }
 0x1ff   : > { %6669 = vst [vmem:[#allocation40_spill] sm:$0xff] %v5818_v31  ;;  %v2415_v39 = vsel %vm1961_vm2, %v5818_v31, 0.0  ;;  %v2262_v63 = vmul.f32 1.442695, %v2208_v41  ;;  %v2211_v55 = vsub.f32 %v5751_v48, %v2143_v0  ;;  %v2145_v22 = vrot.slane %v2144_v16, 4 }
 0x200   : > { %v5823_v9 = vadd.f32 %v2395_v38, %v2394_v59  ;;  %v2416_v60 = vrot.slane %v2415_v39, 4  ;;  %v2135_v21 = vrot.slane %v2134_v36, 1  ;;  %v2155_v51 = vmax.f32 %v2153_v23, %v2154_v29  ;;  %v5844_v31 = vpop.f32.mrf.mxu1 }
 0x201   : > { %v5825_v20 = vpop.eup %5022  ;;  %5030 = vpow2.f32 %v2262_v63  ;;  %v2268_v44 = vmul.f32 1.442695, %v2211_v55  ;;  %v2146_v62 = vmax.f32 %v2144_v16, %v2145_v22  ;;  %v2165_v14 = vsel %vm1961_vm2, %v5802_v58, -inf }
 0x202   : > { %6670 = vst [vmem:[#allocation41_spill] sm:$0xff] %v5825_v20  ;;  %v5831_v50 = vadd.f32 %v2416_v60, %v2415_v39  ;;  %v2408_v48 = vsel %vm1961_vm2, %v5825_v20, 0.0  ;;  %v2136_v59 = vmax.f32 %v2134_v36, %v2135_v21  ;;  %v2156_v41 = vrot.slane %v2155_v51, 1 }
 0x203   : > { %v2409_v0 = vrot.slane %v2408_v48, 4  ;;  %5032 = vpow2.f32 %v2268_v44  ;;  %v2147_v23 = vrot.slane %v2146_v62, 2  ;;  %v2166_v38 = vrot.slane %v2165_v14, 4 }
 0x204   : > { %v2210_v29 = vsub.f32 %v5763_v2, %v2136_v59  ;;  %v2157_v63 = vmax.f32 %v2155_v51, %v2156_v41  ;;  %v2158_v16 = vsel %vm1961_vm2, %v5816_v30, -inf  ;;  %v2179_v55 = vsel %vm1961_vm2, %v5829_v56, -inf }
 0x205   : > { %v5840_v60 = vpop.eup %5024  ;;  %v5842_v39 = vadd.f32 %v2409_v0, %v2408_v48  ;;  %v2148_v22 = vmax.f32 %v2146_v62, %v2147_v23  ;;  %v2167_v36 = vmax.f32 %v2165_v14, %v2166_v38  ;;  %v2159_v21 = vrot.slane %v2158_v16, 4 }
 0x206   : > { %6671 = vst [vmem:[#allocation42_spill] sm:$0xff] %v5840_v60  ;;  %v2429_v44 = vsel %vm1961_vm2, %v5840_v60, 0.0  ;;  %v2266_v2 = vmul.f32 1.442695, %v2210_v29  ;;  %v2213_v51 = vsub.f32 %v5776_v5, %v2157_v63  ;;  %v2180_v59 = vrot.slane %v2179_v55, 4 }
 0x207   : > { %v2430_v41 = vrot.slane %v2429_v44, 4  ;;  %v2149_v20 = vrot.slane %v2148_v22, 1  ;;  %v2168_v8 = vrot.slane %v2167_v36, 2  ;;  %v2160_v61 = vmax.f32 %v2158_v16, %v2159_v21 }
 0x208   : > { %v5849_v13 = vpop.eup %5026  ;;  %5034 = vpow2.f32 %v2266_v2  ;;  %v2272_v48 = vmul.f32 1.442695, %v2213_v51  ;;  %v2181_v62 = vmax.f32 %v2179_v55, %v2180_v59  ;;  %v2172_v14 = vsel %vm1961_vm2, %v5844_v31, -inf }
 0x209   : > { %6672 = vst [vmem:[#allocation43_spill] sm:$0xff] %v5849_v13  ;;  %v5853_v0 = vadd.f32 %v2430_v41, %v2429_v44  ;;  %v2422_v23 = vsel %vm1961_vm2, %v5849_v13, 0.0  ;;  %v2150_v38 = vmax.f32 %v2148_v22, %v2149_v20  ;;  %v2169_v5 = vmax.f32 %v2167_v36, %v2168_v8 }
 0x20a   : > { %v2423_v29 = vrot.slane %v2422_v23, 4  ;;  %5036 = vpow2.f32 %v2272_v48  ;;  %v2161_v63 = vrot.slane %v2160_v61, 2  ;;  %v2182_v60 = vrot.slane %v2181_v62, 2 }
 0x20b   : > { %v5857_v16 = vpop.eup %5028  ;;  %v2212_v21 = vsub.f32 %v5789_v18, %v2150_v38  ;;  %v2170_v2 = vrot.slane %v2169_v5, 1  ;;  %v2173_v55 = vrot.slane %v2172_v14, 4  ;;  %v2285_v51 = vrot.slane %v5664_v19, 2 }
 0x20c   : > { %6673 = vst [vmem:[#allocation44_spill] sm:$0xff] %v5857_v16  ;;  %v5861_v59 = vadd.f32 %v2423_v29, %v2422_v23  ;;  %v2443_v44 = vsel %vm1961_vm2, %v5857_v16, 0.0  ;;  %v2162_v41 = vmax.f32 %v2160_v61, %v2161_v63  ;;  %v2183_v20 = vmax.f32 %v2181_v62, %v2182_v60 }
 0x20d   : > { %v2444_v8 = vrot.slane %v2443_v44, 4  ;;  %v2270_v22 = vmul.f32 1.442695, %v2212_v21  ;;  %v2171_v36 = vmax.f32 %v2169_v5, %v2170_v2  ;;  %v2174_v48 = vmax.f32 %v2172_v14, %v2173_v55 }
 0x20e   : > { %v5865_v13 = vpop.eup %5030  ;;  %v2163_v10 = vrot.slane %v2162_v41, 1  ;;  %v2184_v4 = vrot.slane %v2183_v20, 1  ;;  %v2286_v18 = vadd.f32 %v2285_v51, %v5664_v19  ;;  %v2294_v38 = vrot.slane %v5673_v43, 1 }
 0x20f   : > { %v5869_v1 = vadd.f32 %v2444_v8, %v2443_v44  ;;  %v2436_v23 = vsel %vm1961_vm2, %v5865_v13, 0.0  ;;  %5038 = vpow2.f32 %v2270_v22  ;;  %v2215_v61 = vsub.f32 %v5802_v58, %v2171_v36 }
 0x210   : > { %v5874_v60 = vpop.eup %5032  ;;  %v2437_v62 = vrot.slane %v2436_v23, 4  ;;  %v2164_v14 = vmax.f32 %v2162_v41, %v2163_v10  ;;  %v2185_v5 = vmax.f32 %v2183_v20, %v2184_v4  ;;  %v2175_v29 = vrot.slane %v2174_v48, 2 }
 0x211   : > { %6674 = vst [vmem:[#allocation45_spill] sm:$0xff] %v5874_v60  ;;  %v2457_v63 = vsel %vm1961_vm2, %v5874_v60, 0.0  ;;  %v2276_v19 = vmul.f32 1.442695, %v2215_v61  ;;  %v2287_v21 = vrot.slane %v2286_v18, 1  ;;  %v5879_v2 = vadd.f32 %v2294_v38, %v5673_v43 }
 0x212   : > { %v5881_v55 = vadd.f32 %v2437_v62, %v2436_v23  ;;  %v2458_v51 = vrot.slane %v2457_v63, 4  ;;  %v2214_v44 = vsub.f32 %v5816_v30, %v2164_v14  ;;  %v2217_v58 = vsub.f32 %v5829_v56, %v2185_v5 }
 0x213   : > { %5040 = vpow2.f32 %v2276_v19  ;;  %v2176_v8 = vmax.f32 %v2174_v48, %v2175_v29  ;;  %v5885_v10 = vadd.f32 %v2287_v21, %v2286_v18  ;;  %v2299_v4 = vrot.slane %v5675_v25, 2 }
 0x214   : > { %v5888_v41 = vadd.f32 %v2458_v51, %v2457_v63  ;;  %v2274_v20 = vmul.f32 1.442695, %v2214_v44  ;;  %v2280_v22 = vmul.f32 1.442695, %v2217_v58  ;;  %5042 = vrcp.f32 %v5879_v2 }
 0x215   : > { %v5891_v43 = vpop.eup %5034  ;;  %v2177_v36 = vrot.slane %v2176_v8, 1  ;;  %5044 = vrcp.f32 %v5885_v10  ;;  %v2300_v30 = vadd.f32 %v2299_v4, %v5675_v25  ;;  %v2306_v56 = vrot.slane %v5671_v57, 2 }
 0x216   : > { %6675 = vst [vmem:[#allocation46_spill] sm:$0xff] %v5891_v43  ;;  %v2450_v48 = vsel %vm1961_vm2, %v5891_v43, 0.0  ;;  %5046 = vpow2.f32 %v2274_v20  ;;  %v2313_v18 = vrot.slane %v5694_v26, 2  ;;  %v2320_v38 = vrot.slane %v5689_v32, 2 }
 0x217   : > { %v5900_v23 = vpop.eup %5036  ;;  %v2451_v61 = vrot.slane %v2450_v48, 4  ;;  %5048 = vpow2.f32 %v2280_v22  ;;  %v2178_v62 = vmax.f32 %v2176_v8, %v2177_v36  ;;  %v2301_v14 = vrot.slane %v2300_v30, 1 }
 0x218   : > { %6676 = vst [vmem:[#allocation47_spill] sm:$0xff] %v5900_v23  ;;  %v2471_v5 = vsel %vm1961_vm2, %v5900_v23, 0.0  ;;  %v2307_v25 = vadd.f32 %v2306_v56, %v5671_v57  ;;  %v2314_v29 = vadd.f32 %v2313_v18, %v5694_v26  ;;  %v2321_v63 = vadd.f32 %v2320_v38, %v5689_v32 }
 0x219   : > { %v5907_v19 = vadd.f32 %v2451_v61, %v2450_v48  ;;  %v2472_v21 = vrot.slane %v2471_v5, 4  ;;  %v2216_v51 = vsub.f32 %v5844_v31, %v2178_v62  ;;  %v5910_v44 = vadd.f32 %v2301_v14, %v2300_v30 }
 0x21a   : > { %v2308_v58 = vrot.slane %v2307_v25, 1  ;;  %v2315_v4 = vrot.slane %v2314_v29, 1  ;;  %v2322_v8 = vrot.slane %v2321_v63, 1  ;;  %v2327_v20 = vrot.slane %v5711_v37, 2 }
 0x21b   : > { %v5913_v22 = vadd.f32 %v2472_v21, %v2471_v5  ;;  %v2278_v36 = vmul.f32 1.442695, %v2216_v51  ;;  %5050 = vrcp.f32 %v5910_v44  ;;  %v2334_v57 = vrot.slane %v5703_v34, 2 }
 0x21c   : > { %v5917_v32 = vpop.eup %5038  ;;  %v5919_v26 = vadd.f32 %v2308_v58, %v2307_v25  ;;  %v5921_v56 = vadd.f32 %v2315_v4, %v2314_v29  ;;  %v5923_v31 = vadd.f32 %v2322_v8, %v2321_v63  ;;  %v2328_v30 = vadd.f32 %v2327_v20, %v5711_v37 }
 0x21d   : > { %6677 = vst [vmem:[#allocation48_spill] sm:$0xff] %v5917_v32  ;;  %v2464_v48 = vsel %vm1961_vm2, %v5917_v32, 0.0  ;;  %5052 = vpow2.f32 %v2278_v36  ;;  %v2335_v18 = vadd.f32 %v2334_v57, %v5703_v34  ;;  %v2341_v38 = vrot.slane %v5735_v54, 2 }
 0x21e   : > { %v2465_v61 = vrot.slane %v2464_v48, 4  ;;  %5054 = vrcp.f32 %v5919_v26  ;;  %v2329_v62 = vrot.slane %v2328_v30, 1  ;;  %v2348_v14 = vrot.slane %v5733_v6, 2 }
 0x21f   : > { %5056 = vrcp.f32 %v5921_v56  ;;  %v2336_v5 = vrot.slane %v2335_v18, 1  ;;  %v2342_v25 = vadd.f32 %v2341_v38, %v5735_v54  ;;  %v2355_v37 = vrot.slane %v5757_v3, 2 }
 0x220   : > { %v5935_v29 = vpop.eup %5040  ;;  %v5937_v63 = vadd.f32 %v2465_v61, %v2464_v48  ;;  %5058 = vrcp.f32 %v5923_v31  ;;  %v5940_v34 = vadd.f32 %v2329_v62, %v2328_v30  ;;  %v2349_v21 = vadd.f32 %v2348_v14, %v5733_v6 }
 0x221   : > { %6678 = vst [vmem:[#allocation49_spill] sm:$0xff] %v5935_v29  ;;  %v5043_v51 = vpop.eup %5042  ;;  %v2485_v58 = vsel %vm1961_vm2, %v5935_v29, 0.0  ;;  %v5945_v4 = vadd.f32 %v2336_v5, %v2335_v18  ;;  %v2343_v8 = vrot.slane %v2342_v25, 1  ;;  %v2356_v54 = vadd.f32 %v2355_v37, %v5757_v3 }
 0x222   : > { %v5045_v20 = vpop.eup %5044  ;;  %v2486_v36 = vrot.slane %v2485_v58, 4  ;;  %v2539_v57 = vmul.f32 %v5043_v51, %v5879_v2  ;;  %5060 = vrcp.f32 %v5940_v34  ;;  %v2350_v48 = vrot.slane %v2349_v21, 1 }
 0x223   : > { %v5950_v30 = vpop.eup %5046  ;;  %v2538_v6 = vmul.f32 %v5045_v20, %v5885_v10  ;;  %5062 = vrcp.f32 %v5945_v4  ;;  %v5954_v38 = vadd.f32 %v2343_v8, %v2342_v25  ;;  %v2357_v18 = vrot.slane %v2356_v54, 1 }
 0x224   : > { %6679 = vst [vmem:[#allocation50_spill] sm:$0xff] %v5950_v30  ;;  %v5956_v61 = vpop.eup %5048  ;;  %v5958_v62 = vadd.f32 %v2486_v36, %v2485_v58  ;;  %v2478_v3 = vsel %vm1961_vm2, %v5950_v30, 0.0  ;;  %v2571_v2 = vsub.f32 2.0, %v2539_v57  ;;  %v5962_v14 = vadd.f32 %v2350_v48, %v2349_v21 }
 0x225   : > { %6680 = vst [vmem:[#allocation51_spill] sm:$0xff] %v5956_v61  ;;  %v2479_v5 = vrot.slane %v2478_v3, 4  ;;  %v2499_v37 = vsel %vm1961_vm2, %v5956_v61, 0.0  ;;  %v2570_v10 = vsub.f32 2.0, %v2538_v6  ;;  %5064 = vrcp.f32 %v5954_v38 }
 0x226   : > { %v2500_v25 = vrot.slane %v2499_v37, 4  ;;  %v2603_v8 = vmul.f32 %v5043_v51, %v2571_v2  ;;  %5066 = vrcp.f32 %v5962_v14  ;;  %v5968_v29 = vadd.f32 %v2357_v18, %v2356_v54 }
 0x227   : > { %v5970_v58 = vadd.f32 %v2479_v5, %v2478_v3  ;;  %v2602_v36 = vmul.f32 %v5045_v20, %v2570_v10  ;;  %v2362_v57 = vrot.slane %v5744_v11, 2  ;;  %v2369_v21 = vrot.slane %v5780_v49, 2 }
 0x228   : > { %v5051_v48 = vpop.eup %5050  ;;  %v5974_v23 = vadd.f32 %v2500_v25, %v2499_v37  ;;  %v2635_v6 = vmul.f32 %v5642_v45, %v2603_v8  ;;  %5068 = vrcp.f32 %v5968_v29  ;;  %v2376_v51 = vrot.slane %v5767_v42, 2 }
 0x229   : > { %v2634_v2 = vmul.f32 %v5648_v47, %v2602_v36  ;;  %v2540_v54 = vmul.f32 %v5051_v48, %v5910_v44  ;;  %v2363_v18 = vadd.f32 %v2362_v57, %v5744_v11  ;;  %v2370_v20 = vadd.f32 %v2369_v21, %v5780_v49 }
 0x22a   : > { %v5983_v3 = vpop.eup %5052  ;;  %v2377_v5 = vadd.f32 %v2376_v51, %v5767_v42  ;;  %v2383_v37 = vrot.slane %v5800_v46, 2  ;;  %v2390_v45 = vrot.slane %v5791_v33, 2  ;;  %v2397_v10 = vrot.slane %v5823_v9, 2 }
 0x22b   : > { %6681 = vst [vmem:[#allocation52_spill] sm:$0xff] %v5983_v3  ;;  %v5055_v25 = vpop.eup %5054  ;;  %v2492_v47 = vsel %vm1961_vm2, %v5983_v3, 0.0  ;;  %4789 = vmatprep.mubr.msk.f32.mxu0 %vm1961_vm2, %v2634_v2  ;;  %v2572_v44 = vsub.f32 2.0, %v2540_v54  ;;  %v2364_v11 = vrot.slane %v2363_v18, 1  ;;  %v2371_v8 = vrot.slane %v2370_v20, 1 }
 0x22c   : > { %v5057_v49 = vpop.eup %5056  ;;  %v2493_v36 = vrot.slane %v2492_v47, 4  ;;  %4790 = vmatmul.mubr.msk.f32.vlgmr.msra.gmra.mxu0 %vm1961_vm2, %v2635_v6  ;;  %v2541_v42 = vmul.f32 %v5055_v25, %v5919_v26  ;;  %v2378_v57 = vrot.slane %v2377_v5, 1  ;;  %v2384_v21 = vadd.f32 %v2383_v37, %v5800_v46 }
 0x22d   : > { %v5059_v51 = vpop.eup %5058  ;;  %v2604_v61 = vmul.f32 %v5051_v48, %v2572_v44  ;;  %v2542_v30 = vmul.f32 %v5057_v49, %v5921_v56  ;;  %v5996_v60 = vadd.f32 %v2364_v11, %v2363_v18  ;;  %v5998_v3 = vadd.f32 %v2371_v8, %v2370_v20 }
 0x22e   : > { %v6000_v2 = vadd.f32 %v2493_v36, %v2492_v47  ;;  %v2573_v54 = vsub.f32 2.0, %v2541_v42  ;;  %v2543_v32 = vmul.f32 %v5059_v51, %v5923_v31  ;;  %v6003_v43 = vadd.f32 %v2378_v57, %v2377_v5 }
 0x22f   : > { %v5061_v6 = vpop.eup %5060  ;;  %v2636_v26 = vmul.f32 %v5658_v35, %v2604_v61  ;;  %v2574_v16 = vsub.f32 2.0, %v2542_v30  ;;  %5070 = vrcp.f32 %v5996_v60  ;;  %v2385_v46 = vrot.slane %v2384_v21, 1 }
 0x230   : > { %v5063_v48 = vpop.eup %5062  ;;  %v2605_v56 = vmul.f32 %v5055_v25, %v2573_v54  ;;  %v2575_v18 = vsub.f32 2.0, %v2543_v32  ;;  %v2544_v20 = vmul.f32 %v5061_v6, %v5940_v34  ;;  %5072 = vrcp.f32 %v5998_v3 }
 0x231   : > { %4792 = vmatprep.mubr.msk.f32.mxu0 %vm1961_vm2, %v2636_v26  ;;  %v2606_v37 = vmul.f32 %v5057_v49, %v2574_v16  ;;  %v2545_v31 = vmul.f32 %v5063_v48, %v5945_v4  ;;  %5074 = vrcp.f32 %v6003_v43  ;;  %v6012_v5 = vadd.f32 %v2385_v46, %v2384_v21 }
 0x232   : > { %v5065_v35 = vpop.eup %5064  ;;  %v2637_v30 = vmul.f32 %v5652_v15, %v2605_v56  ;;  %v2607_v61 = vmul.f32 %v5059_v51, %v2575_v18  ;;  %v2576_v47 = vsub.f32 2.0, %v2544_v20  ;;  %v2391_v32 = vadd.f32 %v2390_v45, %v5791_v33 }
 0x233   : > { %v5067_v25 = vpop.eup %5066  ;;  %v2638_v34 = vmul.f32 %v5679_v17, %v2606_v37  ;;  %v2577_v44 = vsub.f32 2.0, %v2545_v31  ;;  %v2546_v11 = vmul.f32 %v5065_v35, %v5954_v38  ;;  %5076 = vrcp.f32 %v6012_v5 }
 0x234   : > { %4793 = vmatmul.mubr.msk.f32.gmra.mxu0 %vm1961_vm2, %v2637_v30  ;;  %v2639_v16 = vmul.f32 %v5669_v53, %v2607_v61  ;;  %v2608_v4 = vmul.f32 %v5061_v6, %v2576_v47  ;;  %v2547_v8 = vmul.f32 %v5067_v25, %v5962_v14  ;;  %v2392_v15 = vrot.slane %v2391_v32, 1 }
 0x235   : > { %v5069_v49 = vpop.eup %5068  ;;  %4795 = vmatprep.mubr.msk.f32.mxu0 %vm1961_vm2, %v2638_v34  ;;  %v2609_v33 = vmul.f32 %v5063_v48, %v2577_v44  ;;  %v2578_v45 = vsub.f32 2.0, %v2546_v11  ;;  %v2398_v17 = vadd.f32 %v2397_v10, %v5823_v9  ;;  %v2404_v36 = vrot.slane %v5811_v28, 2 }
 0x236   : > { %v2640_v38 = vmul.f32 %v5696_v12, %v2608_v4  ;;  %v2579_v42 = vsub.f32 2.0, %v2547_v8  ;;  %v2548_v57 = vmul.f32 %v5069_v49, %v5968_v29  ;;  %v6027_v21 = vadd.f32 %v2392_v15, %v2391_v32 }
 0x237   : > { %v2641_v53 = vmul.f32 %v5687_v24, %v2609_v33  ;;  %v2610_v14 = vmul.f32 %v5065_v35, %v2578_v45  ;;  %v2399_v51 = vrot.slane %v2398_v17, 1  ;;  %v2405_v54 = vadd.f32 %v2404_v36, %v5811_v28 }
 0x238   : > { %4796 = vmatmul.mubr.msk.f32.gmra.mxu0 %vm1961_vm2, %v2639_v16  ;;  %v2611_v6 = vmul.f32 %v5067_v25, %v2579_v42  ;;  %v2580_v26 = vsub.f32 2.0, %v2548_v57  ;;  %5078 = vrcp.f32 %v6027_v21  ;;  %v2411_v9 = vrot.slane %v5842_v39, 2  ;;  %v6682_v57 = vld [vmem:[#allocation35_spill] sm:$0xff] }
 0x239   : > { %4798 = vmatprep.mubr.msk.f32.mxu0 %vm1961_vm2, %v2640_v38  ;;  %v2642_v12 = vmul.f32 %v5722_v52, %v2610_v14  ;;  %v6036_v29 = vadd.f32 %v2399_v51, %v2398_v17  ;;  %v2406_v10 = vrot.slane %v2405_v54, 1  ;;  %v2418_v24 = vrot.slane %v5831_v50, 2 }
 0x23a   : > { %v2643_v46 = vmul.f32 %v5716_v27, %v2611_v6  ;;  %v2612_v28 = vmul.f32 %v5069_v49, %v2580_v26  ;;  %v2412_v48 = vadd.f32 %v2411_v9, %v5842_v39  ;;  %v2425_v56 = vrot.slane %v5861_v59, 2 }
 0x23b   : > { %5080 = vrcp.f32 %v6036_v29  ;;  %v6043_v18 = vadd.f32 %v2406_v10, %v2405_v54  ;;  %v2419_v20 = vadd.f32 %v2418_v24, %v5831_v50  ;;  %v2432_v52 = vrot.slane %v5853_v0, 2  ;;  %v6683_v54 = vld [vmem:[#allocation34_spill] sm:$0xff] }
 0x23c   : > { %v5071_v37 = vpop.eup %5070  ;;  %4799 = vmatmul.mubr.msk.f32.gmra.mxu0 %vm1961_vm2, %v2641_v53  ;;  %v2644_v31 = vmul.f32 %v5742_v40, %v2612_v28  ;;  %v2413_v35 = vrot.slane %v2412_v48, 1  ;;  %v2426_v27 = vadd.f32 %v2425_v56, %v5861_v59  ;;  %v2439_v39 = vrot.slane %v5881_v55, 2 }
 0x23d   : > { %v5073_v30 = vpop.eup %5072  ;;  %4801 = vmatprep.mubr.msk.f32.mxu0 %vm1961_vm2, %v2642_v12  ;;  %v2549_v61 = vmul.f32 %v5071_v37, %v5996_v60  ;;  %5082 = vrcp.f32 %v6043_v18  ;;  %v2420_v50 = vrot.slane %v2419_v20, 1  ;;  %v2433_v47 = vadd.f32 %v2432_v52, %v5853_v0 }
 0x23e   : > { %v5075_v32 = vpop.eup %5074  ;;  %v2550_v25 = vmul.f32 %v5073_v30, %v5998_v3  ;;  %v6056_v34 = vadd.f32 %v2413_v35, %v2412_v48  ;;  %v2427_v40 = vrot.slane %v2426_v27, 1  ;;  %v2440_v59 = vadd.f32 %v2439_v39, %v5881_v55 }
 0x23f   : > { %v2581_v44 = vsub.f32 2.0, %v2549_v61  ;;  %v2551_v11 = vmul.f32 %v5075_v32, %v6003_v43  ;;  %v6060_v16 = vadd.f32 %v2420_v50, %v2419_v20  ;;  %v2434_v4 = vrot.slane %v2433_v47, 1 }
 0x240   : > { %v5077_v60 = vpop.eup %5076  ;;  %4802 = vmatmul.mubr.msk.f32.gmra.mxu0 %vm1961_vm2, %v2643_v46  ;;  %v2582_v8 = vsub.f32 2.0, %v2550_v25  ;;  %5084 = vrcp.f32 %v6056_v34  ;;  %v6064_v0 = vadd.f32 %v2427_v40, %v2426_v27  ;;  %v2441_v3 = vrot.slane %v2440_v59, 1  ;;  %v6684_v46 = vld [vmem:[#allocation37_spill] sm:$0xff]  ;;  %v6685_v25 = vld [vmem:[#allocation36_spill] sm:$0xff] }
 0x241   : > { %4804 = vmatprep.mubr.msk.f32.mxu0 %vm1961_vm2, %v2644_v31  ;;  %v2613_v15 = vmul.f32 %v5071_v37, %v2581_v44  ;;  %v2583_v49 = vsub.f32 2.0, %v2551_v11  ;;  %v2552_v55 = vmul.f32 %v5077_v60, %v6012_v5  ;;  %5086 = vrcp.f32 %v6060_v16 }
 0x242   : > { %v2614_v43 = vmul.f32 %v5073_v30, %v2582_v8  ;;  %5088 = vrcp.f32 %v6064_v0  ;;  %v6070_v33 = vadd.f32 %v2434_v4, %v2433_v47  ;;  %v6072_v45 = vadd.f32 %v2441_v3, %v2440_v59 }
 0x243   : > { %v2645_v17 = vmul.f32 %v5731_v7, %v2613_v15  ;;  %v2615_v36 = vmul.f32 %v5075_v32, %v2583_v49  ;;  %v2584_v38 = vsub.f32 2.0, %v2552_v55  ;;  %v2446_v42 = vrot.slane %v5869_v1, 2  ;;  %v6686_v49 = vld [vmem:[#allocation39_spill] sm:$0xff] }
 0x244   : > { %v2646_v53 = vmul.f32 %v6682_v57, %v2614_v43  ;;  %5090 = vrcp.f32 %v6070_v33  ;;  %v2453_v5 = vrot.slane %v5907_v19, 2  ;;  %v2460_v14 = vrot.slane %v5888_v41, 2  ;;  %v6687_v57 = vld [vmem:[#allocation38_spill] sm:$0xff] }
 0x245   : > { %v5079_v51 = vpop.eup %5078  ;;  %4805 = vmatmul.mubr.msk.f32.gmra.mxu0 %vm1961_vm2, %v2645_v17  ;;  %v2647_v6 = vmul.f32 %v6683_v54, %v2615_v36  ;;  %v2616_v26 = vmul.f32 %v5077_v60, %v2584_v38  ;;  %5092 = vrcp.f32 %v6072_v45  ;;  %v2447_v7 = vadd.f32 %v2446_v42, %v5869_v1 }
 0x246   : > { %4807 = vmatprep.mubr.msk.f32.mxu0 %vm1961_vm2, %v2646_v53  ;;  %v2553_v9 = vmul.f32 %v5079_v51, %v6027_v21  ;;  %v2454_v12 = vadd.f32 %v2453_v5, %v5907_v19  ;;  %v2461_v10 = vadd.f32 %v2460_v14, %v5888_v41  ;;  %v2467_v24 = vrot.slane %v5937_v63, 2 }
 0x247   : > { %v2648_v28 = vmul.f32 %v6684_v46, %v2616_v26  ;;  %v2448_v48 = vrot.slane %v2447_v7, 1  ;;  %v2474_v56 = vrot.slane %v5913_v22, 2  ;;  %v2481_v20 = vrot.slane %v5970_v58, 2 }
 0x248   : > { %v5081_v52 = vpop.eup %5080  ;;  %v2585_v37 = vsub.f32 2.0, %v2553_v9  ;;  %v2455_v1 = vrot.slane %v2454_v12, 1  ;;  %v2462_v31 = vrot.slane %v2461_v10, 1  ;;  %v2468_v35 = vadd.f32 %v2467_v24, %v5937_v63 }
 0x249   : > { %4808 = vmatmul.mubr.msk.f32.gmra.mxu0 %vm1961_vm2, %v2647_v6  ;;  %v2554_v19 = vmul.f32 %v5081_v52, %v6036_v29  ;;  %v6095_v41 = vadd.f32 %v2448_v48, %v2447_v7  ;;  %v2475_v21 = vadd.f32 %v2474_v56, %v5913_v22  ;;  %v2482_v27 = vadd.f32 %v2481_v20, %v5970_v58  ;;  %v6689_v56 = vld [vmem:[#allocation40_spill] sm:$0xff] }
 0x24a   : > { %v5083_v39 = vpop.eup %5082  ;;  %4810 = vmatprep.mubr.msk.f32.mxu0 %vm1961_vm2, %v2648_v28  ;;  %v2617_v30 = vmul.f32 %v5079_v51, %v2585_v37  ;;  %v6100_v61 = vadd.f32 %v2455_v1, %v2454_v12  ;;  %v6102_v50 = vadd.f32 %v2462_v31, %v2461_v10  ;;  %v2469_v47 = vrot.slane %v2468_v35, 1  ;;  %v6688_v10 = vld [vmem:[#allocation41_spill] sm:$0xff]  ;;  %v6690_v1 = vld [vmem:[#allocation43_spill] sm:$0xff] }
 0x24b   : > { %v2586_v63 = vsub.f32 2.0, %v2554_v19  ;;  %v2555_v32 = vmul.f32 %v5083_v39, %v6043_v18  ;;  %5094 = vrcp.f32 %v6095_v41  ;;  %v2476_v29 = vrot.slane %v2475_v21, 1 }
 0x24c   : > { %v2649_v40 = vmul.f32 %v6685_v25, %v2617_v30  ;;  %5096 = vrcp.f32 %v6100_v61  ;;  %v6108_v22 = vadd.f32 %v2469_v47, %v2468_v35  ;;  %v2483_v58 = vrot.slane %v2482_v27, 1 }
 0x24d   : > { %v5085_v59 = vpop.eup %5084  ;;  %v2618_v44 = vmul.f32 %v5081_v52, %v2586_v63  ;;  %v2587_v11 = vsub.f32 2.0, %v2555_v32  ;;  %5098 = vrcp.f32 %v6102_v50  ;;  %v6111_v4 = vadd.f32 %v2476_v29, %v2475_v21 }
 0x24e   : > { %v5087_v60 = vpop.eup %5086  ;;  %4811 = vmatmul.mubr.msk.f32.gmra.mxu0 %vm1961_vm2, %v2649_v40  ;;  %v2556_v18 = vmul.f32 %v5085_v59, %v6056_v34  ;;  %5100 = vrcp.f32 %v6108_v22  ;;  %v6116_v8 = vadd.f32 %v2483_v58, %v2482_v27  ;;  %v2488_v3 = vrot.slane %v5958_v62, 2  ;;  %v6691_v27 = vld [vmem:[#allocation42_spill] sm:$0xff] }
 0x24f   : > { %v5089_v15 = vpop.eup %5088  ;;  %v2650_v55 = vmul.f32 %v6686_v49, %v2618_v44  ;;  %v2619_v43 = vmul.f32 %v5083_v39, %v2587_v11  ;;  %v2557_v17 = vmul.f32 %v5087_v60, %v6060_v16  ;;  %5102 = vrcp.f32 %v6111_v4 }
 0x250   : > { %v2588_v36 = vsub.f32 2.0, %v2556_v18  ;;  %v2558_v38 = vmul.f32 %v5089_v15, %v6064_v0  ;;  %5104 = vrcp.f32 %v6116_v8  ;;  %v2489_v34 = vadd.f32 %v2488_v3, %v5958_v62 }
 0x251   : > { %v5091_v42 = vpop.eup %5090  ;;  %4813 = vmatprep.mubr.msk.f32.mxu0 %vm1961_vm2, %v2650_v55  ;;  %v2651_v53 = vmul.f32 %v6687_v57, %v2619_v43  ;;  %v2589_v5 = vsub.f32 2.0, %v2557_v17  ;;  %v2495_v14 = vrot.slane %v6000_v2, 2  ;;  %v2502_v51 = vrot.slane %v5974_v23, 2  ;;  %v6695_v57 = vld [vmem:[#allocation45_spill] sm:$0xff] }
 0x252   : > { %v5093_v16 = vpop.eup %5092  ;;  %v2620_v54 = vmul.f32 %v5085_v59, %v2588_v36  ;;  %v2590_v6 = vsub.f32 2.0, %v2558_v38  ;;  %v2559_v26 = vmul.f32 %v5091_v42, %v6070_v33  ;;  %v2490_v0 = vrot.slane %v2489_v34, 1 }
 0x253   : > { %4814 = vmatmul.mubr.msk.f32.gmra.mxu0 %vm1961_vm2, %v2651_v53  ;;  %v2621_v7 = vmul.f32 %v5087_v60, %v2589_v5  ;;  %v2560_v62 = vmul.f32 %v5093_v16, %v6072_v45  ;;  %v2496_v9 = vadd.f32 %v2495_v14, %v6000_v2  ;;  %v2503_v12 = vadd.f32 %v2502_v51, %v5974_v23  ;;  %v6696_v51 = vld [vmem:[#allocation50_spill] sm:$0xff] }
 0x254   : > { %v2652_v24 = vmul.f32 %v6688_v10, %v2620_v54  ;;  %v2622_v46 = vmul.f32 %v5089_v15, %v2590_v6  ;;  %v2591_v28 = vsub.f32 2.0, %v2559_v26  ;;  %v2491_v48 = vadd.f32 %v2490_v0, %v2489_v34  ;;  %v6692_v15 = vld [vmem:[#allocation44_spill] sm:$0xff]  ;;  %v6697_v26 = vld [vmem:[#allocation47_spill] sm:$0xff] }
 0x255   : > { %v2653_v20 = vmul.f32 %v6689_v56, %v2621_v7  ;;  %v2592_v52 = vsub.f32 2.0, %v2560_v62  ;;  %v2497_v37 = vrot.slane %v2496_v9, 1  ;;  %v2504_v33 = vrot.slane %v2503_v12, 1  ;;  %v6699_v56 = vld [vmem:[#allocation52_spill] sm:$0xff] }
 0x256   : > { %4816 = vmatprep.mubr.msk.f32.mxu0 %vm1961_vm2, %v2652_v24  ;;  %v2654_v31 = vmul.f32 %v6690_v1, %v2622_v46  ;;  %v2623_v35 = vmul.f32 %v5091_v42, %v2591_v28  ;;  %5106 = vrcp.f32 %v2491_v48  ;;  %v6698_v24 = vld [vmem:[#allocation49_spill] sm:$0xff]  ;;  %v4973_v1 = vld [vmem:[%s6592_s8] sm:$0xff]  }
 0x257   : > { %4817 = vmatmul.mubr.msk.f32.gmra.mxu0 %vm1961_vm2, %v2653_v20  ;;  %v2624_v2 = vmul.f32 %v5093_v16, %v2592_v52  ;;  %v2498_v23 = vadd.f32 %v2497_v37, %v2496_v9  ;;  %v2505_v45 = vadd.f32 %v2504_v33, %v2503_v12  ;;  %v6700_v52 = vld [vmem:[#allocation51_spill] sm:$0xff] }
 0x258   : > { %v5095_v19 = vpop.eup %5094  ;;  %4819 = vmatprep.mubr.msk.f32.mxu0 %vm1961_vm2, %v2654_v31  ;;  %v2655_v39 = vmul.f32 %v6691_v27, %v2623_v35  ;;  %v4972_v33 = vld [vmem:[%s6592_s8 + $0x8] sm:$0xff]   ;;  %v5159_v31 = vmov 0.03125   ;;  %v6186_v35 = vld [vmem:[%s6591_s7] ss:$0 sm:$0xff] }
 0x259   : > { %v5097_v21 = vpop.eup %5096  ;;  %v2656_v30 = vmul.f32 %v5865_v13, %v2624_v2  ;;  %v2561_v47 = vmul.f32 %v5095_v19, %v6095_v41  ;;  %5108 = vrcp.f32 %v2498_v23  ;;  %4837 = vmatprep.subr.bf16.mxu1 %v4972_v33  ;;  %4845 = vmatprep.subr.mxu0 %v5159_v31  ;;  %v6701_v2 = vld [vmem:[#allocation5_spill] sm:$0xff] }
 0x25a   : > { %v5099_v63 = vpop.eup %5098  ;;  %v2562_v32 = vmul.f32 %v5097_v21, %v6100_v61  ;;  %5110 = vrcp.f32 %v2505_v45  ;;  %4838 = vmatpush3.bf16.msra.mxu1 %v4972_v33  ;;  %4846 = vmatpush3.msra.mxu0 %v5159_v31 }
 0x25b   : > { %v5101_v29 = vpop.eup %5100  ;;  %4820 = vmatmul.mubr.msk.f32.gmra.mxu0 %vm1961_vm2, %v2655_v39  ;;  %v2593_v25 = vsub.f32 2.0, %v2561_v47  ;;  %v2563_v40 = vmul.f32 %v5099_v63, %v6102_v50  ;;  %v6693_v50 = vld [vmem:[#allocation46_spill] sm:$0xff]  ;;  %4839 = vmatprep.subr.bf16.mxu1 %v4973_v1 }
 0x25c   : > { %v5103_v58 = vpop.eup %5102  ;;  %4822 = vmatprep.mubr.msk.f32.mxu0 %vm1961_vm2, %v2656_v30  ;;  %v2594_v59 = vsub.f32 2.0, %v2562_v32  ;;  %v2564_v44 = vmul.f32 %v5101_v29, %v6108_v22  ;;  %v6694_v22 = vld [vmem:[#allocation48_spill] sm:$0xff]  ;;  %4847 = vmatprep.subr.mxu0 %v5159_v31  ;;  %v6703_v39 = vld [vmem:[#allocation2_spill] sm:$0xff] }
 0x25d   : > { %v5105_v13 = vpop.eup %5104  ;;  %v2625_v11 = vmul.f32 %v5095_v19, %v2593_v25  ;;  %v2595_v41 = vsub.f32 2.0, %v2563_v40  ;;  %v2565_v60 = vmul.f32 %v5103_v58, %v6111_v4  ;;  %4848 = vmatpush3.msra.mxu0 %v5159_v31  ;;  %v6702_v19 = vld [vmem:[#allocation3_spill] sm:$0xff]  ;;  %v1097_v30 = vadd.f32 %v6703_v39, %v6186_v35 }
 0x25e   : > { %v2626_v18 = vmul.f32 %v5097_v21, %v2594_v59  ;;  %v2596_v61 = vsub.f32 2.0, %v2564_v44  ;;  %v2566_v3 = vmul.f32 %v5105_v13, %v6116_v8  ;;  %4840 = vmatpush3.bf16.msra.mxu1 %v4973_v1  ;;  %4849 = vmatprep.subr.mxu0 %v5159_v31  ;;  %v1089_v21 = vadd.f32 %v6186_v35, %v6702_v19  ;;  %v6706_v59 = vld [vmem:[#allocation7_spill] sm:$0xff] }
 0x25f   : > { %v2657_v49 = vmul.f32 %v6692_v15, %v2625_v11  ;;  %v2627_v55 = vmul.f32 %v5099_v63, %v2595_v41  ;;  %v2597_v43 = vsub.f32 2.0, %v2565_v60  ;;  %4859 = vmatprep.subr.mxu1 %v5159_v31  ;;  %4850 = vmatpush3.msra.mxu0 %v5159_v31  ;;  %v6704_v63 = vld [vmem:[#allocation4_spill] sm:$0xff]  ;;  %v1105_v44 = vadd.f32 %v6186_v35, %v6706_v59  ;;  %v6708_v41 = vld [vmem:[#allocation9_spill] sm:$0xff]  ;;  %v6710_v15 = vld [vmem:[#allocation11_spill] sm:$0xff] }
 0x260   : > { %v2658_v17 = vmul.f32 %v6693_v50, %v2626_v18  ;;  %v2628_v36 = vmul.f32 %v5101_v29, %v2596_v61  ;;  %v2598_v38 = vsub.f32 2.0, %v2566_v3  ;;  %4851 = vmatprep.subr.mxu0 %v5159_v31  ;;  %v1100_v32 = vadd.f32 %v6704_v63, %v6186_v35  ;;  %v6705_v29 = vld [vmem:[#allocation6_spill] sm:$0xff]  ;;  %v6727_v63 = vld [vmem:[#allocation28_spill] sm:$0xff] }
 0x261   : > { %4823 = vmatmul.mubr.msk.f32.gmra.mxu0 %vm1961_vm2, %v2657_v49  ;;  %v2659_v53 = vmul.f32 %v6695_v57, %v2627_v55  ;;  %v2629_v5 = vmul.f32 %v5103_v58, %v2597_v43  ;;  %v6198_v25 = vadd.f32 %v6705_v29, %v6186_v35  ;;  %v1108_v60 = vadd.f32 %v6186_v35, %v6708_v41  ;;  %v6709_v61 = vld [vmem:[#allocation10_spill] sm:$0xff]  ;;  %v6711_v55 = vld [vmem:[#allocation12_spill] sm:$0xff] }
 0x262   : > { %4825 = vmatprep.mubr.msk.f32.mxu0 %vm1961_vm2, %v2658_v17  ;;  %v2660_v34 = vmul.f32 %v6694_v22, %v2628_v36  ;;  %v2630_v42 = vmul.f32 %v5105_v13, %v2598_v38  ;;  %4852 = vmatpush3.msra.mxu0 %v5159_v31  ;;  %v6707_v13 = vld [vmem:[#allocation8_spill] sm:$0xff]  ;;  %v6209_v3 = vadd.f32 %v6709_v61, %v6186_v35  ;;  %v6712_v17 = vld [vmem:[#allocation13_spill] sm:$0xff]  ;;  %v6713_v38 = vld [vmem:[#allocation14_spill] sm:$0xff] }
 0x263   : > { %v5107_v4 = vpop.eup %5106  ;;  %v2661_v0 = vmul.f32 %v6697_v26, %v2629_v5  ;;  %v1116_v11 = vadd.f32 %v6707_v13, %v6186_v35  ;;  %v6213_v49 = vadd.f32 %v6186_v35, %v6710_v15  ;;  %v6217_v43 = vadd.f32 %v6711_v55, %v6186_v35  ;;  %v6719_v26 = vld [vmem:[#allocation20_spill] sm:$0xff]  ;;  %v6728_v13 = vld [vmem:[#allocation29_spill] sm:$0xff] }
 0x264   : > { %v2567_v8 = vmul.f32 %v5107_v4, %v2491_v48  ;;  %v2662_v16 = vmul.f32 %v6696_v51, %v2630_v42  ;;  %v6222_v36 = vadd.f32 %v6186_v35, %v6712_v17  ;;  %v6226_v22 = vadd.f32 %v6713_v38, %v6186_v35  ;;  %v6717_v51 = vld [vmem:[#allocation18_spill] sm:$0xff] }
 0x265   : > { %4826 = vmatmul.mubr.msk.f32.gmra.mxu0 %vm1961_vm2, %v2659_v53  ;;  %v6715_v53 = vld [vmem:[#allocation16_spill] sm:$0xff]  ;;  %v6287_v41 = vadd.f32 %v6186_v35, %v6728_v13 }
 0x266   : > { %v5109_v14 = vpop.eup %5108  ;;  %4828 = vmatprep.mubr.msk.f32.mxu0 %vm1961_vm2, %v2660_v34  ;;  %v2599_v54 = vsub.f32 2.0, %v2567_v8  ;;  %v6234_v5 = vadd.f32 %v6715_v53, %v6186_v35  ;;  %v6716_v8 = vld [vmem:[#allocation17_spill] sm:$0xff]  ;;  %v6731_v53 = vld [vmem:[#allocation32_spill] sm:$0xff] }
 0x267   : > { %v5111_v6 = vpop.eup %5110  ;;  %v2568_v7 = vmul.f32 %v5109_v14, %v2498_v23  ;;  %v1092_v23 = vadd.f32 %v6186_v35, %v6701_v2 }
 0x268   : > { %v2631_v62 = vmul.f32 %v5107_v4, %v2599_v54  ;;  %v2569_v9 = vmul.f32 %v5111_v6, %v2505_v45  ;;  %v6714_v4 = vld [vmem:[#allocation15_spill] sm:$0xff] }
 0x269   : > { %4829 = vmatmul.mubr.msk.f32.gmra.mxu0 %vm1961_vm2, %v2661_v0  ;;  %v2600_v12 = vsub.f32 2.0, %v2568_v7  ;;  %v6230_v57 = vadd.f32 %v6186_v35, %v6714_v4  ;;  %v6718_v54 = vld [vmem:[#allocation19_spill] sm:$0xff]  ;;  %v6250_v0 = vadd.f32 %v6719_v26, %v6186_v35 }
 0x26a   : > { %4831 = vmatprep.mubr.msk.f32.mxu0 %vm1961_vm2, %v2662_v16  ;;  %v2601_v10 = vsub.f32 2.0, %v2569_v9  ;;  %v2663_v46 = vmul.f32 %v6698_v24, %v2631_v62  ;;  %v6242_v16 = vadd.f32 %v6717_v51, %v6186_v35  ;;  %v6721_v24 = vld [vmem:[#allocation22_spill] sm:$0xff] }
 0x26b   : > { %v2632_v28 = vmul.f32 %v5109_v14, %v2600_v12  ;;  %v6238_v14 = vadd.f32 %v6186_v35, %v6716_v8  ;;  %v6720_v12 = vld [vmem:[#allocation21_spill] sm:$0xff]  ;;  %v6300_v8 = vadd.f32 %v6731_v53, %v6186_v35 }
 0x26c   : > { %v2633_v48 = vmul.f32 %v5111_v6, %v2601_v10  ;;  %v6246_v6 = vadd.f32 %v6186_v35, %v6718_v54  ;;  %v6254_v10 = vadd.f32 %v6186_v35, %v6720_v12 }
 0x26d   : > { %4832 = vmatmul.mubr.msk.f32.gmra.mxu0 %vm1961_vm2, %v2663_v46  ;;  %v2664_v20 = vmul.f32 %v6699_v56, %v2632_v28  ;;  %v6258_v46 = vadd.f32 %v6721_v24, %v6186_v35  ;;  %v6722_v28 = vld [vmem:[#allocation23_spill] sm:$0xff] }
 0x26e   : > { %v2665_v37 = vmul.f32 %v6700_v52, %v2633_v48  ;;  %v6262_v48 = vadd.f32 %v6186_v35, %v6722_v28 }
 0x26f   : > { %4834 = vmatprep.mubr.msk.f32.mxu0 %vm1961_vm2, %v2664_v20  ;;  %v6723_v20 = vld [vmem:[#allocation24_spill] sm:$0xff] }
 0x270   : > { %v6266_v52 = vadd.f32 %v6723_v20, %v6186_v35 }
 0x271   : > { %4835 = vmatmul.mubr.msk.f32.gmra.mxu0 %vm1961_vm2, %v2665_v37  ;;  %v6724_v37 = vld [vmem:[#allocation25_spill] sm:$0xff] }
 0x272   : > { %v6270_v33 = vadd.f32 %v6186_v35, %v6724_v37 }
 0x2ec   : > { %v4791_v45 = vpop.f32.mrf.mxu0 }
 0x2ed   : > { %v2992_v27 = vmul.f32 %v4791_v45, %v1092_v23  ;;  %v6725_v45 = vld [vmem:[#allocation26_spill] sm:$0xff] }
 0x2ee   : > { %v2832_v47 = vpop.f32.mrf.mxu0  ;;  %v6274_v19 = vadd.f32 %v6725_v45, %v6186_v35 }
 0x2ef   : > { %v3030_v40 = vsel %vm663_vm0, %v2992_v27, 0.0  ;;  %v2991_v58 = vmul.f32 %v2832_v47, %v1089_v21  ;;  %v6726_v21 = vld [vmem:[#allocation27_spill] sm:$0xff] }
 0x2f0   : > { %v3031_v18 = vrot.slane %v3030_v40, 4  ;;  %v6278_v27 = vadd.f32 %v6186_v35, %v6726_v21 }
 0x2f1   : > { %v3023_v50 = vsel %vm663_vm0, %v2991_v58, 0.0 }
 0x2f2   : > { %v3032_v34 = vadd.f32 %v3031_v18, %v3030_v40  ;;  %v3024_v42 = vrot.slane %v3023_v50, 4  ;;  %v6729_v18 = vld [vmem:[#allocation30_spill] sm:$0xff] }
 0x2f3   : > { %v6291_v61 = vadd.f32 %v6729_v18, %v6186_v35 }
 0x2f4   : > { %v3033_v7 = vrot.slane %v3032_v34, 2  ;;  %v3025_v62 = vadd.f32 %v3024_v42, %v3023_v50  ;;  %v4794_v9 = vpop.f32.mrf.mxu0  ;;  %v6730_v42 = vld [vmem:[#allocation31_spill] sm:$0xff] }
 0x2f5   : > { %v2994_v56 = vmul.f32 %v4794_v9, %v1100_v32  ;;  %v6283_v32 = vadd.f32 %v6727_v63, %v6186_v35  ;;  %v6296_v4 = vadd.f32 %v6186_v35, %v6730_v42 }
 0x2f6   : > { %v3034_v1 = vadd.f32 %v3033_v7, %v3032_v34  ;;  %v3026_v2 = vrot.slane %v3025_v62, 2  ;;  %v2842_v23 = vpop.f32.mrf.mxu0 }
 0x2f7   : > { %v3044_v39 = vsel %vm663_vm0, %v2994_v56, 0.0  ;;  %v2993_v47 = vmul.f32 %v2842_v23, %v1097_v30 }
 0x2f8   : > { %v3035_v29 = vrot.slane %v3034_v1, 1  ;;  %v3027_v40 = vadd.f32 %v3026_v2, %v3025_v62  ;;  %v3045_v58 = vrot.slane %v3044_v39, 4  ;;  %v4797_v59 = vpop.f32.mrf.mxu0 }
 0x2f9   : > { %v3037_v15 = vsel %vm663_vm0, %v2993_v47, 0.0  ;;  %v2996_v55 = vmul.f32 %v4797_v59, %v1108_v60 }
 0x2fa   : > { %v3036_v30 = vadd.f32 %v3035_v29, %v3034_v1  ;;  %v3028_v50 = vrot.slane %v3027_v40, 1  ;;  %v3046_v17 = vadd.f32 %v3045_v58, %v3044_v39  ;;  %v3038_v38 = vrot.slane %v3037_v15, 4  ;;  %v2852_v34 = vpop.f32.mrf.mxu0 }
 0x2fb   : > { %v3058_v51 = vsel %vm663_vm0, %v2996_v55, 0.0  ;;  %v2995_v54 = vmul.f32 %v2852_v34, %v1105_v44 }
 0x2fc   : > { %v3248_v26 = vpack.c.bf16 %v3036_v30, %v3036_v30  ;;  %v3029_v7 = vadd.f32 %v3028_v50, %v3027_v40  ;;  %v3047_v62 = vrot.slane %v3046_v17, 2  ;;  %v3039_v60 = vadd.f32 %v3038_v38, %v3037_v15  ;;  %v4800_v9 = vpop.f32.mrf.mxu0 }
 0x2fd   : > { %v3059_v12 = vrot.slane %v3058_v51, 4  ;;  %v3051_v24 = vsel %vm663_vm0, %v2995_v54, 0.0  ;;  %v2998_v28 = vmul.f32 %v4800_v9, %v1116_v11 }
 0x2fe   : > { %v3323_v56 = vunpack.c.l.b16 %v3248_v26  ;;  %v3247_v20 = vpack.c.bf16 %v3029_v7, %v3029_v7  ;;  %v3048_v37 = vadd.f32 %v3047_v62, %v3046_v17  ;;  %v3040_v1 = vrot.slane %v3039_v60, 2  ;;  %v2862_v2 = vpop.f32.mrf.mxu0 }
 0x2ff   : > { %v3060_v23 = vadd.f32 %v3059_v12, %v3058_v51  ;;  %v3052_v45 = vrot.slane %v3051_v24, 4  ;;  %v3072_v44 = vsel %vm663_vm0, %v2998_v28, 0.0  ;;  %v2997_v21 = vmul.f32 %v2862_v2, %v6198_v25 }
 0x300   : > { %v3322_v39 = vunpack.c.l.b16 %v3247_v20  ;;  %v3049_v47 = vrot.slane %v3048_v37, 1  ;;  %v3041_v63 = vadd.f32 %v3040_v1, %v3039_v60  ;;  %v3073_v29 = vrot.slane %v3072_v44, 4  ;;  %v4803_v40 = vpop.f32.mrf.mxu0 }
 0x301   : > { %v3061_v58 = vrot.slane %v3060_v23, 2  ;;  %v3053_v11 = vadd.f32 %v3052_v45, %v3051_v24  ;;  %v3065_v59 = vsel %vm663_vm0, %v2997_v21, 0.0  ;;  %v3000_v13 = vmul.f32 %v4803_v40, %v6222_v36 }
 0x302   : > { %v3355_v18 = vsel %vm3354_vm3, %v3323_v56, %v3322_v39  ;;  %v3050_v15 = vadd.f32 %v3049_v47, %v3048_v37  ;;  %v3042_v55 = vrot.slane %v3041_v63, 1  ;;  %v3074_v30 = vadd.f32 %v3073_v29, %v3072_v44  ;;  %v2872_v50 = vpop.f32.mrf.mxu0 }
 0x303   : > { %v3062_v17 = vadd.f32 %v3061_v58, %v3060_v23  ;;  %v3054_v25 = vrot.slane %v3053_v11, 2  ;;  %v3066_v38 = vrot.slane %v3065_v59, 4  ;;  %v3086_v34 = vsel %vm663_vm0, %v3000_v13, 0.0  ;;  %v6732_v13 = vld [vmem:[#allocation33_spill] sm:$0xff] }
 0x304   : > { %v3250_v42 = vpack.c.bf16 %v3050_v15, %v3050_v15  ;;  %v3043_v53 = vadd.f32 %v3042_v55, %v3041_v63  ;;  %v3075_v51 = vrot.slane %v3074_v30, 2  ;;  %v3087_v54 = vrot.slane %v3086_v34, 4 }
 0x305   : > { %v3063_v26 = vrot.slane %v3062_v17, 1  ;;  %v3055_v7 = vadd.f32 %v3054_v25, %v3053_v11  ;;  %v3067_v62 = vadd.f32 %v3066_v38, %v3065_v59  ;;  %v2999_v36 = vmul.f32 %v2872_v50, %v6213_v49  ;;  %v4806_v60 = vpop.f32.mrf.mxu0 }
 0x306   : > { %v3325_v9 = vunpack.c.l.b16 %v3250_v42  ;;  %v3249_v12 = vpack.c.bf16 %v3043_v53, %v3043_v53  ;;  %v3076_v24 = vadd.f32 %v3075_v51, %v3074_v30  ;;  %v3088_v28 = vadd.f32 %v3087_v54, %v3086_v34 }
 0x307   : > { %v3064_v56 = vadd.f32 %v3063_v26, %v3062_v17  ;;  %v3056_v20 = vrot.slane %v3055_v7, 1  ;;  %v3068_v37 = vrot.slane %v3067_v62, 2  ;;  %v3079_v1 = vsel %vm663_vm0, %v2999_v36, 0.0  ;;  %v2882_v2 = vpop.f32.mrf.mxu0 }
 0x308   : > { %v3324_v23 = vunpack.c.l.b16 %v3249_v12  ;;  %v3077_v45 = vrot.slane %v3076_v24, 1  ;;  %v3089_v44 = vrot.slane %v3088_v28, 2  ;;  %v3080_v21 = vrot.slane %v3079_v1, 4 }
 0x309   : > { %v3252_v39 = vpack.c.bf16 %v3064_v56, %v3064_v56  ;;  %v3057_v47 = vadd.f32 %v3056_v20, %v3055_v7  ;;  %v3069_v63 = vadd.f32 %v3068_v37, %v3067_v62  ;;  %v3002_v49 = vmul.f32 %v4806_v60, %v6217_v43  ;;  %v4809_v29 = vpop.f32.mrf.mxu0 }
 0x30a   : > { %v3357_v40 = vsel %vm3356_vm4, %v3324_v23, %v3355_v18  ;;  %v3078_v58 = vadd.f32 %v3077_v45, %v3076_v24  ;;  %v3090_v11 = vadd.f32 %v3089_v44, %v3088_v28  ;;  %v3081_v59 = vadd.f32 %v3080_v21, %v3079_v1 }
 0x30b   : > { %v6316_v15 = vadd.f32 %v6186_v35, %v6732_v13  ;;  %v3251_v55 = vpack.c.bf16 %v3057_v47, %v3057_v47  ;;  %v3359_v30 = vsel %vm3358_vm5, %v3325_v9, %v3357_v40  ;;  %v3070_v50 = vrot.slane %v3069_v63, 1  ;;  %v2892_v17 = vpop.f32.mrf.mxu0 }
 0x30c   : > { %v3091_v25 = vrot.slane %v3090_v11, 1  ;;  %v3082_v38 = vrot.slane %v3081_v59, 2  ;;  %v3100_v43 = vsel %vm663_vm0, %v3002_v49, 0.0  ;;  %v3254_v42 = vpack.c.bf16 %v3078_v58, %v3078_v58 }
 0x30d   : > { %v3326_v34 = vunpack.c.l.b16 %v3251_v55  ;;  %v3101_v18 = vrot.slane %v3100_v43, 4  ;;  %v3001_v53 = vmul.f32 %v2882_v2, %v6209_v3  ;;  %v6321_v51 = vunpack.c.l.b16 %v3252_v39 }
 0x30e   : > { %v3092_v54 = vadd.f32 %v3091_v25, %v3090_v11  ;;  %v3083_v35 = vadd.f32 %v3082_v38, %v3081_v59  ;;  %v3004_v26 = vmul.f32 %v4809_v29, %v6238_v14  ;;  %v4812_v7 = vpop.f32.mrf.mxu0  ;;  %v6327_v36 = vadd.f32 %v3070_v50, %v3069_v63 }
 0x30f   : > { %v6325_v62 = vsel %vm3360_vm6, %v3326_v34, %v3359_v30  ;;  %v3102_v60 = vadd.f32 %v3101_v18, %v3100_v43  ;;  %v3093_v9 = vsel %vm663_vm0, %v3001_v53, 0.0  ;;  %v6331_v20 = vunpack.c.l.b16 %v3254_v42 }
 0x310   : > { %v3256_v12 = vpack.c.bf16 %v3092_v54, %v3092_v54  ;;  %v3084_v24 = vrot.slane %v3083_v35, 1  ;;  %v3094_v28 = vrot.slane %v3093_v9, 4  ;;  %v3114_v3 = vsel %vm663_vm0, %v3004_v26, 0.0  ;;  %v2902_v56 = vpop.f32.mrf.mxu0 }
 0x311   : > { %v3103_v37 = vrot.slane %v3102_v60, 2  ;;  %v3115_v1 = vrot.slane %v3114_v3, 4  ;;  %v3003_v14 = vmul.f32 %v2892_v17, %v6230_v57  ;;  %v3006_v44 = vmul.f32 %v4812_v7, %v6234_v5 }
 0x312   : > { %v3331_v2 = vunpack.c.l.b16 %v3256_v12  ;;  %v3085_v23 = vadd.f32 %v3084_v24, %v3083_v35  ;;  %v3095_v45 = vadd.f32 %v3094_v28, %v3093_v9  ;;  %v3005_v63 = vmul.f32 %v2902_v56, %v6226_v22 }
 0x313   : > { %v3104_v21 = vadd.f32 %v3103_v37, %v3102_v60  ;;  %v3116_v39 = vadd.f32 %v3115_v1, %v3114_v3  ;;  %v3107_v47 = vsel %vm663_vm0, %v3003_v14, 0.0  ;;  %v4815_v49 = vpop.f32.mrf.mxu0  ;;  %v3128_v11 = vsel %vm663_vm0, %v3006_v44, 0.0 }
 0x314   : > { %v3255_v29 = vpack.c.bf16 %v3085_v23, %v3085_v23  ;;  %v3096_v40 = vrot.slane %v3095_v45, 2  ;;  %v3108_v58 = vrot.slane %v3107_v47, 4  ;;  %v3129_v57 = vrot.slane %v3128_v11, 4 }
 0x315   : > { %v3105_v59 = vrot.slane %v3104_v21, 1  ;;  %v3117_v13 = vrot.slane %v3116_v39, 2  ;;  %v3121_v55 = vsel %vm663_vm0, %v3005_v63, 0.0  ;;  %v2912_v30 = vpop.f32.mrf.mxu0  ;;  %v3008_v22 = vmul.f32 %v4815_v49, %v6254_v10 }
 0x316   : > { %v3330_v50 = vunpack.c.l.b16 %v3255_v29  ;;  %v3097_v5 = vadd.f32 %v3096_v40, %v3095_v45  ;;  %v3109_v17 = vadd.f32 %v3108_v58, %v3107_v47  ;;  %v3122_v25 = vrot.slane %v3121_v55, 4 }
 0x317   : > { %v3106_v38 = vadd.f32 %v3105_v59, %v3104_v21  ;;  %v3118_v43 = vadd.f32 %v3117_v13, %v3116_v39  ;;  %v3130_v34 = vadd.f32 %v3129_v57, %v3128_v11  ;;  %v4818_v42 = vpop.f32.mrf.mxu0  ;;  %v3253_v26 = vpack.c.bf16 %v6327_v36, %v6327_v36 }
 0x318   : > { %v3368_v18 = vsel %vm3354_vm3, %v3331_v2, %v3330_v50  ;;  %v3098_v53 = vrot.slane %v3097_v5, 1  ;;  %v3110_v54 = vrot.slane %v3109_v17, 2  ;;  %v3123_v35 = vadd.f32 %v3122_v25, %v3121_v55 }
 0x319   : > { %v3119_v7 = vrot.slane %v3118_v43, 1  ;;  %v3131_v60 = vrot.slane %v3130_v34, 2  ;;  %v3142_v9 = vsel %vm663_vm0, %v3008_v22, 0.0  ;;  %v2922_v12 = vpop.f32.mrf.mxu0  ;;  %v3258_v37 = vpack.c.bf16 %v3106_v38, %v3106_v38 }
 0x31a   : > { %v3099_v24 = vadd.f32 %v3098_v53, %v3097_v5  ;;  %v3111_v28 = vadd.f32 %v3110_v54, %v3109_v17  ;;  %v3124_v3 = vrot.slane %v3123_v35, 2  ;;  %v3143_v56 = vrot.slane %v3142_v9, 4 }
 0x31b   : > { %v3120_v10 = vadd.f32 %v3119_v7, %v3118_v43  ;;  %v3132_v1 = vadd.f32 %v3131_v60, %v3130_v34  ;;  %v3007_v14 = vmul.f32 %v2912_v30, %v6246_v6  ;;  %v4821_v2 = vpop.f32.mrf.mxu0  ;;  %v3010_v63 = vmul.f32 %v4818_v42, %v6250_v0 }
 0x31c   : > { %v3257_v23 = vpack.c.bf16 %v3099_v24, %v3099_v24  ;;  %v3112_v45 = vrot.slane %v3111_v28, 1  ;;  %v3125_v44 = vadd.f32 %v3124_v3, %v3123_v35  ;;  %v3144_v21 = vadd.f32 %v3143_v56, %v3142_v9 }
 0x31d   : > { %v3260_v36 = vpack.c.bf16 %v3120_v10, %v3120_v10  ;;  %v3133_v39 = vrot.slane %v3132_v1, 1  ;;  %v3135_v47 = vsel %vm663_vm0, %v3007_v14, 0.0  ;;  %v2932_v49 = vpop.f32.mrf.mxu0  ;;  %v3333_v59 = vunpack.c.l.b16 %v3258_v37 }
 0x31e   : > { %v3332_v29 = vunpack.c.l.b16 %v3257_v23  ;;  %v3113_v40 = vadd.f32 %v3112_v45, %v3111_v28  ;;  %v3126_v58 = vrot.slane %v3125_v44, 1  ;;  %v3145_v11 = vrot.slane %v3144_v21, 2 }
 0x31f   : > { %v6347_v13 = vadd.f32 %v3133_v39, %v3132_v1  ;;  %v3136_v6 = vrot.slane %v3135_v47, 4  ;;  %v3156_v57 = vsel %vm663_vm0, %v3010_v63, 0.0  ;;  %v6353_v17 = vunpack.c.l.b16 %v3253_v26 }
 0x320   : > { %v3369_v55 = vsel %vm3356_vm4, %v3332_v29, %v3368_v18  ;;  %v3259_v30 = vpack.c.bf16 %v3113_v40, %v3113_v40  ;;  %v6351_v50 = vadd.f32 %v3126_v58, %v3125_v44  ;;  %v3146_v5 = vadd.f32 %v3145_v11, %v3144_v21 }
 0x321   : > { %v3370_v0 = vsel %vm3358_vm5, %v3333_v59, %v3369_v55  ;;  %v3137_v25 = vadd.f32 %v3136_v6, %v3135_v47  ;;  %v3157_v38 = vrot.slane %v3156_v57, 4  ;;  %v4824_v43 = vpop.f32.mrf.mxu0  ;;  %v6356_v34 = vunpack.c.l.b16 %v3260_v36 }
 0x322   : > { %v3334_v22 = vunpack.c.l.b16 %v3259_v30  ;;  %v3147_v42 = vrot.slane %v3146_v5, 1  ;;  %v3009_v53 = vmul.f32 %v2922_v12, %v6242_v16  ;;  %v3262_v18 = vpack.c.bf16 %v6347_v13, %v6347_v13 }
 0x323   : > { %v3138_v54 = vrot.slane %v3137_v25, 2  ;;  %v3158_v35 = vadd.f32 %v3157_v38, %v3156_v57  ;;  %v3012_v7 = vmul.f32 %v4821_v2, %v6270_v33  ;;  %v2942_v26 = vpop.f32.mrf.mxu0  ;;  %v3261_v9 = vpack.c.bf16 %v6351_v50, %v6351_v50 }
 0x324   : > { %v6363_v60 = vsel %vm3360_vm6, %v3334_v22, %v3370_v0  ;;  %v3148_v24 = vadd.f32 %v3147_v42, %v3146_v5  ;;  %v3149_v28 = vsel %vm663_vm0, %v3009_v53, 0.0  ;;  %v3011_v33 = vmul.f32 %v2932_v49, %v6262_v48 }
 0x325   : > { %v3139_v3 = vadd.f32 %v3138_v54, %v3137_v25  ;;  %v3159_v56 = vrot.slane %v3158_v35, 2  ;;  %v3150_v16 = vrot.slane %v3149_v28, 4  ;;  %v3170_v12 = vsel %vm663_vm0, %v3012_v7, 0.0  ;;  %v4827_v37 = vpop.f32.mrf.mxu0 }
 0x326   : > { %v3264_v10 = vpack.c.bf16 %v3148_v24, %v3148_v24  ;;  %v3171_v1 = vrot.slane %v3170_v12, 4  ;;  %v3014_v14 = vmul.f32 %v4824_v43, %v6266_v52  ;;  %v3013_v44 = vmul.f32 %v2942_v26, %v6258_v46 }
 0x327   : > { %v3140_v2 = vrot.slane %v3139_v3, 1  ;;  %v3160_v23 = vadd.f32 %v3159_v56, %v3158_v35  ;;  %v3151_v45 = vadd.f32 %v3150_v16, %v3149_v28  ;;  %v2952_v21 = vpop.f32.mrf.mxu0  ;;  %v3163_v47 = vsel %vm663_vm0, %v3011_v33, 0.0 }
 0x328   : > { %v3339_v36 = vunpack.c.l.b16 %v3264_v10  ;;  %v3172_v39 = vadd.f32 %v3171_v1, %v3170_v12  ;;  %v3184_v63 = vsel %vm663_vm0, %v3014_v14, 0.0  ;;  %v3164_v11 = vrot.slane %v3163_v47, 4 }
 0x329   : > { %v3141_v29 = vadd.f32 %v3140_v2, %v3139_v3  ;;  %v3161_v40 = vrot.slane %v3160_v23, 1  ;;  %v3152_v58 = vrot.slane %v3151_v45, 2  ;;  %v4830_v59 = vpop.f32.mrf.mxu0  ;;  %v3185_v49 = vrot.slane %v3184_v63, 4 }
 0x32a   : > { %v3173_v48 = vrot.slane %v3172_v39, 2  ;;  %v3177_v52 = vsel %vm663_vm0, %v3013_v44, 0.0  ;;  %v3016_v6 = vmul.f32 %v4827_v37, %v6287_v41  ;;  %v3165_v30 = vadd.f32 %v3164_v11, %v3163_v47 }
 0x32b   : > { %v3263_v57 = vpack.c.bf16 %v3141_v29, %v3141_v29  ;;  %v3162_v46 = vadd.f32 %v3161_v40, %v3160_v23  ;;  %v3153_v55 = vadd.f32 %v3152_v58, %v3151_v45  ;;  %v3186_v5 = vadd.f32 %v3185_v49, %v3184_v63  ;;  %v2962_v53 = vpop.f32.mrf.mxu0 }
 0x32c   : > { %v3174_v50 = vadd.f32 %v3173_v48, %v3172_v39  ;;  %v3178_v0 = vrot.slane %v3177_v52, 4  ;;  %v3198_v25 = vsel %vm663_vm0, %v3016_v6, 0.0  ;;  %v3166_v42 = vrot.slane %v3165_v30, 2 }
 0x32d   : > { %v3338_v38 = vunpack.c.l.b16 %v3263_v57  ;;  %v3266_v43 = vpack.c.bf16 %v3162_v46, %v3162_v46  ;;  %v3154_v22 = vrot.slane %v3153_v55, 1  ;;  %v3187_v35 = vrot.slane %v3186_v5, 2  ;;  %v4833_v2 = vpop.f32.mrf.mxu0 }
 0x32e   : > { %v3175_v54 = vrot.slane %v3174_v50, 1  ;;  %v3179_v7 = vadd.f32 %v3178_v0, %v3177_v52  ;;  %v3199_v26 = vrot.slane %v3198_v25, 4  ;;  %v6377_v41 = vunpack.c.l.b16 %v3261_v9 }
 0x32f   : > { %v3375_v24 = vsel %vm3354_vm3, %v3339_v36, %v3338_v38  ;;  %v3155_v28 = vadd.f32 %v3154_v22, %v3153_v55  ;;  %v3167_v3 = vadd.f32 %v3166_v42, %v3165_v30  ;;  %v3188_v16 = vadd.f32 %v3187_v35, %v3186_v5  ;;  %v2972_v48 = vpop.f32.mrf.mxu0 }
 0x330   : > { %v3176_v56 = vadd.f32 %v3175_v54, %v3174_v50  ;;  %v3180_v12 = vrot.slane %v3179_v7, 2  ;;  %v3200_v37 = vadd.f32 %v3199_v26, %v3198_v25  ;;  %v3015_v33 = vmul.f32 %v2952_v21, %v6278_v27 }
 0x331   : > { %v3265_v10 = vpack.c.bf16 %v3155_v28, %v3155_v28  ;;  %v3168_v1 = vrot.slane %v3167_v3, 1  ;;  %v3018_v14 = vmul.f32 %v4830_v59, %v6283_v32  ;;  %v3341_v23 = vunpack.c.l.b16 %v3266_v43  ;;  %v4836_v35 = vpop.f32.mrf.mxu0 }
 0x332   : > { %v3189_v9 = vrot.slane %v3188_v16, 1  ;;  %v3181_v45 = vadd.f32 %v3180_v12, %v3179_v7  ;;  %v3201_v44 = vrot.slane %v3200_v37, 2  ;;  %v3191_v47 = vsel %vm663_vm0, %v3015_v33, 0.0 }
 0x333   : > { %v3340_v36 = vunpack.c.l.b16 %v3265_v10  ;;  %v3169_v39 = vadd.f32 %v3168_v1, %v3167_v3  ;;  %v3212_v63 = vsel %vm663_vm0, %v3018_v14, 0.0  ;;  %v3268_v29 = vpack.c.bf16 %v3176_v56, %v3176_v56  ;;  %v2982_v33 = vpop.f32.mrf.mxu0 }
 0x334   : > { %v3190_v40 = vadd.f32 %v3189_v9, %v3188_v16  ;;  %v3182_v58 = vrot.slane %v3181_v45, 1  ;;  %v3202_v11 = vadd.f32 %v3201_v44, %v3200_v37  ;;  %v3192_v32 = vrot.slane %v3191_v47, 4 }
 0x335   : > { %v3376_v27 = vsel %vm3356_vm4, %v3340_v36, %v3375_v24  ;;  %v3267_v21 = vpack.c.bf16 %v3169_v39, %v3169_v39  ;;  %v3213_v59 = vrot.slane %v3212_v63, 4  ;;  %v3017_v50 = vmul.f32 %v2962_v53, %v6274_v19 }
 0x336   : > { %v3377_v49 = vsel %vm3358_vm5, %v3341_v23, %v3376_v27  ;;  %v3270_v52 = vpack.c.bf16 %v3190_v40, %v3190_v40  ;;  %v3183_v6 = vadd.f32 %v3182_v58, %v3181_v45  ;;  %v3203_v57 = vrot.slane %v3202_v11, 1 }
 0x337   : > { %v3342_v46 = vunpack.c.l.b16 %v3267_v21  ;;  %v3193_v55 = vadd.f32 %v3192_v32, %v3191_v47  ;;  %v3214_v30 = vadd.f32 %v3213_v59, %v3212_v63  ;;  %v3343_v5 = vunpack.c.l.b16 %v3268_v29 }
 0x338   : > { %v3345_v0 = vunpack.c.l.b16 %v3270_v52  ;;  %v3269_v25 = vpack.c.bf16 %v3183_v6, %v3183_v6  ;;  %v3363_v38 = vsel %vm3362_vm7, %v6321_v51, %v6325_v62  ;;  %v3205_v54 = vsel %vm663_vm0, %v3017_v50, 0.0 }
 0x339   : > { %v3378_v43 = vsel %vm3360_vm6, %v3342_v46, %v3377_v49  ;;  %v3194_v22 = vrot.slane %v3193_v55, 2  ;;  %v3215_v42 = vrot.slane %v3214_v30, 2  ;;  %v3204_v24 = vadd.f32 %v3203_v57, %v3202_v11 }
 0x33a   : > { %v3344_v7 = vunpack.c.l.b16 %v3269_v25  ;;  %v3379_v26 = vsel %vm3362_vm7, %v3343_v5, %v3378_v43  ;;  %v3206_v28 = vrot.slane %v3205_v54, 4  ;;  %v3365_v3 = vsel %vm3364_vm8, %v6353_v17, %v3363_v38 }
 0x33b   : > { %v3195_v19 = vadd.f32 %v3194_v22, %v3193_v55  ;;  %v3216_v53 = vadd.f32 %v3215_v42, %v3214_v30  ;;  %v3372_v51 = vsel %vm3362_vm7, %v6356_v34, %v6363_v60  ;;  %v3337_v62 = vunpack.c.l.b16 %v3262_v18 }
 0x33c   : > { %v3380_v56 = vsel %vm3364_vm8, %v3344_v7, %v3379_v26  ;;  %v3207_v16 = vadd.f32 %v3206_v28, %v3205_v54  ;;  %v3367_v12 = vsel %vm3366_vm9, %v6331_v20, %v3365_v3  ;;  %v3373_v1 = vsel %vm3364_vm8, %v6377_v41, %v3372_v51 }
 0x33d   : > { %v3196_v37 = vrot.slane %v3195_v19, 1  ;;  %v3217_v10 = vrot.slane %v3216_v53, 1  ;;  %v6407_v17 = vsel %vm3366_vm9, %v3345_v0, %v3380_v56  ;;  %v3374_v60 = vsel %vm3366_vm9, %v3337_v62, %v3373_v1 }
 0x33e   : > { %v3208_v34 = vrot.slane %v3207_v16, 2  ;;  %v3020_v13 = vmul.f32 %v4833_v2, %v6316_v15  ;;  %v3019_v18 = vmul.f32 %v2972_v48, %v6296_v4  ;;  %v3272_v14 = vpack.c.bf16 %v3204_v24, %v3204_v24 }
 0x33f   : > { %v3197_v23 = vadd.f32 %v3196_v37, %v3195_v19  ;;  %v3389_v9 = vpack.c.b16 %v3374_v60, %v3367_v12  ;;  %v3022_v20 = vmul.f32 %v4836_v35, %v6300_v8  ;;  %v3021_v36 = vmul.f32 %v2982_v33, %v6291_v61 }
 0x340   : > { %v3209_v45 = vadd.f32 %v3208_v34, %v3207_v16  ;;  %v3226_v44 = vsel %vm663_vm0, %v3020_v13, 0.0  ;;  %v3219_v41 = vsel %vm663_vm0, %v3019_v18, 0.0  ;;  %v3218_v47 = vadd.f32 %v3217_v10, %v3216_v53 }
 0x341   : > { %v3271_v39 = vpack.c.bf16 %v3197_v23, %v3197_v23  ;;  %4841 = vmatprep.mubr.msk.bf16.mxu1 %vm663_vm0, %v3389_v9  ;;  %v3227_v63 = vrot.slane %v3226_v44, 4  ;;  %v3220_v15 = vrot.slane %v3219_v41, 4  ;;  %v3240_v4 = vsel %vm663_vm0, %v3022_v20, 0.0  ;;  %v5144_v9 = vld [vmem:[%s5287_s21] sm:$0xff] }
 0x342   : > { %v3210_v2 = vrot.slane %v3209_v45, 1  ;;  %v3233_v29 = vsel %vm663_vm0, %v3021_v36, 0.0  ;;  %v3347_v40 = vunpack.c.l.b16 %v3272_v14  ;;  %v3241_v21 = vrot.slane %v3240_v4, 4 }
 0x343   : > { %v3346_v8 = vunpack.c.l.b16 %v3271_v39  ;;  %v3228_v58 = vadd.f32 %v3227_v63, %v3226_v44  ;;  %v3221_v11 = vadd.f32 %v3220_v15, %v3219_v41  ;;  %v3234_v32 = vrot.slane %v3233_v29, 4  ;;  %v5145_v39 = vld [vmem:[%s5287_s21 + $0x8] sm:$0xff]  ;;  %v5146_v63 = vld [vmem:[%s5287_s21 + $0x10] sm:$0xff] }
 0x344   : > { %v3211_v27 = vadd.f32 %v3210_v2, %v3209_v45  ;;  %v3274_v59 = vpack.c.bf16 %v3218_v47, %v3218_v47  ;;  %v3242_v6 = vadd.f32 %v3241_v21, %v3240_v4  ;;  %v5147_v2 = vld [vmem:[%s5287_s21 + $0x18] sm:$0xff] }
 0x345   : > { %v3382_v61 = vsel %vm3354_vm3, %v3347_v40, %v3346_v8  ;;  %v3229_v48 = vrot.slane %v3228_v58, 2  ;;  %v3222_v49 = vrot.slane %v3221_v11, 2  ;;  %v3235_v57 = vadd.f32 %v3234_v32, %v3233_v29 }
 0x346   : > { %v3273_v52 = vpack.c.bf16 %v3211_v27, %v3211_v27  ;;  %v3243_v50 = vrot.slane %v3242_v6, 2  ;;  %v3349_v0 = vunpack.c.l.b16 %v3274_v59 }
 0x347   : > { %v3230_v46 = vadd.f32 %v3229_v48, %v3228_v58  ;;  %v3223_v55 = vadd.f32 %v3222_v49, %v3221_v11  ;;  %v3236_v5 = vrot.slane %v3235_v57, 2 }
 0x348   : > { %v3348_v30 = vunpack.c.l.b16 %v3273_v52  ;;  %v3244_v22 = vadd.f32 %v3243_v50, %v3242_v6  ;;  %v4974_v52 = vld [vmem:[%s6596_s12 + $0x8] sm:$0xff]   ;;  %v4975_v6 = vld [vmem:[%s6596_s12] sm:$0xff]  }
 0x349   : > { %v3231_v25 = vrot.slane %v3230_v46, 1  ;;  %v3224_v38 = vrot.slane %v3223_v55, 1  ;;  %v3237_v42 = vadd.f32 %v3236_v5, %v3235_v57  ;;  %4873 = vmatprep.subr.bf16.mxu0 %v4974_v52 }
 0x34a   : > { %v3383_v43 = vsel %vm3356_vm4, %v3348_v30, %v3382_v61  ;;  %v3245_v26 = vrot.slane %v3244_v22, 1 }
 0x34b   : > { %v3232_v54 = vadd.f32 %v3231_v25, %v3230_v46  ;;  %v3225_v35 = vadd.f32 %v3224_v38, %v3223_v55  ;;  %v3384_v7 = vsel %vm3358_vm5, %v3349_v0, %v3383_v43  ;;  %v3238_v24 = vrot.slane %v3237_v42, 1  ;;  %v4464_v43 = vld [vmem:[%s6594_s10] ss:$0 sm:$0xff] }
 0x34c   : > { %v3246_v53 = vadd.f32 %v3245_v26, %v3244_v22  ;;  %v4465_v26 = vld [vmem:[%s6595_s11] ss:$0 sm:$0xff] }
 0x34d   : > { %v3276_v28 = vpack.c.bf16 %v3232_v54, %v3232_v54  ;;  %v3275_v19 = vpack.c.bf16 %v3225_v35, %v3225_v35  ;;  %v3239_v3 = vadd.f32 %v3238_v24, %v3237_v42 }
 0x34e   : > { %v3278_v62 = vpack.c.bf16 %v3246_v53, %v3246_v53 }
 0x34f   : > { %v3350_v51 = vunpack.c.l.b16 %v3275_v19  ;;  %v3277_v56 = vpack.c.bf16 %v3239_v3, %v3239_v3  ;;  %v3351_v16 = vunpack.c.l.b16 %v3276_v28 }
 0x350   : > { %v3353_v10 = vunpack.c.l.b16 %v3278_v62 }
 0x351   : > { %v3385_v12 = vsel %vm3360_vm6, %v3350_v51, %v3384_v7  ;;  %v3352_v37 = vunpack.c.l.b16 %v3277_v56 }
 0x352   : > { %v3386_v1 = vsel %vm3362_vm7, %v3351_v16, %v3385_v12 }
 0x353   : > { %v3387_v33 = vsel %vm3364_vm8, %v3352_v37, %v3386_v1  ;;  %v4976_v1 = vld [vmem:[%s6598_s14 + $0x38] sm:$0xff]  }
 0x354   : > { %v3388_v34 = vsel %vm3366_vm9, %v3353_v10, %v3387_v33  ;;  %v4977_v33 = vld [vmem:[%s6598_s14 + $0x30] sm:$0xff]  }
 0x355   : > { %v3390_v60 = vpack.c.b16 %v3388_v34, %v6407_v17  ;;  %v4451_v17 = vld [vmem:[%s6593_s9] ss:$0 sm:$0xff]  ;;  %v4978_v34 = vld [vmem:[%s6598_s14 + $0x28] sm:$0xff]  }
 0x357   : > { %4842 = vmatmul.mubr.msk.bf16.vlgmr.msra.gmra.mxu1 %vm663_vm0, %v3390_v60  ;;  %v4979_v60 = vld [vmem:[%s6598_s14 + $0x20] sm:$0xff]  }
 0x358   : > { %4860 = vmatpush3.msra.mxu1 %v5159_v31 }
 0x359   : > { %4861 = vmatprep.subr.mxu1 %v5159_v31 }
 0x35a   : > { %4862 = vmatpush3.msra.mxu1 %v5159_v31 }
 0x35b   : > { %4863 = vmatprep.subr.mxu1 %v5159_v31 }
 0x35c   : > { %4864 = vmatpush3.msra.mxu1 %v5159_v31 }
 0x35d   : > { %4865 = vmatprep.subr.mxu1 %v5159_v31 }
 0x35e   : > { %4866 = vmatpush3.msra.mxu1 %v5159_v31 }
 0x35f   : > { %4881 = vmatprep.subr.bf16.mxu1 %v4976_v1 }
 0x417   : > { %v4843_v13 = vpop.f32.mrf.mxu1 }
 0x418   : > { %v3452_v45 = vadd.f32 %v4843_v13, %v4451_v17  ;;  %v4980_v13 = vld [vmem:[%s6598_s14 + $0x18] sm:$0xff]  }
 0x419   : > { %v3443_v18 = vpop.f32.mrf.mxu1 }
 0x41a   : > { %v3444_v14 = vadd.f32 %v4451_v17, %v3443_v18  ;;  %v3460_v15 = vadd.f32 %v5146_v63, %v3452_v45  ;;  %v4982_v18 = vld [vmem:[%s6598_s14 + $0x8] sm:$0xff]  }
 0x41b   : > { %v4844_v23 = vpop.f32.mrf.mxu1 }
 0x41c   : > { %v3458_v20 = vadd.f32 %v5144_v9, %v3444_v14  ;;  %v3455_v36 = vadd.f32 %v4844_v23, %v4451_v17  ;;  %v4983_v14 = vld [vmem:[%s6598_s14] sm:$0xff]  }
 0x41d   : > { %v3446_v44 = vpop.f32.mrf.mxu1  ;;  %v4466_v23 = vld [vmem:[%s6597_s13] ss:$0 sm:$0xff] }
 0x41e   : > { %v3447_v41 = vadd.f32 %v4451_v17, %v3446_v44  ;;  %4853 = vmatprep.mubr.msk.f32.mxu0 %vm663_vm0, %v3458_v20  ;;  %v3461_v4 = vadd.f32 %v5147_v2, %v3455_v36  ;;  %v4981_v17 = vld [vmem:[%s6598_s14 + $0x10] sm:$0xff]  }
 0x420   : > { %v3459_v47 = vadd.f32 %v5145_v39, %v3447_v41 }
 0x422   : > { %4854 = vmatmul.mubr.msk.f32.vlgmr.msra.gmra.mxu0 %vm663_vm0, %v3459_v47 }
 0x423   : > { %4856 = vmatprep.mubr.msk.f32.mxu0 %vm663_vm0, %v3460_v15  ;;  %4874 = vmatpush3.bf16.msra.mxu0 %v4974_v52 }
 0x424   : > { %4875 = vmatprep.subr.bf16.mxu0 %v4975_v6 }
 0x426   : > { %4857 = vmatmul.mubr.msk.f32.gmra.mxu0 %vm663_vm0, %v3461_v4 }
 0x427   : > { %4876 = vmatpush3.bf16.msra.mxu0 %v4975_v6 }
 0x428   : > { %4901 = vmatprep.subr.mxu0 %v5159_v31 }
 0x4e2   : > { %v4855_v29 = vpop.f32.mrf.mxu0 }
 0x4e3   : > { %v3562_v40 = vsub.f32 %v3459_v47, %v4855_v29 }
 0x4e4   : > { %v3542_v8 = vpop.f32.mrf.mxu0 }
 0x4e5   : > { %v3561_v58 = vsub.f32 %v3458_v20, %v3542_v8  ;;  %v3566_v21 = vmul.f32 %v3562_v40, %v3562_v40 }
 0x4e6   : > { %v4858_v11 = vpop.f32.mrf.mxu0 }
 0x4e7   : > { %v3565_v27 = vmul.f32 %v3561_v58, %v3561_v58  ;;  %v3564_v32 = vsub.f32 %v3461_v4, %v4858_v11 }
 0x4e8   : > { %v3552_v61 = vpop.f32.mrf.mxu0 }
 0x4e9   : > { %v3563_v59 = vsub.f32 %v3460_v15, %v3552_v61  ;;  %4867 = vmatprep.mubr.msk.f32.mxu1 %vm663_vm0, %v3565_v27  ;;  %v3568_v49 = vmul.f32 %v3564_v32, %v3564_v32 }
 0x4ea   : > { %4868 = vmatmul.mubr.msk.f32.vlgmr.msra.gmra.mxu1 %vm663_vm0, %v3566_v21 }
 0x4eb   : > { %v3567_v48 = vmul.f32 %v3563_v59, %v3563_v59  ;;  %4882 = vmatpush3.bf16.msra.mxu1 %v4976_v1 }
 0x4ec   : > { %4883 = vmatprep.subr.bf16.mxu1 %v4977_v33 }
 0x4ed   : > { %4870 = vmatprep.mubr.msk.f32.mxu1 %vm663_vm0, %v3567_v48 }
 0x4ee   : > { %4871 = vmatmul.mubr.msk.f32.gmra.mxu1 %vm663_vm0, %v3568_v49 }
 0x4ef   : > { %4884 = vmatpush3.bf16.msra.mxu1 %v4977_v33 }
 0x4f0   : > { %4885 = vmatprep.subr.bf16.mxu1 %v4978_v34 }
 0x4f3   : > { %4886 = vmatpush3.bf16.msra.mxu1 %v4978_v34 }
 0x4f4   : > { %4887 = vmatprep.subr.bf16.mxu1 %v4979_v60 }
 0x4f7   : > { %4888 = vmatpush3.bf16.msra.mxu1 %v4979_v60 }
 0x4f8   : > { %4889 = vmatprep.subr.bf16.mxu1 %v4980_v13 }
 0x4fb   : > { %4890 = vmatpush3.bf16.msra.mxu1 %v4980_v13 }
 0x4fc   : > { %4891 = vmatprep.subr.bf16.mxu1 %v4981_v17 }
 0x4ff   : > { %4892 = vmatpush3.bf16.msra.mxu1 %v4981_v17 }
 0x500   : > { %4893 = vmatprep.subr.bf16.mxu1 %v4982_v18 }
 0x503   : > { %4894 = vmatpush3.bf16.msra.mxu1 %v4982_v18 }
 0x504   : > { %4895 = vmatprep.subr.bf16.mxu1 %v4983_v14 }
 0x507   : > { %4896 = vmatpush3.bf16.msra.mxu1 %v4983_v14 }
 0x5aa   : > { %v4869_v57 = vpop.f32.mrf.mxu1 }
 0x5ab   : > { %v3653_v46 = vadd.f32 1e-05, %v4869_v57 }
 0x5ac   : > { %v3647_v55 = vpop.f32.mrf.mxu1 }
 0x5ad   : > { %5112 = vrsqrt.f32 %v3653_v46  ;;  %v3648_v30 = vadd.f32 1e-05, %v3647_v55 }
 0x5ae   : > { %v4872_v50 = vpop.f32.mrf.mxu1 }
 0x5af   : > { %5114 = vrsqrt.f32 %v3648_v30  ;;  %v3663_v5 = vadd.f32 1e-05, %v4872_v50 }
 0x5b0   : > { %v3657_v0 = vpop.f32.mrf.mxu1 }
 0x5b1   : > { %5116 = vrsqrt.f32 %v3663_v5  ;;  %v3658_v25 = vadd.f32 1e-05, %v3657_v0 }
 0x5b3   : > { %5118 = vrsqrt.f32 %v3658_v25 }
 0x5ba   : > { %v5113_v38 = vpop.eup %5112 }
 0x5bb   : > { %v3671_v22 = vmul.f32 %v5113_v38, %v3562_v40 }
 0x5bc   : > { %v5115_v42 = vpop.eup %5114 }
 0x5bd   : > { %v3670_v54 = vmul.f32 %v5115_v42, %v3561_v58  ;;  %v3681_v35 = vmul.f32 %v4464_v43, %v3671_v22 }
 0x5be   : > { %v5117_v7 = vpop.eup %5116 }
 0x5bf   : > { %v3673_v24 = vmul.f32 %v5117_v7, %v3564_v32  ;;  %v3680_v28 = vmul.f32 %v4464_v43, %v3670_v54  ;;  %v6465_v62 = vadd.f32 %v4465_v26, %v3681_v35 }
 0x5c0   : > { %v5119_v19 = vpop.eup %5118 }
 0x5c1   : > { %v3672_v53 = vmul.f32 %v5119_v19, %v3563_v59  ;;  %v3683_v3 = vmul.f32 %v4464_v43, %v3673_v24  ;;  %v6463_v51 = vadd.f32 %v4465_v26, %v3680_v28 }
 0x5c3   : > { %v3682_v56 = vmul.f32 %v4464_v43, %v3672_v53  ;;  %v3694_v16 = vpack.c.bf16 %v6465_v62, %v6463_v51  ;;  %v6471_v37 = vadd.f32 %v4465_v26, %v3683_v3 }
 0x5c5   : > { %v6469_v12 = vadd.f32 %v4465_v26, %v3682_v56  ;;  %4877 = vmatprep.mubr.msk.bf16.mxu0 %vm663_vm0, %v3694_v16 }
 0x5c7   : > { %v3695_v10 = vpack.c.bf16 %v6471_v37, %v6469_v12 }
 0x5c9   : > { %4878 = vmatmul.mubr.msk.bf16.vlgmr.msra.gmra.mxu0 %vm663_vm0, %v3695_v10 }
 0x5ca   : > { %4902 = vmatpush3.msra.mxu0 %v5159_v31 }
 0x5cb   : > { %4903 = vmatprep.subr.mxu0 %v5159_v31 }
 0x5cc   : > { %4904 = vmatpush3.msra.mxu0 %v5159_v31 }
 0x5cd   : > { %4905 = vmatprep.subr.mxu0 %v5159_v31 }
 0x5ce   : > { %4906 = vmatpush3.msra.mxu0 %v5159_v31 }
 0x5cf   : > { %4907 = vmatprep.subr.mxu0 %v5159_v31 }
 0x5d0   : > { %4908 = vmatpush3.msra.mxu0 %v5159_v31 }
 0x5d1   : > { %4915 = vmatprep.subr.mxu0 %v5159_v31 }
 0x689   : > { %v4879_v9 = vpop.f32.mrf.mxu0 }
 0x68a   : > { %v6512_v20 = vadd.f32 %v4879_v9, %v4466_v23 }
 0x68b   : > { %v3759_v45 = vpop.f32.mrf.mxu0 }
 0x68c   : > { %v6515_v44 = vmul.f32 0.70710677, %v6512_v20  ;;  %v6517_v41 = vadd.f32 %v4466_v23, %v3759_v45 }
 0x68d   : > { %v4880_v36 = vpop.f32.mrf.mxu0 }
 0x68e   : > { %v3792_v39 = vand.u32 2147483647, %v6515_v44  ;;  %v6521_v47 = vmul.f32 0.70710677, %v6517_v41  ;;  %v6523_v63 = vadd.f32 %v4880_v36, %v4466_v23  ;;  %vm3784_vm10 = vcmp.ge.f32.partialorder %v6515_v44, 0.0 }
 0x68f   : > { %v3762_v15 = vpop.f32.mrf.mxu0 }
 0x690   : > { %v3796_v2 = vmul.f32 0.3275911, %v3792_v39  ;;  %v3790_v4 = vand.u32 2147483647, %v6521_v47  ;;  %v6527_v29 = vmul.f32 0.70710677, %v6523_v63  ;;  %v6529_v40 = vadd.f32 %v4466_v23, %v3762_v15 }
 0x691   : > { %v3848_v52 = vsub.f32 0.0, %v3792_v39  ;;  %vm3782_vm11 = vcmp.ge.f32.partialorder %v6521_v47, 0.0 }
 0x692   : > { %v3800_v8 = vadd.f32 1.0, %v3796_v2  ;;  %v3794_v58 = vmul.f32 0.3275911, %v3790_v4  ;;  %v3793_v11 = vand.u32 2147483647, %v6527_v29  ;;  %v3846_v6 = vsub.f32 0.0, %v3790_v4 }
 0x693   : > { %v6533_v27 = vmul.f32 0.70710677, %v6529_v40  ;;  %v3852_v57 = vmul.f32 %v3848_v52, %v3792_v39  ;;  %vm3785_vm12 = vcmp.ge.f32.partialorder %v6527_v29, 0.0 }
 0x694   : > { %5120 = vrcp.f32 %v3800_v8  ;;  %v3798_v21 = vadd.f32 1.0, %v3794_v58  ;;  %v3797_v32 = vmul.f32 0.3275911, %v3793_v11  ;;  %v3849_v46 = vsub.f32 0.0, %v3793_v11 }
 0x695   : > { %v3791_v61 = vand.u32 2147483647, %v6533_v27  ;;  %v3850_v30 = vmul.f32 %v3846_v6, %v3790_v4  ;;  %v3858_v0 = vmul.f32 1.442695, %v3852_v57  ;;  %vm3783_vm13 = vcmp.ge.f32.partialorder %v6533_v27, 0.0 }
 0x696   : > { %5122 = vrcp.f32 %v3798_v21  ;;  %v3801_v59 = vadd.f32 1.0, %v3797_v32  ;;  %v3853_v25 = vmul.f32 %v3849_v46, %v3793_v11 }
 0x697   : > { %v3795_v48 = vmul.f32 0.3275911, %v3791_v61  ;;  %v3847_v5 = vsub.f32 0.0, %v3791_v61  ;;  %v3854_v42 = vmul.f32 1.442695, %v3850_v30 }
 0x698   : > { %5124 = vrcp.f32 %v3801_v59  ;;  %v3860_v28 = vmul.f32 1.442695, %v3853_v25 }
 0x699   : > { %v3799_v49 = vadd.f32 1.0, %v3795_v48  ;;  %v3851_v7 = vmul.f32 %v3847_v5, %v3791_v61 }
 0x69b   : > { %5126 = vrcp.f32 %v3799_v49  ;;  %v3856_v1 = vmul.f32 1.442695, %v3851_v7 }
 0x69c   : > { %5128 = vpow2.f32 %v3858_v0 }
 0x69d   : > { %5130 = vpow2.f32 %v3854_v42 }
 0x69e   : > { %5132 = vpow2.f32 %v3860_v28 }
 0x69f   : > { %5134 = vpow2.f32 %v3856_v1  ;;  %v3776_v1 = vmul.f32 0.5, %v6512_v20 }
 0x6a1   : > { %v5121_v55 = vpop.eup %5120 }
 0x6a2   : > { %v3812_v50 = vmul.f32 1.0614054, %v5121_v55 }
 0x6a3   : > { %v5123_v38 = vpop.eup %5122 }
 0x6a4   : > { %v3816_v43 = vadd.f32 -1.4531521, %v3812_v50  ;;  %v3810_v22 = vmul.f32 1.0614054, %v5123_v38 }
 0x6a5   : > { %v5125_v54 = vpop.eup %5124 }
 0x6a6   : > { %v3820_v35 = vmul.f32 %v5121_v55, %v3816_v43  ;;  %v3814_v26 = vadd.f32 -1.4531521, %v3810_v22  ;;  %v3813_v24 = vmul.f32 1.0614054, %v5125_v54  ;;  %v5160_v43 = vmov -1.0  }
 0x6a7   : > { %v3786_v22 = vsel %vm3782_vm11, 1.0, %v5160_v43  ;;  %v3789_v7 = vsel %vm3785_vm12, 1.0, %v5160_v43  ;;  %v3787_v28 = vsel %vm3783_vm13, 1.0, %v5160_v43 }
 0x6a8   : > { %v3824_v19 = vadd.f32 1.4214138, %v3820_v35  ;;  %v5127_v53 = vpop.eup %5126  ;;  %v3818_v3 = vmul.f32 %v5123_v38, %v3814_v26  ;;  %v3817_v56 = vadd.f32 -1.4531521, %v3813_v24 }
 0x6a9   : > { %v3811_v10 = vmul.f32 1.0614054, %v5127_v53  ;;  %v5129_v21 = vpop.eup %5128 }
 0x6aa   : > { %v3828_v16 = vmul.f32 %v5121_v55, %v3824_v19  ;;  %v3822_v33 = vadd.f32 1.4214138, %v3818_v3  ;;  %v3821_v34 = vmul.f32 %v5125_v54, %v3817_v56  ;;  %v5131_v49 = vpop.eup %5130  ;;  %v3774_v56 = vmul.f32 0.5, %v6517_v41 }
 0x6ab   : > { %v3815_v13 = vadd.f32 -1.4531521, %v3811_v10  ;;  %v5133_v46 = vpop.eup %5132 }
 0x6ac   : > { %v3832_v60 = vadd.f32 -0.28449672, %v3828_v16  ;;  %v3826_v17 = vmul.f32 %v5123_v38, %v3822_v33  ;;  %v3825_v18 = vadd.f32 1.4214138, %v3821_v34  ;;  %v5135_v25 = vpop.eup %5134  ;;  %v3775_v16 = vmul.f32 0.5, %v6529_v40 }
 0x6ad   : > { %v3819_v23 = vmul.f32 %v5127_v53, %v3815_v13 }
 0x6ae   : > { %v3836_v14 = vmul.f32 %v5121_v55, %v3832_v60  ;;  %v3830_v9 = vadd.f32 -0.28449672, %v3826_v17  ;;  %v3829_v45 = vmul.f32 %v5125_v54, %v3825_v18 }
 0x6af   : > { %v3823_v39 = vadd.f32 1.4214138, %v3819_v23 }
 0x6b0   : > { %v3840_v36 = vadd.f32 0.2548296, %v3836_v14  ;;  %v3834_v15 = vmul.f32 %v5123_v38, %v3830_v9  ;;  %v3833_v2 = vadd.f32 -0.28449672, %v3829_v45 }
 0x6b1   : > { %v3827_v8 = vmul.f32 %v5127_v53, %v3823_v39 }
 0x6b2   : > { %v3844_v4 = vmul.f32 %v5121_v55, %v3840_v36  ;;  %v3838_v58 = vadd.f32 0.2548296, %v3834_v15  ;;  %v3837_v11 = vmul.f32 %v5125_v54, %v3833_v2 }
 0x6b3   : > { %v3831_v32 = vadd.f32 -0.28449672, %v3827_v8 }
 0x6b4   : > { %v3864_v61 = vmul.f32 %v5129_v21, %v3844_v4  ;;  %v3842_v59 = vmul.f32 %v5123_v38, %v3838_v58  ;;  %v3841_v48 = vadd.f32 0.2548296, %v3837_v11  ;;  %v3788_v38 = vsel %vm3784_vm10, 1.0, %v5160_v43 }
 0x6b5   : > { %v3835_v52 = vmul.f32 %v5127_v53, %v3831_v32 }
 0x6b6   : > { %v3862_v6 = vmul.f32 %v5131_v49, %v3842_v59  ;;  %v3845_v57 = vmul.f32 %v5125_v54, %v3841_v48  ;;  %v3868_v50 = vsub.f32 1.0, %v3864_v61 }
 0x6b7   : > { %v3839_v30 = vadd.f32 0.2548296, %v3835_v52 }
 0x6b8   : > { %v3866_v55 = vsub.f32 1.0, %v3862_v6  ;;  %v3865_v5 = vmul.f32 %v5133_v46, %v3845_v57  ;;  %v3872_v44 = vmul.f32 %v3868_v50, %v3788_v38 }
 0x6b9   : > { %v3843_v0 = vmul.f32 %v5127_v53, %v3839_v30  ;;  %v3777_v53 = vmul.f32 0.5, %v6523_v63  ;;  %v4471_v63 = vld [vmem:[%s6599_s15] ss:$0 sm:$0xff] }
 0x6ba   : > { %v3869_v42 = vsub.f32 1.0, %v3865_v5  ;;  %v3870_v35 = vmul.f32 %v3866_v55, %v3786_v22  ;;  %v3876_v29 = vadd.f32 1.0, %v3872_v44  ;;  %v4488_v55 = vld [vmem:[%s6600_s16] ss:$0 sm:$0xff] }
 0x6bb   : > { %v3863_v54 = vmul.f32 %v5135_v25, %v3843_v0  ;;  %v4489_v22 = vld [vmem:[%s6601_s17] ss:$0 sm:$0xff] }
 0x6bc   : > { %v3873_v26 = vmul.f32 %v3869_v42, %v3789_v7  ;;  %v3874_v19 = vadd.f32 1.0, %v3870_v35  ;;  %v3880_v60 = vmul.f32 %v3876_v29, %v3776_v1 }
 0x6bd   : > { %v3867_v47 = vsub.f32 1.0, %v3863_v54 }
 0x6be   : > { %v3877_v24 = vadd.f32 1.0, %v3873_v26  ;;  %v3878_v27 = vmul.f32 %v3874_v19, %v3774_v56 }
 0x6bf   : > { %v3871_v3 = vmul.f32 %v3867_v47, %v3787_v28 }
 0x6c0   : > { %v3881_v33 = vmul.f32 %v3877_v24, %v3777_v53 }
 0x6c1   : > { %v3875_v10 = vadd.f32 1.0, %v3871_v3 }
 0x6c2   : > { %v3883_v17 = vpack.c.bf16 %v3881_v33, %v3880_v60 }
 0x6c3   : > { %v3879_v34 = vmul.f32 %v3875_v10, %v3775_v16 }
 0x6c5   : > { %v3882_v13 = vpack.c.bf16 %v3879_v34, %v3878_v27 }
 0x6c7   : > { %4897 = vmatprep.mubr.bf16.mxu1 %v3882_v13 }
 0x6c8   : > { %4898 = vmatmul.mubr.bf16.vlgmr.msra.gmra.mxu1 %v3883_v17 }
 0x788   : > { %v4899_v18 = vpop.f32.mrf.mxu1 }
 0x789   : > { %v3998_v9 = vadd.f32 %v4899_v18, %v4471_v63 }
 0x78a   : > { %v3989_v14 = vpop.f32.mrf.mxu1 }
 0x78b   : > { %v3990_v41 = vadd.f32 %v4471_v63, %v3989_v14  ;;  %v4006_v15 = vadd.f32 %v3998_v9, %v6469_v12 }
 0x78c   : > { %v4900_v23 = vpop.f32.mrf.mxu1 }
 0x78d   : > { %v4004_v40 = vadd.f32 %v3990_v41, %v6463_v51  ;;  %v4001_v36 = vadd.f32 %v4900_v23, %v4471_v63 }
 0x78e   : > { %v3992_v20 = vpop.f32.mrf.mxu1 }
 0x78f   : > { %v3993_v45 = vadd.f32 %v4471_v63, %v3992_v20  ;;  %4909 = vmatprep.mubr.msk.f32.mxu0 %vm663_vm0, %v4004_v40  ;;  %v4007_v2 = vadd.f32 %v4001_v36, %v6471_v37 }
 0x791   : > { %v4005_v39 = vadd.f32 %v3993_v45, %v6465_v62 }
 0x793   : > { %4910 = vmatmul.mubr.msk.f32.vlgmr.msra.gmra.mxu0 %vm663_vm0, %v4005_v39 }
 0x794   : > { %4912 = vmatprep.mubr.msk.f32.mxu0 %vm663_vm0, %v4006_v15  ;;  %4916 = vmatpush3.msra.mxu0 %v5159_v31 }
 0x795   : > { %4917 = vmatprep.subr.mxu0 %v5159_v31 }
 0x796   : > { %4918 = vmatpush3.msra.mxu0 %v5159_v31 }
 0x797   : > { %4913 = vmatmul.mubr.msk.f32.gmra.mxu0 %vm663_vm0, %v4007_v2  ;;  %4919 = vmatprep.subr.mxu0 %v5159_v31 }
 0x798   : > { %4920 = vmatpush3.msra.mxu0 %v5159_v31 }
 0x799   : > { %4921 = vmatprep.subr.mxu0 %v5159_v31 }
 0x79a   : > { %4922 = vmatpush3.msra.mxu0 %v5159_v31 }
 0x853   : > { %v4911_v51 = vpop.f32.mrf.mxu0 }
 0x854   : > { %v4108_v62 = vsub.f32 %v4005_v39, %v4911_v51 }
 0x855   : > { %v4088_v12 = vpop.f32.mrf.mxu0 }
 0x856   : > { %v4107_v4 = vsub.f32 %v4004_v40, %v4088_v12  ;;  %v4112_v58 = vmul.f32 %v4108_v62, %v4108_v62 }
 0x857   : > { %v4914_v8 = vpop.f32.mrf.mxu0 }
 0x858   : > { %v4111_v37 = vmul.f32 %v4107_v4, %v4107_v4  ;;  %v4110_v11 = vsub.f32 %v4007_v2, %v4914_v8 }
 0x859   : > { %v4098_v21 = vpop.f32.mrf.mxu0 }
 0x85a   : > { %v4109_v32 = vsub.f32 %v4006_v15, %v4098_v21  ;;  %4923 = vmatprep.mubr.msk.f32.mxu0 %vm663_vm0, %v4111_v37  ;;  %v4114_v59 = vmul.f32 %v4110_v11, %v4110_v11 }
 0x85b   : > { %4924 = vmatmul.mubr.msk.f32.vlgmr.msra.gmra.mxu0 %vm663_vm0, %v4112_v58 }
 0x85c   : > { %v4113_v61 = vmul.f32 %v4109_v32, %v4109_v32 }
 0x85e   : > { %4926 = vmatprep.mubr.msk.f32.mxu0 %vm663_vm0, %v4113_v61 }
 0x85f   : > { %4927 = vmatmul.mubr.msk.f32.gmra.mxu0 %vm663_vm0, %v4114_v59 }
 0x91b   : > { %v4925_v31 = vpop.f32.mrf.mxu0 }
 0x91c   : > { %v4199_v48 = vadd.f32 1e-05, %v4925_v31 }
 0x91d   : > { %v4193_v49 = vpop.f32.mrf.mxu0 }
 0x91e   : > { %5136 = vrsqrt.f32 %v4199_v48  ;;  %v4194_v52 = vadd.f32 1e-05, %v4193_v49 }
 0x91f   : > { %v4928_v6 = vpop.f32.mrf.mxu0 }
 0x920   : > { %5138 = vrsqrt.f32 %v4194_v52  ;;  %v4209_v57 = vadd.f32 1e-05, %v4928_v6 }
 0x921   : > { %v4203_v46 = vpop.f32.mrf.mxu0 }
 0x922   : > { %5140 = vrsqrt.f32 %v4209_v57  ;;  %v4204_v30 = vadd.f32 1e-05, %v4203_v46 }
 0x924   : > { %5142 = vrsqrt.f32 %v4204_v30 }
 0x92b   : > { %v5137_v50 = vpop.eup %5136 }
 0x92c   : > { %v4217_v5 = vmul.f32 %v5137_v50, %v4108_v62 }
 0x92d   : > { %v5139_v0 = vpop.eup %5138 }
 0x92e   : > { %v4216_v25 = vmul.f32 %v5139_v0, %v4107_v4  ;;  %v4227_v38 = vmul.f32 %v4488_v55, %v4217_v5 }
 0x92f   : > { %v5141_v43 = vpop.eup %5140 }
 0x930   : > { %v4226_v42 = vmul.f32 %v4488_v55, %v4216_v25  ;;  %v4219_v35 = vmul.f32 %v5141_v43, %v4110_v11  ;;  %v4237_v26 = vadd.f32 %v4489_v22, %v4227_v38 }
 0x931   : > { %v5143_v7 = vpop.eup %5142 }
 0x932   : > { %v4236_v54 = vadd.f32 %v4489_v22, %v4226_v42  ;;  %v4218_v44 = vmul.f32 %v5143_v7, %v4109_v32  ;;  %v4229_v47 = vmul.f32 %v4488_v55, %v4219_v35  ;;  %4241 = vst.msk [vmem:[%s599_s20 + $0x8] sm:$0xff] %vm663_vm0, %v4237_v26 }
 0x934   : > { %4240 = vst.msk [vmem:[%s599_s20] sm:$0xff] %vm663_vm0, %v4236_v54  ;;  %v4228_v24 = vmul.f32 %v4488_v55, %v4218_v44  ;;  %v4239_v19 = vadd.f32 %v4489_v22, %v4229_v47 }
 0x936   : > { %v4238_v28 = vadd.f32 %v4489_v22, %v4228_v24  ;;  %4243 = vst.msk [vmem:[%s599_s20 + $0x18] sm:$0xff] %vm663_vm0, %v4239_v19 }
 0x938   : > { %4242 = vst.msk [vmem:[%s599_s20 + $0x10] sm:$0xff] %vm663_vm0, %v4238_v28 }
 0x939 PF: > { %s28_s27 = sadd.s32 1, %s5154_s27  }
 0x93a   : > { %p25_p5 = scmp.ge.s32.totalorder %s28_s27, 4  }
 0x93c   :  { %27 = sbr.rel (!%p25_p5) target bundleno = 4 (0x4), region = 125 }

</bundles_post_ra>
